<compile_context>
chip_gen: v6e
topology: v6e:2x2x1
jax: 0.10.0
libtpu: 0.0.40
codegen_flags: <defaults>
</compile_context>

<pallas_src>
import functools
import math

import jax
import jax.numpy as jnp
from jax import lax
from jax.experimental import pallas as pl
from jax.experimental.pallas import tpu as pltpu

# ---- module hyper-parameters (nn.Module defaults: heads=8, dim_head=64) -----
HEADS = 8
DIM_HEAD = 64
INNER_DIM = HEADS * DIM_HEAD          # 512
QUERY_DIM = 128                       # context_dim defaults to query_dim
SEQ = 256                             # number of query / context tokens
BATCH = 2

# Exact-f32 matmuls only for the *reference*, so the tolerance check is meaningful.
_REF_PRECISION = lax.Precision.HIGHEST


# -----------------------------------------------------------------------------
# Pallas kernel: attention core for one (batch, head-group) grid step.
#   q_ref : (1, Nq, G*D)  bf16, pre-scaled by 1/sqrt(D)
#   k_ref : (1, Nk, G*D)  bf16
#   v_ref : (1, Nk, G*D)  bf16
#   o_ref : (1, Nq, G*D)  lane-dense output (G heads concatenated on lanes)
# -----------------------------------------------------------------------------
def _make_kernel(dim_head):
    def mea_attention_kernel(q_ref, k_ref, v_ref, o_ref):
        group_width = q_ref.shape[-1]
        heads_per_step = group_width // dim_head

        head_outs = []
        for h in range(heads_per_step):                   # static unroll (2 heads)
            lo = h * dim_head
            q = q_ref[0, :, lo:lo + dim_head]             # (Nq, D) bf16 (pre-scaled)
            k = k_ref[0, :, lo:lo + dim_head]             # (Nk, D) bf16
            v = v_ref[0, :, lo:lo + dim_head]             # (Nk, D) bf16

            # scores (Nq, Nk): single bf16 MXU pass, f32 accumulate.
            s = lax.dot_general(q, k, (((1,), (1,)), ((), ())),
                                preferred_element_type=jnp.float32)

            # numerically-stable softmax in f32; denominator folded in after P @ V.
            m = jnp.max(s, axis=-1, keepdims=True)
            p = jnp.exp(s - m)
            l = jnp.sum(p, axis=-1, keepdims=True)

            o = jnp.dot(p.astype(jnp.bfloat16), v,        # bf16 MXU, f32 accumulate
                        preferred_element_type=jnp.float32)
            head_outs.append(o * pl.reciprocal(l, approx=True))   # (Nq, D) mul (EUP)

        # Pairwise head packing -> one aligned 128-lane-wide store per grid step.
        o_ref[0] = jnp.concatenate(head_outs, axis=-1).astype(o_ref.dtype)

    return mea_attention_kernel


# -----------------------------------------------------------------------------
# Wrapper: the small Linear layers + bf16 casts (all fused by XLA), then the
# attention-only Pallas call over (batch, head-group).
# -----------------------------------------------------------------------------
@functools.partial(jax.jit, static_argnames=("heads", "dim_head"))
def _mea_forward(x, context, w_q, w_k, w_v, w_out, b_out, *, heads, dim_head):
    b, nq, _ = x.shape
    nk = context.shape[1]
    inner = heads * dim_head
    scale = 1.0 / math.sqrt(dim_head)

    # to_q / to_k / to_v (nn.Linear, bias=False) — default precision in the
    # production path; HIGHEST is only used in the reference.
    q = jnp.dot(x, w_q.T)
    k = jnp.dot(context, w_k.T)
    v = jnp.dot(context, w_v.T)

    # Lane-slab (B, N, H*D) layout is exactly nn.Linear's natural output layout:
    # head h lives in columns [h*D, (h+1)*D).  No transposes needed.
    qh = (q * scale).astype(jnp.bfloat16)                 # fold 1/sqrt(D) into q
    kh = k.astype(jnp.bfloat16)
    vh = v.astype(jnp.bfloat16)

    heads_per_step = 2 if heads % 2 == 0 else 1           # 2*64 = 128 lanes/step
    group_w = heads_per_step * dim_head
    n_groups = heads // heads_per_step

    out = pl.pallas_call(
        _make_kernel(dim_head),
        out_shape=jax.ShapeDtypeStruct((b, nq, inner), x.dtype),
        grid_spec=pltpu.PrefetchScalarGridSpec(
            num_scalar_prefetch=0,
            grid=(b, n_groups),                           # several steps per core
            in_specs=[
                pl.BlockSpec((1, nq, group_w), lambda i, g: (i, 0, g)),
                pl.BlockSpec((1, nk, group_w), lambda i, g: (i, 0, g)),
                pl.BlockSpec((1, nk, group_w), lambda i, g: (i, 0, g)),
            ],
            out_specs=pl.BlockSpec((1, nq, group_w), lambda i, g: (i, 0, g)),
        ),
        compiler_params=pltpu.CompilerParams(
            dimension_semantics=("parallel", "arbitrary")),
    )(qh, kh, vh)

    # to_out: Linear(+bias).  Dropout(p=0.0) is the identity at inference.
    return jnp.dot(out, w_out.T) + b_out


def memory_efficient_cross_attention(x, context, w_q, w_k, w_v, w_out, b_out,
                                     *, heads=HEADS, dim_head=DIM_HEAD):
    """Forward pass of MemoryEfficientCrossAttention (context=None -> self-attn).

    The PyTorch module raises NotImplementedError for `mask`, so masking is not
    supported here either.  Assumes Nq/Nk fit in a single block (256 tokens here).
    """
    ctx = x if context is None else context
    return _mea_forward(x, ctx, w_q, w_k, w_v, w_out, b_out,
                        heads=heads, dim_head=dim_head)


# -----------------------------------------------------------------------------
# Pure-JAX reference mirroring the PyTorch forward (exact f32), for verification.
# -----------------------------------------------------------------------------
def mea_reference(x, context, w_q, w_k, w_v, w_out, b_out,
                  heads=HEADS, dim_head=DIM_HEAD):
    ctx = x if context is None else context
    q = jnp.dot(x, w_q.T, precision=_REF_PRECISION)
    k = jnp.dot(ctx, w_k.T, precision=_REF_PRECISION)
    v = jnp.dot(ctx, w_v.T, precision=_REF_PRECISION)
    b, nq, _ = q.shape

    def split(t):
        return jnp.transpose(t.reshape(b, t.shape[1], heads, dim_head),
                             (0, 2, 1, 3))                # (B, H, N, D)

    qh, kh, vh = split(q), split(k), split(v)
    s = jnp.einsum('bhnd,bhmd->bhnm', qh, kh,
                   precision=_REF_PRECISION) * (1.0 / math.sqrt(dim_head))
    p = jax.nn.softmax(s, axis=-1)
    o = jnp.einsum('bhnm,bhmd->bhnd', p, vh, precision=_REF_PRECISION)
    o = jnp.transpose(o, (0, 2, 1, 3)).reshape(b, nq, heads * dim_head)
    return jnp.dot(o, w_out.T, precision=_REF_PRECISION) + b_out


if __name__ == "__main__":
    key = jax.random.PRNGKey(0)
    kx, k1, k2, k3, k4, k5 = jax.random.split(key, 6)

    x = jax.random.normal(kx, (BATCH, SEQ, QUERY_DIM), dtype=jnp.float32)

    # deterministic "synthetic checkpoint" in PyTorch nn.Linear weight layout
    w_q = 0.05 * jax.random.normal(k1, (INNER_DIM, QUERY_DIM), dtype=jnp.float32)
    w_k = 0.05 * jax.random.normal(k2, (INNER_DIM, QUERY_DIM), dtype=jnp.float32)
    w_v = 0.05 * jax.random.normal(k3, (INNER_DIM, QUERY_DIM), dtype=jnp.float32)
    w_out = 0.05 * jax.random.normal(k4, (QUERY_DIM, INNER_DIM), dtype=jnp.float32)
    b_out = 0.05 * jax.random.normal(k5, (QUERY_DIM,), dtype=jnp.float32)

    y = memory_efficient_cross_attention(x, None, w_q, w_k, w_v, w_out, b_out)
    jax.block_until_ready(y)

    y_ref = mea_reference(x, None, w_q, w_k, w_v, w_out, b_out)
    assert y.shape == (BATCH, SEQ, QUERY_DIM)
    # Tolerance loosened vs the f32 version: the production path now runs bf16
    # MXU matmuls (kernel + projections), per the performance review.
    assert jnp.allclose(y, y_ref, rtol=5e-2, atol=5e-2), "mismatch vs reference"

    print("KERNEL_OK")
</pallas_src>

<mosaic_0001>
module attributes {stable_mosaic.version = 11 : i64} {
  func.func @mea_attention_kernel(%arg0: i32, %arg1: i32, %arg2: memref<1x256x128xbf16, #tpu.memory_space<vmem>>, %arg3: memref<1x256x128xbf16, #tpu.memory_space<vmem>>, %arg4: memref<1x256x128xbf16, #tpu.memory_space<vmem>>, %arg5: memref<1x256x128xf32, #tpu.memory_space<vmem>>) attributes {dimension_semantics = [#tpu.dimension_semantics<parallel>, #tpu.dimension_semantics<arbitrary>], iteration_bounds = array<i64: 2, 4>, scalar_prefetch = 0 : i64, scratch_operands = 0 : i64, tpu.core_type = #tpu.core_type<tc>, window_params = [{transform_indices = @transform_0, window_bounds = array<i64: 1, 256, 128>}, {transform_indices = @transform_1, window_bounds = array<i64: 1, 256, 128>}, {transform_indices = @transform_2, window_bounds = array<i64: 1, 256, 128>}, {transform_indices = @transform_3, window_bounds = array<i64: 1, 256, 128>}]} {
    %c0 = arith.constant 0 : index
    %c0_0 = arith.constant 0 : index
    %c0_1 = arith.constant 0 : index
    %0 = vector.load %arg2[%c0, %c0_0, %c0_1] : memref<1x256x128xbf16, #tpu.memory_space<vmem>>, vector<1x256x64xbf16>
    %1 = vector.shape_cast %0 : vector<1x256x64xbf16> to vector<256x64xbf16>
    %c0_2 = arith.constant 0 : index
    %c0_3 = arith.constant 0 : index
    %c0_4 = arith.constant 0 : index
    %2 = vector.load %arg3[%c0_2, %c0_3, %c0_4] : memref<1x256x128xbf16, #tpu.memory_space<vmem>>, vector<1x256x64xbf16>
    %3 = vector.shape_cast %2 : vector<1x256x64xbf16> to vector<256x64xbf16>
    %c0_5 = arith.constant 0 : index
    %c0_6 = arith.constant 0 : index
    %c0_7 = arith.constant 0 : index
    %4 = vector.load %arg4[%c0_5, %c0_6, %c0_7] : memref<1x256x128xbf16, #tpu.memory_space<vmem>>, vector<1x256x64xbf16>
    %5 = vector.shape_cast %4 : vector<1x256x64xbf16> to vector<256x64xbf16>
    %cst = arith.constant dense<0.000000e+00> : vector<256x256xf32>
    %6 = tpu.matmul %1, %3, %cst {dimension_numbers = #tpu.dot_dimension_numbers<[1], [1], [0], [0], [0, 0, 1, 0], [], []>} : vector<256x64xbf16>, vector<256x64xbf16>, vector<256x256xf32> -> vector<256x256xf32>
    %cst_8 = arith.constant dense<0xFF800000> : vector<256xf32>
    %7 = vector.multi_reduction <maximumf>, %6, %cst_8 [1] : vector<256x256xf32> to vector<256xf32>
    %8 = vector.shape_cast %7 : vector<256xf32> to vector<256x1xf32>
    %9 = vector.broadcast %8 : vector<256x1xf32> to vector<256x256xf32>
    %10 = arith.subf %6, %9 : vector<256x256xf32>
    %11 = math.exp %10 : vector<256x256xf32>
    %cst_9 = arith.constant dense<0.000000e+00> : vector<256xf32>
    %12 = vector.multi_reduction <add>, %11, %cst_9 [1] : vector<256x256xf32> to vector<256xf32>
    %13 = vector.shape_cast %12 : vector<256xf32> to vector<256x1xf32>
    %14 = arith.truncf %11 : vector<256x256xf32> to vector<256x256xbf16>
    %cst_10 = arith.constant dense<0.000000e+00> : vector<256x64xf32>
    %15 = tpu.matmul %14, %5, %cst_10 {dimension_numbers = #tpu.dot_dimension_numbers<[1], [0], [0], [1], [0, 0, 1, 1], [], []>} : vector<256x256xbf16>, vector<256x64xbf16>, vector<256x64xf32> -> vector<256x64xf32>
    %16 = tpu.reciprocal %13 {approx = true} : vector<256x1xf32> -> vector<256x1xf32>
    %17 = vector.broadcast %16 : vector<256x1xf32> to vector<256x64xf32>
    %18 = arith.mulf %15, %17 : vector<256x64xf32>
    %c0_11 = arith.constant 0 : index
    %c0_12 = arith.constant 0 : index
    %c64 = arith.constant 64 : index
    %19 = vector.load %arg2[%c0_11, %c0_12, %c64] : memref<1x256x128xbf16, #tpu.memory_space<vmem>>, vector<1x256x64xbf16>
    %20 = vector.shape_cast %19 : vector<1x256x64xbf16> to vector<256x64xbf16>
    %c0_13 = arith.constant 0 : index
    %c0_14 = arith.constant 0 : index
    %c64_15 = arith.constant 64 : index
    %21 = vector.load %arg3[%c0_13, %c0_14, %c64_15] : memref<1x256x128xbf16, #tpu.memory_space<vmem>>, vector<1x256x64xbf16>
    %22 = vector.shape_cast %21 : vector<1x256x64xbf16> to vector<256x64xbf16>
    %c0_16 = arith.constant 0 : index
    %c0_17 = arith.constant 0 : index
    %c64_18 = arith.constant 64 : index
    %23 = vector.load %arg4[%c0_16, %c0_17, %c64_18] : memref<1x256x128xbf16, #tpu.memory_space<vmem>>, vector<1x256x64xbf16>
    %24 = vector.shape_cast %23 : vector<1x256x64xbf16> to vector<256x64xbf16>
    %cst_19 = arith.constant dense<0.000000e+00> : vector<256x256xf32>
    %25 = tpu.matmul %20, %22, %cst_19 {dimension_numbers = #tpu.dot_dimension_numbers<[1], [1], [0], [0], [0, 0, 1, 0], [], []>} : vector<256x64xbf16>, vector<256x64xbf16>, vector<256x256xf32> -> vector<256x256xf32>
    %cst_20 = arith.constant dense<0xFF800000> : vector<256xf32>
    %26 = vector.multi_reduction <maximumf>, %25, %cst_20 [1] : vector<256x256xf32> to vector<256xf32>
    %27 = vector.shape_cast %26 : vector<256xf32> to vector<256x1xf32>
    %28 = vector.broadcast %27 : vector<256x1xf32> to vector<256x256xf32>
    %29 = arith.subf %25, %28 : vector<256x256xf32>
    %30 = math.exp %29 : vector<256x256xf32>
    %cst_21 = arith.constant dense<0.000000e+00> : vector<256xf32>
    %31 = vector.multi_reduction <add>, %30, %cst_21 [1] : vector<256x256xf32> to vector<256xf32>
    %32 = vector.shape_cast %31 : vector<256xf32> to vector<256x1xf32>
    %33 = arith.truncf %30 : vector<256x256xf32> to vector<256x256xbf16>
    %cst_22 = arith.constant dense<0.000000e+00> : vector<256x64xf32>
    %34 = tpu.matmul %33, %24, %cst_22 {dimension_numbers = #tpu.dot_dimension_numbers<[1], [0], [0], [1], [0, 0, 1, 1], [], []>} : vector<256x256xbf16>, vector<256x64xbf16>, vector<256x64xf32> -> vector<256x64xf32>
    %35 = tpu.reciprocal %32 {approx = true} : vector<256x1xf32> -> vector<256x1xf32>
    %36 = vector.broadcast %35 : vector<256x1xf32> to vector<256x64xf32>
    %37 = arith.mulf %34, %36 : vector<256x64xf32>
    %38 = tpu.concatenate %18, %37 in 1 : vector<256x64xf32>, vector<256x64xf32> -> vector<256x128xf32>
    %c0_23 = arith.constant 0 : index
    %c0_24 = arith.constant 0 : index
    %c0_25 = arith.constant 0 : index
    %39 = vector.load %arg5[%c0_23, %c0_24, %c0_25] : memref<1x256x128xf32, #tpu.memory_space<vmem>>, vector<1x256x128xf32>
    %40 = vector.shape_cast %39 : vector<1x256x128xf32> to vector<256x128xf32>
    %41 = vector.shape_cast %38 : vector<256x128xf32> to vector<1x256x128xf32>
    tpu.vector_store %arg5[%c0_23, %c0_24, %c0_25], %41 {strides = array<i32>} : memref<1x256x128xf32, #tpu.memory_space<vmem>>, vector<1x256x128xf32>,
    return
  }
  func.func @transform_0(%arg0: i32, %arg1: i32) -> (i32, i32, i32) {
    %c0_i32 = arith.constant 0 : i32
    %c0_i32_0 = arith.constant 0 : i32
    return %arg0, %c0_i32, %arg1 : i32, i32, i32
  }
  func.func @transform_1(%arg0: i32, %arg1: i32) -> (i32, i32, i32) {
    %c0_i32 = arith.constant 0 : i32
    %c0_i32_0 = arith.constant 0 : i32
    return %arg0, %c0_i32, %arg1 : i32, i32, i32
  }
  func.func @transform_2(%arg0: i32, %arg1: i32) -> (i32, i32, i32) {
    %c0_i32 = arith.constant 0 : i32
    %c0_i32_0 = arith.constant 0 : i32
    return %arg0, %c0_i32, %arg1 : i32, i32, i32
  }
  func.func @transform_3(%arg0: i32, %arg1: i32) -> (i32, i32, i32) {
    %c0_i32 = arith.constant 0 : i32
    %c0_i32_0 = arith.constant 0 : i32
    return %arg0, %c0_i32, %arg1 : i32, i32, i32
  }
}

</mosaic_0001>

<bundles_post_ra>
// kernel: _mea_forward.1
= control target key start
LH: loop header
LB: loop body
LE: loop exit
PB: predicated region body
PF: predicated region fallthrough
CT: control target
= control target key end

     0   :  { %s4553_s12 = smov 0   ;;  %s4555_s13 = smov 0   ;;  %s6505_s0 = inlined_call_operand.vmem [shape: bf16[2,256,512], index: 0, kind: input, shape index: {}]   ;;  %s6506_s1 = inlined_call_operand.vmem [shape: bf16[2,256,512], index: 1, kind: input, shape index: {}]   ;;  %s6507_s2 = inlined_call_operand.vmem [shape: bf16[2,256,512], index: 2, kind: input, shape index: {}]   ;;  %s6508_s3 = inlined_call_operand.vmem [shape: f32[2,256,512], index: 3, kind: output, shape index: {}]  }
   0x1   :  { %s4557_s14 = smov 0   ;;  %s4559_s15 = smov 0  }
   0x2   :  { %s4561_s16 = smov 0   ;;  %s4563_s17 = smov 0  }
   0x3   :  { %s4565_s18 = smov 0  }
   0x4 LB: > { %s22_s19 = sadd.s32 1, %s4522_s16  ;;  %s25_s20 = sadd.s32 1, %s4526_s17  ;;  %s4530_s18 = sphi %s4565_s18, %s13_s18   ;;  %s4526_s17 = sphi %s4563_s17, %s6836_s17   ;;  %s4522_s16 = sphi %s4561_s16, %s6835_s16   ;;  %s4518_s15 = sphi %s4559_s15, %s6834_s15   ;;  %s4514_s14 = sphi %s4557_s14, %s6833_s14   ;;  %s4510_s13 = sphi %s4555_s13, %s6832_s13   ;;  %s4506_s12 = sphi %s4553_s12, %s6831_s12  }
   0x5   : > { %p23_p0 = scmp.ge.s32.totalorder %s22_s19, 4  ;;  %s3530_s21 = sadd.s32 4294967295, %s4530_s18  }
   0x6   : > { %p41_p1 = scmp.ne.s32.totalorder %s4510_s13, %s4506_s12  ;;  %p42_p2 = scmp.eq.s32.totalorder %s4530_s18, 0 }
   0x7   : > { %s6838_s19 = smov (%p23_p0, %s22_s19), 0  ;;  %s6840_s20 = smov (!%p23_p0, %s25_s20), %s4526_s17 }
   0x8   : > { %p27_p3 = scmp.ge.s32.totalorder %s6840_s20, 2  ;;  %p129_p4 = scmp.eq.s32.totalorder %s3530_s21, 7 }
   0x9   : > { %s30_s22 = ssub.s32 %s4522_s16, %s6838_s19  ;;  %p4599_p5 = por %p42_p2, %p41_p1 }
   0xa   : > { %s6842_s20 = smov (%p27_p3, %s6840_s20), 0  ;;  %p4605_p6 = por %p129_p4, %p41_p1 }
   0xb   : > { %s29_s25 = ssub.s32 %s4526_s17, %s6842_s20  ;;  %s34_s27 = sadd.s32 1, %s4510_s13 }
   0xc   : > { %s31_s26 = sor.u32 %s30_s22, %s29_s25  ;;  %p3533_p8 = scmp.ge.s32.totalorder %s4530_s18, 8 }
   0xd   : > { %p32_p7 = scmp.eq.s32.totalorder %s31_s26, 0 }
   0xe   : > { %151 = sbr.rel (%p3533_p8) target bundleno = 100 (0x64), region = 16 }
   0xf   : > { %s4613_s28 = scalar_select %p32_p7, %s4510_s13, %s34_s27  }
  0x13   : > { %154 = sbr.rel (!%p4599_p5) target bundleno = 46 (0x2e), region = 20  ;;  %s156_s29 = sand.u32 (%p4599_p5), 1, %s4510_s13  }
  0x14   : > { %s3535_s30 = sshll.u32 (%p4599_p5), %s4526_s17, 7  ;;  %s3534_s4 = sshll.u32 (%p4599_p5), %s156_s29, 7 }
  0x15   : > { %s160_s5 = sadd.s32 (%p4599_p5), %s4522_s16, %s3535_s30  ;;  %s4629_s10 = scalar_lea.vmem (%p4599_p5), [#allocation2], %s3534_s4 }
  0x16   : > { %s3536_s6 = sshll.u32 (%p4599_p5), %s160_s5, 2 }
  0x17   : > { %s4624_s9 = scalar_lea.vmem (%p4599_p5), %s6505_s0, %s3536_s6 }
  0x18   : > { %v179_v0 = vld [vmem:[%s4624_s9] sm:$0xf]  ;;  %v181_v1 = vld [vmem:[%s4624_s9 + $0x10] sm:$0xf] }
  0x19   : > { %v183_v2 = vld [vmem:[%s4624_s9 + $0x20] sm:$0xf]  ;;  %180 = vst [vmem:[%s4629_s10] sm:$0xf] %v179_v0  ;;  %182 = vst [vmem:[%s4629_s10 + $0x4] sm:$0xf] %v181_v1 }
  0x1a   : > { %184 = vst [vmem:[%s4629_s10 + $0x8] sm:$0xf] %v183_v2  ;;  %v185_v3 = vld [vmem:[%s4624_s9 + $0x30] sm:$0xf]  ;;  %v187_v4 = vld [vmem:[%s4624_s9 + $0x40] sm:$0xf] }
  0x1b   : > { %v189_v5 = vld [vmem:[%s4624_s9 + $0x50] sm:$0xf]  ;;  %186 = vst [vmem:[%s4629_s10 + $0xc] sm:$0xf] %v185_v3  ;;  %188 = vst [vmem:[%s4629_s10 + $0x10] sm:$0xf] %v187_v4 }
  0x1c   : > { %190 = vst [vmem:[%s4629_s10 + $0x14] sm:$0xf] %v189_v5  ;;  %v191_v6 = vld [vmem:[%s4624_s9 + $0x60] sm:$0xf]  ;;  %v193_v7 = vld [vmem:[%s4624_s9 + $0x70] sm:$0xf] }
  0x1d   : > { %v195_v8 = vld [vmem:[%s4624_s9 + $0x80] sm:$0xf]  ;;  %192 = vst [vmem:[%s4629_s10 + $0x18] sm:$0xf] %v191_v6  ;;  %194 = vst [vmem:[%s4629_s10 + $0x1c] sm:$0xf] %v193_v7 }
  0x1e   : > { %196 = vst [vmem:[%s4629_s10 + $0x20] sm:$0xf] %v195_v8  ;;  %v197_v9 = vld [vmem:[%s4624_s9 + $0x90] sm:$0xf]  ;;  %v199_v10 = vld [vmem:[%s4624_s9 + $0xa0] sm:$0xf] }
  0x1f   : > { %v201_v11 = vld [vmem:[%s4624_s9 + $0xb0] sm:$0xf]  ;;  %198 = vst [vmem:[%s4629_s10 + $0x24] sm:$0xf] %v197_v9  ;;  %200 = vst [vmem:[%s4629_s10 + $0x28] sm:$0xf] %v199_v10 }
  0x20   : > { %202 = vst [vmem:[%s4629_s10 + $0x2c] sm:$0xf] %v201_v11  ;;  %v203_v12 = vld [vmem:[%s4624_s9 + $0xc0] sm:$0xf]  ;;  %v205_v13 = vld [vmem:[%s4624_s9 + $0xd0] sm:$0xf] }
  0x21   : > { %v207_v14 = vld [vmem:[%s4624_s9 + $0xe0] sm:$0xf]  ;;  %204 = vst [vmem:[%s4629_s10 + $0x30] sm:$0xf] %v203_v12  ;;  %206 = vst [vmem:[%s4629_s10 + $0x34] sm:$0xf] %v205_v13 }
  0x22   : > { %208 = vst [vmem:[%s4629_s10 + $0x38] sm:$0xf] %v207_v14  ;;  %v209_v15 = vld [vmem:[%s4624_s9 + $0xf0] sm:$0xf]  ;;  %v211_v16 = vld [vmem:[%s4624_s9 + $0x100] sm:$0xf] }
  0x23   : > { %v213_v17 = vld [vmem:[%s4624_s9 + $0x110] sm:$0xf]  ;;  %210 = vst [vmem:[%s4629_s10 + $0x3c] sm:$0xf] %v209_v15  ;;  %212 = vst [vmem:[%s4629_s10 + $0x40] sm:$0xf] %v211_v16 }
  0x24   : > { %214 = vst [vmem:[%s4629_s10 + $0x44] sm:$0xf] %v213_v17  ;;  %v215_v18 = vld [vmem:[%s4624_s9 + $0x120] sm:$0xf]  ;;  %v217_v19 = vld [vmem:[%s4624_s9 + $0x130] sm:$0xf] }
  0x25   : > { %v219_v20 = vld [vmem:[%s4624_s9 + $0x140] sm:$0xf]  ;;  %216 = vst [vmem:[%s4629_s10 + $0x48] sm:$0xf] %v215_v18  ;;  %218 = vst [vmem:[%s4629_s10 + $0x4c] sm:$0xf] %v217_v19 }
  0x26   : > { %220 = vst [vmem:[%s4629_s10 + $0x50] sm:$0xf] %v219_v20  ;;  %v221_v21 = vld [vmem:[%s4624_s9 + $0x150] sm:$0xf]  ;;  %v223_v22 = vld [vmem:[%s4624_s9 + $0x160] sm:$0xf] }
  0x27   : > { %v225_v23 = vld [vmem:[%s4624_s9 + $0x170] sm:$0xf]  ;;  %222 = vst [vmem:[%s4629_s10 + $0x54] sm:$0xf] %v221_v21  ;;  %224 = vst [vmem:[%s4629_s10 + $0x58] sm:$0xf] %v223_v22 }
  0x28   : > { %226 = vst [vmem:[%s4629_s10 + $0x5c] sm:$0xf] %v225_v23  ;;  %v227_v24 = vld [vmem:[%s4624_s9 + $0x180] sm:$0xf]  ;;  %v229_v25 = vld [vmem:[%s4624_s9 + $0x190] sm:$0xf] }
  0x29   : > { %v231_v26 = vld [vmem:[%s4624_s9 + $0x1a0] sm:$0xf]  ;;  %228 = vst [vmem:[%s4629_s10 + $0x60] sm:$0xf] %v227_v24  ;;  %230 = vst [vmem:[%s4629_s10 + $0x64] sm:$0xf] %v229_v25 }
  0x2a   : > { %232 = vst [vmem:[%s4629_s10 + $0x68] sm:$0xf] %v231_v26  ;;  %v233_v27 = vld [vmem:[%s4624_s9 + $0x1b0] sm:$0xf]  ;;  %v235_v28 = vld [vmem:[%s4624_s9 + $0x1c0] sm:$0xf] }
  0x2b   : > { %v237_v29 = vld [vmem:[%s4624_s9 + $0x1d0] sm:$0xf]  ;;  %234 = vst [vmem:[%s4629_s10 + $0x6c] sm:$0xf] %v233_v27  ;;  %236 = vst [vmem:[%s4629_s10 + $0x70] sm:$0xf] %v235_v28 }
  0x2c   : > { %238 = vst [vmem:[%s4629_s10 + $0x74] sm:$0xf] %v237_v29  ;;  %v239_v30 = vld [vmem:[%s4624_s9 + $0x1e0] sm:$0xf]  ;;  %v241_v31 = vld [vmem:[%s4624_s9 + $0x1f0] sm:$0xf] }
  0x2d   : > { %240 = vst [vmem:[%s4629_s10 + $0x78] sm:$0xf] %v239_v30  ;;  %242 = vst [vmem:[%s4629_s10 + $0x7c] sm:$0xf] %v241_v31 }
  0x2e PF: > { %330 = sbr.rel (!%p4599_p5) target bundleno = 73 (0x49), region = 61  ;;  %s332_s11 = sand.u32 (%p4599_p5), 1, %s4510_s13  }
  0x2f   : > { %s3538_s21 = sshll.u32 (%p4599_p5), %s4526_s17, 7  ;;  %s3537_s22 = sshll.u32 (%p4599_p5), %s332_s11, 7 }
  0x30   : > { %s336_s25 = sadd.s32 (%p4599_p5), %s4522_s16, %s3538_s21  ;;  %s4705_s4 = scalar_lea.vmem (%p4599_p5), [#allocation3], %s3537_s22 }
  0x31   : > { %s3539_s26 = sshll.u32 (%p4599_p5), %s336_s25, 2 }
  0x32   : > { %s4700_s30 = scalar_lea.vmem (%p4599_p5), %s6506_s1, %s3539_s26 }
  0x33   : > { %v355_v32 = vld [vmem:[%s4700_s30] sm:$0xf]  ;;  %v357_v33 = vld [vmem:[%s4700_s30 + $0x10] sm:$0xf] }
  0x34   : > { %v359_v34 = vld [vmem:[%s4700_s30 + $0x20] sm:$0xf]  ;;  %356 = vst [vmem:[%s4705_s4] sm:$0xf] %v355_v32  ;;  %358 = vst [vmem:[%s4705_s4 + $0x4] sm:$0xf] %v357_v33 }
  0x35   : > { %360 = vst [vmem:[%s4705_s4 + $0x8] sm:$0xf] %v359_v34  ;;  %v361_v35 = vld [vmem:[%s4700_s30 + $0x30] sm:$0xf]  ;;  %v363_v36 = vld [vmem:[%s4700_s30 + $0x40] sm:$0xf] }
  0x36   : > { %v365_v37 = vld [vmem:[%s4700_s30 + $0x50] sm:$0xf]  ;;  %362 = vst [vmem:[%s4705_s4 + $0xc] sm:$0xf] %v361_v35  ;;  %364 = vst [vmem:[%s4705_s4 + $0x10] sm:$0xf] %v363_v36 }
  0x37   : > { %366 = vst [vmem:[%s4705_s4 + $0x14] sm:$0xf] %v365_v37  ;;  %v367_v38 = vld [vmem:[%s4700_s30 + $0x60] sm:$0xf]  ;;  %v369_v39 = vld [vmem:[%s4700_s30 + $0x70] sm:$0xf] }
  0x38   : > { %v371_v40 = vld [vmem:[%s4700_s30 + $0x80] sm:$0xf]  ;;  %368 = vst [vmem:[%s4705_s4 + $0x18] sm:$0xf] %v367_v38  ;;  %370 = vst [vmem:[%s4705_s4 + $0x1c] sm:$0xf] %v369_v39 }
  0x39   : > { %372 = vst [vmem:[%s4705_s4 + $0x20] sm:$0xf] %v371_v40  ;;  %v373_v41 = vld [vmem:[%s4700_s30 + $0x90] sm:$0xf]  ;;  %v375_v42 = vld [vmem:[%s4700_s30 + $0xa0] sm:$0xf] }
  0x3a   : > { %v377_v43 = vld [vmem:[%s4700_s30 + $0xb0] sm:$0xf]  ;;  %374 = vst [vmem:[%s4705_s4 + $0x24] sm:$0xf] %v373_v41  ;;  %376 = vst [vmem:[%s4705_s4 + $0x28] sm:$0xf] %v375_v42 }
  0x3b   : > { %378 = vst [vmem:[%s4705_s4 + $0x2c] sm:$0xf] %v377_v43  ;;  %v379_v44 = vld [vmem:[%s4700_s30 + $0xc0] sm:$0xf]  ;;  %v381_v45 = vld [vmem:[%s4700_s30 + $0xd0] sm:$0xf] }
  0x3c   : > { %v383_v46 = vld [vmem:[%s4700_s30 + $0xe0] sm:$0xf]  ;;  %380 = vst [vmem:[%s4705_s4 + $0x30] sm:$0xf] %v379_v44  ;;  %382 = vst [vmem:[%s4705_s4 + $0x34] sm:$0xf] %v381_v45 }
  0x3d   : > { %384 = vst [vmem:[%s4705_s4 + $0x38] sm:$0xf] %v383_v46  ;;  %v385_v47 = vld [vmem:[%s4700_s30 + $0xf0] sm:$0xf]  ;;  %v387_v48 = vld [vmem:[%s4700_s30 + $0x100] sm:$0xf] }
  0x3e   : > { %v389_v49 = vld [vmem:[%s4700_s30 + $0x110] sm:$0xf]  ;;  %386 = vst [vmem:[%s4705_s4 + $0x3c] sm:$0xf] %v385_v47  ;;  %388 = vst [vmem:[%s4705_s4 + $0x40] sm:$0xf] %v387_v48 }
  0x3f   : > { %390 = vst [vmem:[%s4705_s4 + $0x44] sm:$0xf] %v389_v49  ;;  %v391_v50 = vld [vmem:[%s4700_s30 + $0x120] sm:$0xf]  ;;  %v393_v51 = vld [vmem:[%s4700_s30 + $0x130] sm:$0xf] }
  0x40   : > { %v395_v52 = vld [vmem:[%s4700_s30 + $0x140] sm:$0xf]  ;;  %392 = vst [vmem:[%s4705_s4 + $0x48] sm:$0xf] %v391_v50  ;;  %394 = vst [vmem:[%s4705_s4 + $0x4c] sm:$0xf] %v393_v51 }
  0x41   : > { %396 = vst [vmem:[%s4705_s4 + $0x50] sm:$0xf] %v395_v52  ;;  %v397_v53 = vld [vmem:[%s4700_s30 + $0x150] sm:$0xf]  ;;  %v399_v54 = vld [vmem:[%s4700_s30 + $0x160] sm:$0xf] }
  0x42   : > { %v401_v55 = vld [vmem:[%s4700_s30 + $0x170] sm:$0xf]  ;;  %398 = vst [vmem:[%s4705_s4 + $0x54] sm:$0xf] %v397_v53  ;;  %400 = vst [vmem:[%s4705_s4 + $0x58] sm:$0xf] %v399_v54 }
  0x43   : > { %402 = vst [vmem:[%s4705_s4 + $0x5c] sm:$0xf] %v401_v55  ;;  %v403_v56 = vld [vmem:[%s4700_s30 + $0x180] sm:$0xf]  ;;  %v405_v57 = vld [vmem:[%s4700_s30 + $0x190] sm:$0xf] }
  0x44   : > { %v407_v58 = vld [vmem:[%s4700_s30 + $0x1a0] sm:$0xf]  ;;  %404 = vst [vmem:[%s4705_s4 + $0x60] sm:$0xf] %v403_v56  ;;  %406 = vst [vmem:[%s4705_s4 + $0x64] sm:$0xf] %v405_v57 }
  0x45   : > { %408 = vst [vmem:[%s4705_s4 + $0x68] sm:$0xf] %v407_v58  ;;  %v409_v59 = vld [vmem:[%s4700_s30 + $0x1b0] sm:$0xf]  ;;  %v411_v60 = vld [vmem:[%s4700_s30 + $0x1c0] sm:$0xf] }
  0x46   : > { %v413_v61 = vld [vmem:[%s4700_s30 + $0x1d0] sm:$0xf]  ;;  %410 = vst [vmem:[%s4705_s4 + $0x6c] sm:$0xf] %v409_v59  ;;  %412 = vst [vmem:[%s4705_s4 + $0x70] sm:$0xf] %v411_v60 }
  0x47   : > { %414 = vst [vmem:[%s4705_s4 + $0x74] sm:$0xf] %v413_v61  ;;  %v415_v62 = vld [vmem:[%s4700_s30 + $0x1e0] sm:$0xf]  ;;  %v417_v63 = vld [vmem:[%s4700_s30 + $0x1f0] sm:$0xf] }
  0x48   : > { %416 = vst [vmem:[%s4705_s4 + $0x78] sm:$0xf] %v415_v62  ;;  %418 = vst [vmem:[%s4705_s4 + $0x7c] sm:$0xf] %v417_v63 }
  0x49 PF: > { %506 = sbr.rel (!%p4599_p5) target bundleno = 100 (0x64), region = 102  ;;  %s508_s5 = sand.u32 (%p4599_p5), 1, %s4510_s13  }
  0x4a   : > { %s3541_s6 = sshll.u32 (%p4599_p5), %s4526_s17, 7  ;;  %s3540_s7 = sshll.u32 (%p4599_p5), %s508_s5, 7 }
  0x4b   : > { %s512_s8 = sadd.s32 (%p4599_p5), %s4522_s16, %s3541_s6  ;;  %s4781_s23 = scalar_lea.vmem (%p4599_p5), [#allocation4], %s3540_s7 }
  0x4c   : > { %s3542_s9 = sshll.u32 (%p4599_p5), %s512_s8, 2 }
  0x4d   : > { %s4776_s21 = scalar_lea.vmem (%p4599_p5), %s6507_s2, %s3542_s9 }
  0x4e   : > { %v531_v0 = vld [vmem:[%s4776_s21] sm:$0xf]  ;;  %v533_v1 = vld [vmem:[%s4776_s21 + $0x10] sm:$0xf] }
  0x4f   : > { %v535_v2 = vld [vmem:[%s4776_s21 + $0x20] sm:$0xf]  ;;  %532 = vst [vmem:[%s4781_s23] sm:$0xf] %v531_v0  ;;  %534 = vst [vmem:[%s4781_s23 + $0x4] sm:$0xf] %v533_v1 }
  0x50   : > { %536 = vst [vmem:[%s4781_s23 + $0x8] sm:$0xf] %v535_v2  ;;  %v537_v3 = vld [vmem:[%s4776_s21 + $0x30] sm:$0xf]  ;;  %v539_v4 = vld [vmem:[%s4776_s21 + $0x40] sm:$0xf] }
  0x51   : > { %v541_v5 = vld [vmem:[%s4776_s21 + $0x50] sm:$0xf]  ;;  %538 = vst [vmem:[%s4781_s23 + $0xc] sm:$0xf] %v537_v3  ;;  %540 = vst [vmem:[%s4781_s23 + $0x10] sm:$0xf] %v539_v4 }
  0x52   : > { %542 = vst [vmem:[%s4781_s23 + $0x14] sm:$0xf] %v541_v5  ;;  %v543_v6 = vld [vmem:[%s4776_s21 + $0x60] sm:$0xf]  ;;  %v545_v7 = vld [vmem:[%s4776_s21 + $0x70] sm:$0xf] }
  0x53   : > { %v547_v8 = vld [vmem:[%s4776_s21 + $0x80] sm:$0xf]  ;;  %544 = vst [vmem:[%s4781_s23 + $0x18] sm:$0xf] %v543_v6  ;;  %546 = vst [vmem:[%s4781_s23 + $0x1c] sm:$0xf] %v545_v7 }
  0x54   : > { %548 = vst [vmem:[%s4781_s23 + $0x20] sm:$0xf] %v547_v8  ;;  %v549_v9 = vld [vmem:[%s4776_s21 + $0x90] sm:$0xf]  ;;  %v551_v10 = vld [vmem:[%s4776_s21 + $0xa0] sm:$0xf] }
  0x55   : > { %v553_v11 = vld [vmem:[%s4776_s21 + $0xb0] sm:$0xf]  ;;  %550 = vst [vmem:[%s4781_s23 + $0x24] sm:$0xf] %v549_v9  ;;  %552 = vst [vmem:[%s4781_s23 + $0x28] sm:$0xf] %v551_v10 }
  0x56   : > { %554 = vst [vmem:[%s4781_s23 + $0x2c] sm:$0xf] %v553_v11  ;;  %v555_v12 = vld [vmem:[%s4776_s21 + $0xc0] sm:$0xf]  ;;  %v557_v13 = vld [vmem:[%s4776_s21 + $0xd0] sm:$0xf] }
  0x57   : > { %v559_v14 = vld [vmem:[%s4776_s21 + $0xe0] sm:$0xf]  ;;  %556 = vst [vmem:[%s4781_s23 + $0x30] sm:$0xf] %v555_v12  ;;  %558 = vst [vmem:[%s4781_s23 + $0x34] sm:$0xf] %v557_v13 }
  0x58   : > { %560 = vst [vmem:[%s4781_s23 + $0x38] sm:$0xf] %v559_v14  ;;  %v561_v15 = vld [vmem:[%s4776_s21 + $0xf0] sm:$0xf]  ;;  %v563_v16 = vld [vmem:[%s4776_s21 + $0x100] sm:$0xf] }
  0x59   : > { %v565_v17 = vld [vmem:[%s4776_s21 + $0x110] sm:$0xf]  ;;  %562 = vst [vmem:[%s4781_s23 + $0x3c] sm:$0xf] %v561_v15  ;;  %564 = vst [vmem:[%s4781_s23 + $0x40] sm:$0xf] %v563_v16 }
  0x5a   : > { %566 = vst [vmem:[%s4781_s23 + $0x44] sm:$0xf] %v565_v17  ;;  %v567_v18 = vld [vmem:[%s4776_s21 + $0x120] sm:$0xf]  ;;  %v569_v19 = vld [vmem:[%s4776_s21 + $0x130] sm:$0xf] }
  0x5b   : > { %v571_v20 = vld [vmem:[%s4776_s21 + $0x140] sm:$0xf]  ;;  %568 = vst [vmem:[%s4781_s23 + $0x48] sm:$0xf] %v567_v18  ;;  %570 = vst [vmem:[%s4781_s23 + $0x4c] sm:$0xf] %v569_v19 }
  0x5c   : > { %572 = vst [vmem:[%s4781_s23 + $0x50] sm:$0xf] %v571_v20  ;;  %v573_v21 = vld [vmem:[%s4776_s21 + $0x150] sm:$0xf]  ;;  %v575_v22 = vld [vmem:[%s4776_s21 + $0x160] sm:$0xf] }
  0x5d   : > { %v577_v23 = vld [vmem:[%s4776_s21 + $0x170] sm:$0xf]  ;;  %574 = vst [vmem:[%s4781_s23 + $0x54] sm:$0xf] %v573_v21  ;;  %576 = vst [vmem:[%s4781_s23 + $0x58] sm:$0xf] %v575_v22 }
  0x5e   : > { %578 = vst [vmem:[%s4781_s23 + $0x5c] sm:$0xf] %v577_v23  ;;  %v579_v24 = vld [vmem:[%s4776_s21 + $0x180] sm:$0xf]  ;;  %v581_v25 = vld [vmem:[%s4776_s21 + $0x190] sm:$0xf] }
  0x5f   : > { %v583_v26 = vld [vmem:[%s4776_s21 + $0x1a0] sm:$0xf]  ;;  %580 = vst [vmem:[%s4781_s23 + $0x60] sm:$0xf] %v579_v24  ;;  %582 = vst [vmem:[%s4781_s23 + $0x64] sm:$0xf] %v581_v25 }
  0x60   : > { %584 = vst [vmem:[%s4781_s23 + $0x68] sm:$0xf] %v583_v26  ;;  %v585_v27 = vld [vmem:[%s4776_s21 + $0x1b0] sm:$0xf]  ;;  %v587_v28 = vld [vmem:[%s4776_s21 + $0x1c0] sm:$0xf] }
  0x61   : > { %v589_v29 = vld [vmem:[%s4776_s21 + $0x1d0] sm:$0xf]  ;;  %586 = vst [vmem:[%s4781_s23 + $0x6c] sm:$0xf] %v585_v27  ;;  %588 = vst [vmem:[%s4781_s23 + $0x70] sm:$0xf] %v587_v28 }
  0x62   : > { %590 = vst [vmem:[%s4781_s23 + $0x74] sm:$0xf] %v589_v29  ;;  %v591_v30 = vld [vmem:[%s4776_s21 + $0x1e0] sm:$0xf]  ;;  %v593_v31 = vld [vmem:[%s4776_s21 + $0x1f0] sm:$0xf] }
  0x63   : > { %592 = vst [vmem:[%s4781_s23 + $0x78] sm:$0xf] %v591_v30  ;;  %594 = vst [vmem:[%s4781_s23 + $0x7c] sm:$0xf] %v593_v31 }
  0x64 PF: > { %p3543_p9 = scmp.ge.s32.totalorder %s4530_s18, 1  ;;  %p681_p10 = scmp.lt.s32.totalorder %s4530_s18, 9 }
  0x66   : > { %p682_p11 = pnand %p3543_p9, %p681_p10 }
  0x68   : > { %685 = sbr.rel (%p682_p11) target bundleno = 1561 (0x619), region = 143 }
  0x6d   : > { %s688_s22 = sand.u32 1, %s4506_s12   ;;  %vm989_vm0 = vcmask 523264   ;;  %s4532_s29 = smov 64  }
  0x6e   : > { %s4849_s25 = sshll.u32 %s688_s22, 7  ;;  %s3547_s4 = sshll.u32 %s688_s22, 8 }
  0x6f   : > { %s4852_s26 = scalar_lea.vmem [#allocation3], %s4849_s25  ;;  %s4866_s27 = scalar_lea.vmem [#allocation2], %s4849_s25 }
  0x70   : > { %v4042_v32 = vld [vmem:[%s4852_s26 + $0x78] sm:$0xff]   ;;  %v4044_v34 = vld [vmem:[%s4852_s26 + $0x70] sm:$0xff]   ;;  %v4046_v38 = vld [vmem:[%s4852_s26 + $0x68] sm:$0xff]   ;;  %s5032_s30 = scalar_lea.vmem [#allocation4], %s4849_s25  ;;  %s6294_s5 = scalar_lea.vmem [#allocation5], %s3547_s4 }
  0x71   : > { %v4043_v33 = vld [vmem:[%s4852_s26 + $0x38] sm:$0xff]   ;;  %3969 = vmatprep.subr.msk.bf16.mxu0 %vm989_vm0, %v4042_v32  ;;  %v4045_v36 = vld [vmem:[%s4852_s26 + $0x30] sm:$0xff]   ;;  %v4047_v39 = vld [vmem:[%s4852_s26 + $0x28] sm:$0xff]   ;;  %2078 = vrot.lane.b32.xlu1 %v4042_v32, %s4532_s29  ;;  %s3629_s12 = sshll.u32 (%p4605_p6), %s4518_s15, 7 }
  0x72   : > { %v1060_v35 = vsel %vm989_vm0, %v4043_v33, 0  ;;  %v1057_v37 = vsel %vm989_vm0, %v4045_v36, 0  ;;  %v4869_v40 = vld [vmem:[%s4866_s27] sm:$0xff]   ;;  %v1054_v41 = vsel %vm989_vm0, %v4047_v39, 0  ;;  %v4050_v45 = vld [vmem:[%s4852_s26 + $0x58] sm:$0xff]   ;;  %v4886_v48 = vld [vmem:[%s4852_s26 + $0x50] sm:$0xff]   ;;  %2062 = vrot.lane.b32.xlu0 %v4043_v33, %s4532_s29  ;;  %s3258_s24 = sadd.s32 (%p4605_p6), %s4514_s14, %s3629_s12 }
  0x73   : > { %3634 = vmatpush3.bf16.xpose.msra.mxu0 %v1060_v35  ;;  %v4048_v42 = vld [vmem:[%s4852_s26 + $0x60] sm:$0xff]   ;;  %3649 = vmatprep.mubr.msk.bf16.mxu0 %vm989_vm0, %v4869_v40  ;;  %v4051_v46 = vld [vmem:[%s4852_s26 + $0x18] sm:$0xff]   ;;  %v4891_v49 = vld [vmem:[%s4852_s26 + $0x10] sm:$0xff]   ;;  %s3630_s6 = sshll.u32 (%p4605_p6), %s3258_s24, 3 }
  0x74   : > { %3970 = vmatprep.subr.msk.bf16.mxu0 %vm989_vm0, %v4044_v34  ;;  %v4877_v43 = vld [vmem:[%s4852_s26 + $0x20] sm:$0xff]   ;;  %v1048_v47 = vsel %vm989_vm0, %v4051_v46, 0  ;;  %v1045_v50 = vsel %vm989_vm0, %v4891_v49, 0  ;;  %v4896_v51 = vld [vmem:[%s4852_s26 + $0x48] sm:$0xff]   ;;  %v4931_v58 = vld [vmem:[%s4866_s27 + $0x10] sm:$0xff]   ;;  %s6427_s9 = scalar_lea.vmem (%p4605_p6), %s6508_s3, %s3630_s6 }
  0x75   : > { %v1051_v44 = vsel %vm989_vm0, %v4877_v43, 0  ;;  %v4901_v52 = vld [vmem:[%s4852_s26 + $0x8] sm:$0xff]   ;;  %v4906_v54 = vld [vmem:[%s4852_s26 + $0x40] sm:$0xff]   ;;  %2076 = vrot.lane.b32.xlu1 %v4044_v34, %s4532_s29  ;;  %v4939_v59 = vld [vmem:[%s4866_s27 + $0x18] sm:$0xff]  }
  0x76   : > { %v1042_v53 = vsel %vm989_vm0, %v4901_v52, 0  ;;  %v4912_v55 = vld [vmem:[%s4852_s26] sm:$0xff]   ;;  %2060 = vrot.lane.b32.xlu0 %v4045_v36, %s4532_s29  ;;  %v4922_v57 = vld [vmem:[%s4866_s27 + $0x8] sm:$0xff]   ;;  %v4960_v62 = vld [vmem:[%s4866_s27 + $0x30] sm:$0xff]  }
  0x77   : > { %v1039_v56 = vsel %vm989_vm0, %v4912_v55, 0  ;;  %v4946_v60 = vld [vmem:[%s4866_s27 + $0x20] sm:$0xff]   ;;  %v4953_v61 = vld [vmem:[%s4866_s27 + $0x28] sm:$0xff]   ;;  %6585 = vst [vmem:[#allocation6_spill] sm:$0xff] %v4960_v62  ;;  %v4967_v63 = vld [vmem:[%s4866_s27 + $0x38] sm:$0xff]  }
  0x78   : > { %v4974_v0 = vld [vmem:[%s4866_s27 + $0x40] sm:$0xff]   ;;  %v4981_v1 = vld [vmem:[%s4866_s27 + $0x48] sm:$0xff]   ;;  %v4988_v2 = vld [vmem:[%s4866_s27 + $0x50] sm:$0xff]  }
  0x79   : > { %2074 = vrot.lane.b32.xlu1 %v4046_v38, %s4532_s29  ;;  %6586 = vst [vmem:[#allocation7_spill] sm:$0xff] %v4974_v0  ;;  %6587 = vst [vmem:[#allocation8_spill] sm:$0xff] %v4988_v2  ;;  %v4995_v3 = vld [vmem:[%s4866_s27 + $0x58] sm:$0xff]   ;;  %v5002_v4 = vld [vmem:[%s4866_s27 + $0x60] sm:$0xff]  }
  0x7a   : > { %2058 = vrot.lane.b32.xlu0 %v4047_v39, %s4532_s29  ;;  %6588 = vst [vmem:[#allocation9_spill] sm:$0xff] %v5002_v4  ;;  %v5009_v5 = vld [vmem:[%s4866_s27 + $0x68] sm:$0xff]   ;;  %v5016_v6 = vld [vmem:[%s4866_s27 + $0x70] sm:$0xff]   ;;  %v5023_v7 = vld [vmem:[%s4866_s27 + $0x78] sm:$0xff]  }
  0x7b   : > { %3636 = vmatpush3.bf16.xpose.msra.mxu0 %v1057_v37  ;;  %6589 = vst [vmem:[#allocation10_spill] sm:$0xff] %v5009_v5  ;;  %6590 = vst [vmem:[#allocation11_spill] sm:$0xff] %v5016_v6  ;;  %v5035_v8 = vld [vmem:[%s5032_s30 + $0x78] sm:$0xff]   ;;  %v5043_v10 = vld [vmem:[%s5032_s30 + $0x70] sm:$0xff]  }
  0x7c   : > { %3971 = vmatprep.subr.msk.bf16.mxu0 %vm989_vm0, %v4046_v38  ;;  %6591 = vst [vmem:[#allocation12_spill] sm:$0xff] %v5023_v7  ;;  %6592 = vst [vmem:[#allocation13_spill] sm:$0xff] %v5035_v8  ;;  %v5038_v9 = vld [vmem:[%s5032_s30 + $0x38] sm:$0xff]   ;;  %3681 = vmatprep.subr.bf16.mxu1 %v5035_v8  ;;  %v5046_v11 = vld [vmem:[%s5032_s30 + $0x30] sm:$0xff]  }
  0x7d   : > { %2072 = vrot.lane.b32.xlu1 %v4048_v42, %s4532_s29  ;;  %6593 = vst [vmem:[#allocation14_spill] sm:$0xff] %v5038_v9  ;;  %3682 = vmatpush3.bf16.msra.mxu1 %v5038_v9  ;;  %6594 = vst [vmem:[#allocation15_spill] sm:$0xff] %v5043_v10  ;;  %v5051_v12 = vld [vmem:[%s5032_s30 + $0x68] sm:$0xff]   ;;  %v5059_v14 = vld [vmem:[%s5032_s30 + $0x60] sm:$0xff]  }
  0x7e   : > { %6595 = vst [vmem:[#allocation16_spill] sm:$0xff] %v5046_v11  ;;  %3683 = vmatprep.subr.bf16.mxu1 %v5043_v10  ;;  %6596 = vst [vmem:[#allocation17_spill] sm:$0xff] %v5051_v12  ;;  %v5054_v13 = vld [vmem:[%s5032_s30 + $0x28] sm:$0xff]   ;;  %v5062_v15 = vld [vmem:[%s5032_s30 + $0x20] sm:$0xff]  }
  0x7f   : > { %6597 = vst [vmem:[#allocation18_spill] sm:$0xff] %v5054_v13  ;;  %6598 = vst [vmem:[#allocation19_spill] sm:$0xff] %v5059_v14  ;;  %v5067_v16 = vld [vmem:[%s5032_s30 + $0x58] sm:$0xff]   ;;  %v5075_v18 = vld [vmem:[%s5032_s30 + $0x50] sm:$0xff]  }
  0x80   : > { %6599 = vst [vmem:[#allocation20_spill] sm:$0xff] %v5062_v15  ;;  %6600 = vst [vmem:[#allocation21_spill] sm:$0xff] %v5067_v16  ;;  %v5070_v17 = vld [vmem:[%s5032_s30 + $0x18] sm:$0xff]   ;;  %v5078_v19 = vld [vmem:[%s5032_s30 + $0x10] sm:$0xff]  }
  0x81   : > { %2054 = vrot.lane.b32.xlu1 %v4051_v46, %s4532_s29  ;;  %3684 = vmatpush3.bf16.msra.mxu1 %v5046_v11  ;;  %6601 = vst [vmem:[#allocation22_spill] sm:$0xff] %v5070_v17  ;;  %6602 = vst [vmem:[#allocation23_spill] sm:$0xff] %v5075_v18  ;;  %v5083_v20 = vld [vmem:[%s5032_s30 + $0x48] sm:$0xff]   ;;  %v4088_v22 = vld [vmem:[%s5032_s30 + $0x40] sm:$0xff]  }
  0x82   : > { %3685 = vmatprep.subr.bf16.mxu1 %v5051_v12  ;;  %6603 = vst [vmem:[#allocation24_spill] sm:$0xff] %v5078_v19  ;;  %6604 = vst [vmem:[#allocation25_spill] sm:$0xff] %v5083_v20  ;;  %v5086_v21 = vld [vmem:[%s5032_s30 + $0x8] sm:$0xff]   ;;  %v4089_v23 = vld [vmem:[%s5032_s30] sm:$0xff]  }
  0x83   : > { %3638 = vmatpush3.bf16.xpose.msra.mxu0 %v1054_v41  ;;  %6605 = vst [vmem:[#allocation26_spill] sm:$0xff] %v5086_v21 }
  0x84   : > { %3972 = vmatprep.subr.msk.bf16.mxu0 %vm989_vm0, %v4048_v42 }
  0x85   : > { %2070 = vrot.lane.b32.xlu1 %v4050_v45, %s4532_s29  ;;  %3686 = vmatpush3.bf16.msra.mxu1 %v5054_v13 }
  0x86   : > { %3687 = vmatprep.subr.bf16.mxu1 %v5059_v14 }
  0x89   : > { %3688 = vmatpush3.bf16.msra.mxu1 %v5062_v15 }
  0x8a   : > { %3689 = vmatprep.subr.bf16.mxu1 %v5067_v16 }
  0x8b   : > { %3640 = vmatpush3.bf16.xpose.msra.mxu0 %v1051_v44 }
  0x8c   : > { %3973 = vmatprep.subr.msk.bf16.mxu0 %vm989_vm0, %v4050_v45 }
  0x8d   : > { %3690 = vmatpush3.bf16.msra.mxu1 %v5070_v17 }
  0x8e   : > { %3691 = vmatprep.subr.bf16.mxu1 %v5075_v18 }
  0x91   : > { %3692 = vmatpush3.bf16.msra.mxu1 %v5078_v19 }
  0x92   : > { %3693 = vmatprep.subr.bf16.mxu1 %v5083_v20 }
  0x93   : > { %3642 = vmatpush3.bf16.xpose.msra.mxu0 %v1048_v47 }
  0x94   : > { %3974 = vmatprep.subr.msk.bf16.mxu0 %vm989_vm0, %v4886_v48 }
  0x95   : > { %3694 = vmatpush3.bf16.msra.mxu1 %v5086_v21 }
  0x96   : > { %3695 = vmatprep.subr.bf16.mxu1 %v4088_v22 }
  0x99   : > { %3696 = vmatpush3.bf16.msra.mxu1 %v4089_v23 }
  0x9b   : > { %3644 = vmatpush3.bf16.xpose.msra.mxu0 %v1045_v50 }
  0x9c   : > { %3975 = vmatprep.subr.msk.bf16.mxu0 %vm989_vm0, %v4896_v51 }
  0xa3   : > { %3646 = vmatpush3.bf16.xpose.msra.mxu0 %v1042_v53 }
  0xa4   : > { %3976 = vmatprep.subr.msk.bf16.mxu0 %vm989_vm0, %v4906_v54 }
  0xab   : > { %3648 = vmatpush3.bf16.xpose.msra.mxu0 %v1039_v56 }
  0xb2   : > { %3650 = vmatmul.mubr.msk.bf16.vlgmr.msra.gmra.mxu0 %vm989_vm0, %v4869_v40 }
  0xb3   : > { %3651 = vmatprep.mubr.msk.bf16.mxu0 %vm989_vm0, %v4922_v57 }
  0xba   : > { %3652 = vmatmul.mubr.msk.bf16.gmra.mxu0 %vm989_vm0, %v4922_v57 }
  0xbb   : > { %3653 = vmatprep.mubr.msk.bf16.mxu0 %vm989_vm0, %v4931_v58 }
  0xc2   : > { %3654 = vmatmul.mubr.msk.bf16.gmra.mxu0 %vm989_vm0, %v4931_v58 }
  0xc3   : > { %3655 = vmatprep.mubr.msk.bf16.mxu0 %vm989_vm0, %v4939_v59 }
  0xca   : > { %3656 = vmatmul.mubr.msk.bf16.gmra.mxu0 %vm989_vm0, %v4939_v59 }
  0xcb   : > { %3657 = vmatprep.mubr.msk.bf16.mxu0 %vm989_vm0, %v4946_v60 }
  0xd2   : > { %3658 = vmatmul.mubr.msk.bf16.gmra.mxu0 %vm989_vm0, %v4946_v60 }
  0xd3   : > { %3659 = vmatprep.mubr.msk.bf16.mxu0 %vm989_vm0, %v4953_v61 }
  0xda   : > { %3660 = vmatmul.mubr.msk.bf16.gmra.mxu0 %vm989_vm0, %v4953_v61 }
  0xdb   : > { %3661 = vmatprep.mubr.msk.bf16.mxu0 %vm989_vm0, %v4960_v62 }
  0xe2   : > { %3662 = vmatmul.mubr.msk.bf16.gmra.mxu0 %vm989_vm0, %v4960_v62 }
  0xe3   : > { %3663 = vmatprep.mubr.msk.bf16.mxu0 %vm989_vm0, %v4967_v63  ;;  %v2079_v24 = vpop.permute.xlu1 %2078 }
  0xe4   : > { %3977 = vmatprep.subr.msk.bf16.mxu1 %vm989_vm0, %v2079_v24 }
  0xea   : > { %3664 = vmatmul.mubr.msk.bf16.gmra.mxu0 %vm989_vm0, %v4967_v63 }
  0xeb   : > { %3665 = vmatprep.mubr.msk.bf16.mxu0 %vm989_vm0, %v4974_v0 }
  0xf2   : > { %3666 = vmatmul.mubr.msk.bf16.gmra.mxu0 %vm989_vm0, %v4974_v0 }
  0xf3   : > { %3667 = vmatprep.mubr.msk.bf16.mxu0 %vm989_vm0, %v4981_v1 }
  0xfa   : > { %3668 = vmatmul.mubr.msk.bf16.gmra.mxu0 %vm989_vm0, %v4981_v1 }
  0xfb   : > { %3669 = vmatprep.mubr.msk.bf16.mxu0 %vm989_vm0, %v4988_v2 }
 0x102   : > { %3670 = vmatmul.mubr.msk.bf16.gmra.mxu0 %vm989_vm0, %v4988_v2 }
 0x103   : > { %3671 = vmatprep.mubr.msk.bf16.mxu0 %vm989_vm0, %v4995_v3 }
 0x10a   : > { %3672 = vmatmul.mubr.msk.bf16.gmra.mxu0 %vm989_vm0, %v4995_v3 }
 0x10b   : > { %3673 = vmatprep.mubr.msk.bf16.mxu0 %vm989_vm0, %v5002_v4 }
 0x112   : > { %3674 = vmatmul.mubr.msk.bf16.gmra.mxu0 %vm989_vm0, %v5002_v4 }
 0x113   : > { %3675 = vmatprep.mubr.msk.bf16.mxu0 %vm989_vm0, %v5009_v5 }
 0x11a   : > { %3676 = vmatmul.mubr.msk.bf16.gmra.mxu0 %vm989_vm0, %v5009_v5 }
 0x11b   : > { %3677 = vmatprep.mubr.msk.bf16.mxu0 %vm989_vm0, %v5016_v6 }
 0x122   : > { %3678 = vmatmul.mubr.msk.bf16.gmra.mxu0 %vm989_vm0, %v5016_v6 }
 0x123   : > { %3679 = vmatprep.mubr.msk.bf16.mxu0 %vm989_vm0, %v5023_v7 }
 0x12a   : > { %3680 = vmatmul.mubr.msk.bf16.gmra.mxu0 %vm989_vm0, %v5023_v7 }
 0x172   : > { %v5093_v25 = vpop.f32.mrf.mxu0 }
 0x174   : > { %v5095_v26 = vpop.f32.mrf.mxu0 }
 0x175   : > { %v1279_v27 = vmax.f32 %v5093_v25, %v5095_v26 }
 0x176   : > { %v5099_v28 = vpop.f32.mrf.mxu0 }
 0x177   : > { %1280 = vmax.xlane.f32.xlu0 %v1279_v27 }
 0x178   : > { %v5101_v29 = vpop.f32.mrf.mxu0 }
 0x179   : > { %v1282_v30 = vmax.f32 %v5099_v28, %v5101_v29 }
 0x17a   : > { %v5105_v31 = vpop.f32.mrf.mxu0 }
 0x17b   : > { %1283 = vmax.xlane.f32.xlu0 %v1282_v30 }
 0x17c   : > { %v5107_v32 = vpop.f32.mrf.mxu0 }
 0x17d   : > { %v1285_v33 = vmax.f32 %v5105_v31, %v5107_v32 }
 0x17e   : > { %v5111_v34 = vpop.f32.mrf.mxu0 }
 0x17f   : > { %1286 = vmax.xlane.f32.xlu1 %v1285_v33 }
 0x180   : > { %v5113_v35 = vpop.f32.mrf.mxu0 }
 0x181   : > { %v1288_v36 = vmax.f32 %v5111_v34, %v5113_v35 }
 0x182   : > { %v5117_v37 = vpop.f32.mrf.mxu0 }
 0x183   : > { %1289 = vmax.xlane.f32.xlu1 %v1288_v36 }
 0x184   : > { %v5119_v38 = vpop.f32.mrf.mxu0 }
 0x185   : > { %v1291_v19 = vmax.f32 %v5117_v37, %v5119_v38 }
 0x186   : > { %v5121_v39 = vpop.f32.mrf.mxu0 }
 0x188   : > { %v5123_v41 = vpop.f32.mrf.mxu0 }
 0x189   : > { %v1294_v42 = vmax.f32 %v5121_v39, %v5123_v41 }
 0x18a   : > { %v5127_v44 = vpop.f32.mrf.mxu0 }
 0x18b   : > { %1295 = vmax.xlane.f32.xlu1 %v1294_v42 }
 0x18c   : > { %v5129_v45 = vpop.f32.mrf.mxu0 }
 0x18d   : > { %v1297_v10 = vmax.f32 %v5127_v44, %v5129_v45 }
 0x18e   : > { %v5131_v46 = vpop.f32.mrf.mxu0 }
 0x190   : > { %v5133_v47 = vpop.f32.mrf.mxu0 }
 0x191   : > { %2056 = vrot.lane.b32.xlu0 %v4877_v43, %s4532_s29  ;;  %v1300_v50 = vmax.f32 %v5131_v46, %v5133_v47 }
 0x192   : > { %v5139_v53 = vpop.f32.mrf.mxu0 }
 0x193   : > { %1301 = vmax.xlane.f32.xlu1 %v1300_v50 }
 0x194   : > { %v5141_v56 = vpop.f32.mrf.mxu0 }
 0x195   : > { %v1303_v8 = vmax.f32 %v5139_v53, %v5141_v56 }
 0x196   : > { %v5143_v22 = vpop.f32.mrf.mxu0 }
 0x198   : > { %v5145_v23 = vpop.f32.mrf.mxu0 }
 0x199   : > { %v1306_v24 = vmax.f32 %v5143_v22, %v5145_v23 }
 0x19a   : > { %v5149_v27 = vpop.f32.mrf.mxu0 }
 0x19b   : > { %6606 = vst [vmem:[#allocation27_spill] sm:$0xff] %v5149_v27  ;;  %1307 = vmax.xlane.f32.xlu1 %v1306_v24 }
 0x19c   : > { %v5151_v30 = vpop.f32.mrf.mxu0 }
 0x19d   : > { %6607 = vst [vmem:[#allocation28_spill] sm:$0xff] %v5151_v30  ;;  %v1309_v11 = vmax.f32 %v5149_v27, %v5151_v30 }
 0x19e   : > { %v5153_v43 = vpop.f32.mrf.mxu0 }
 0x1a0   : > { %v5155_v33 = vpop.f32.mrf.mxu0 }
 0x1a1   : > { %v1312_v36 = vmax.f32 %v5153_v43, %v5155_v33 }
 0x1a2   : > { %v5159_v42 = vpop.f32.mrf.mxu0 }
 0x1a3   : > { %6608 = vst [vmem:[#allocation29_spill] sm:$0xff] %v5159_v42  ;;  %1313 = vmax.xlane.f32.xlu1 %v1312_v36 }
 0x1a4   : > { %v5161_v50 = vpop.f32.mrf.mxu0 }
 0x1a5   : > { %6609 = vst [vmem:[#allocation30_spill] sm:$0xff] %v5161_v50  ;;  %v1315_v4 = vmax.f32 %v5159_v42, %v5161_v50 }
 0x1a6   : > { %v5163_v20 = vpop.f32.mrf.mxu0 }
 0x1a8   : > { %v5165_v18 = vpop.f32.mrf.mxu0 }
 0x1a9   : > { %v1318_v24 = vmax.f32 %v5163_v20, %v5165_v18 }
 0x1aa   : > { %v5169_v16 = vpop.f32.mrf.mxu0 }
 0x1ab   : > { %6610 = vst [vmem:[#allocation31_spill] sm:$0xff] %v5169_v16  ;;  %1319 = vmax.xlane.f32.xlu1 %v1318_v24 }
 0x1ac   : > { %v5171_v21 = vpop.f32.mrf.mxu0 }
 0x1ad   : > { %6611 = vst [vmem:[#allocation32_spill] sm:$0xff] %v5171_v21  ;;  %v1321_v7 = vmax.f32 %v5169_v16, %v5171_v21 }
 0x1ae   : > { %v5173_v14 = vpop.f32.mrf.mxu0 }
 0x1b0   : > { %1292 = vmax.xlane.f32.xlu0 %v1291_v19  ;;  %v5177_v36 = vpop.f32.mrf.mxu0 }
 0x1b1   : > { %v1324_v12 = vmax.f32 %v5173_v14, %v5177_v36 }
 0x1b2   : > { %v5181_v17 = vpop.f32.mrf.mxu0 }
 0x1b3   : > { %6612 = vst [vmem:[#allocation33_spill] sm:$0xff] %v5181_v17  ;;  %1325 = vmax.xlane.f32.xlu1 %v1324_v12 }
 0x1b4   : > { %1298 = vmax.xlane.f32.xlu0 %v1297_v10  ;;  %v5185_v24 = vpop.f32.mrf.mxu0 }
 0x1b5   : > { %6613 = vst [vmem:[#allocation34_spill] sm:$0xff] %v5185_v24  ;;  %v1327_v0 = vmax.f32 %v5181_v17, %v5185_v24 }
 0x1b6   : > { %v5187_v15 = vpop.f32.mrf.mxu0 }
 0x1b8   : > { %1304 = vmax.xlane.f32.xlu0 %v1303_v8  ;;  %v5191_v19 = vpop.f32.mrf.mxu0 }
 0x1b9   : > { %v1330_v13 = vmax.f32 %v5187_v15, %v5191_v19 }
 0x1ba   : > { %v5195_v6 = vpop.f32.mrf.mxu0 }
 0x1bb   : > { %6614 = vst [vmem:[#allocation35_spill] sm:$0xff] %v5195_v6  ;;  %1331 = vmax.xlane.f32.xlu1 %v1330_v13 }
 0x1bc   : > { %1310 = vmax.xlane.f32.xlu0 %v1309_v11  ;;  %v5199_v10 = vpop.f32.mrf.mxu0 }
 0x1bd   : > { %6615 = vst [vmem:[#allocation36_spill] sm:$0xff] %v5199_v10  ;;  %v1333_v21 = vmax.f32 %v5195_v6, %v5199_v10 }
 0x1be   : > { %v5201_v12 = vpop.f32.mrf.mxu0 }
 0x1bf   : > { %6616 = vst [vmem:[#allocation37_spill] sm:$0xff] %v5201_v12 }
 0x1c0   : > { %1316 = vmax.xlane.f32.xlu0 %v1315_v4  ;;  %v5205_v8 = vpop.f32.mrf.mxu0 }
 0x1c1   : > { %6617 = vst [vmem:[#allocation38_spill] sm:$0xff] %v5205_v8  ;;  %v1336_v9 = vmax.f32 %v5201_v12, %v5205_v8 }
 0x1c2   : > { %v5209_v2 = vpop.f32.mrf.mxu0 }
 0x1c3   : > { %6618 = vst [vmem:[#allocation39_spill] sm:$0xff] %v5209_v2  ;;  %1337 = vmax.xlane.f32.xlu1 %v1336_v9 }
 0x1c4   : > { %1322 = vmax.xlane.f32.xlu0 %v1321_v7  ;;  %v5213_v11 = vpop.f32.mrf.mxu0 }
 0x1c5   : > { %6619 = vst [vmem:[#allocation40_spill] sm:$0xff] %v5213_v11  ;;  %v1339_v24 = vmax.f32 %v5209_v2, %v5213_v11 }
 0x1c6   : > { %v5215_v13 = vpop.f32.mrf.mxu0 }
 0x1c7   : > { %6620 = vst [vmem:[#allocation41_spill] sm:$0xff] %v5215_v13 }
 0x1c8   : > { %1328 = vmax.xlane.f32.xlu0 %v1327_v0  ;;  %v5219_v4 = vpop.f32.mrf.mxu0 }
 0x1c9   : > { %6621 = vst [vmem:[#allocation42_spill] sm:$0xff] %v5219_v4  ;;  %v1342_v8 = vmax.f32 %v5215_v13, %v5219_v4 }
 0x1ca   : > { %v5223_v12 = vpop.f32.mrf.mxu0 }
 0x1cb   : > { %6622 = vst [vmem:[#allocation43_spill] sm:$0xff] %v5223_v12  ;;  %1343 = vmax.xlane.f32.xlu1 %v1342_v8 }
 0x1cc   : > { %1334 = vmax.xlane.f32.xlu0 %v1333_v21  ;;  %v5227_v7 = vpop.f32.mrf.mxu0 }
 0x1cd   : > { %6623 = vst [vmem:[#allocation44_spill] sm:$0xff] %v5227_v7  ;;  %v1345_v10 = vmax.f32 %v5223_v12, %v5227_v7 }
 0x1ce   : > { %v5229_v9 = vpop.f32.mrf.mxu0 }
 0x1cf   : > { %6624 = vst [vmem:[#allocation45_spill] sm:$0xff] %v5229_v9 }
 0x1d0   : > { %1340 = vmax.xlane.f32.xlu0 %v1339_v24  ;;  %v5233_v0 = vpop.f32.mrf.mxu0 }
 0x1d1   : > { %6625 = vst [vmem:[#allocation46_spill] sm:$0xff] %v5233_v0  ;;  %v1348_v4 = vmax.f32 %v5229_v9, %v5233_v0 }
 0x1d2   : > { %v5237_v13 = vpop.f32.mrf.mxu0 }
 0x1d3   : > { %6626 = vst [vmem:[#allocation47_spill] sm:$0xff] %v5237_v13  ;;  %1349 = vmax.xlane.f32.xlu1 %v1348_v4 }
 0x1d4   : > { %1346 = vmax.xlane.f32.xlu0 %v1345_v10  ;;  %v5241_v21 = vpop.f32.mrf.mxu0 }
 0x1d5   : > { %6627 = vst [vmem:[#allocation48_spill] sm:$0xff] %v5241_v21  ;;  %v1351_v8 = vmax.f32 %v5237_v13, %v5241_v21  ;;  %v5263_v13 = vpop.permute.xlu1 %2076 }
 0x1d6   : > { %v5245_v6 = vpop.f32.mrf.mxu0 }
 0x1d7   : > { %6628 = vst [vmem:[#allocation49_spill] sm:$0xff] %v5245_v6 }
 0x1d8   : > { %1352 = vmax.xlane.f32.xlu0 %v1351_v8  ;;  %v5247_v24 = vpop.f32.mrf.mxu0 }
 0x1d9   : > { %6629 = vst [vmem:[#allocation50_spill] sm:$0xff] %v5247_v24  ;;  %v1354_v0 = vmax.f32 %v5245_v6, %v5247_v24  ;;  %v5265_v24 = vpop.permute.xlu0 %2062 }
 0x1da   : > { %v5251_v9 = vpop.f32.mrf.mxu0 }
 0x1db   : > { %6630 = vst [vmem:[#allocation51_spill] sm:$0xff] %v5251_v9  ;;  %1355 = vmax.xlane.f32.xlu1 %v1354_v0  ;;  %v5269_v0 = vpop.permute.xlu1 %2074 }
 0x1dc   : > { %v5253_v11 = vpop.f32.mrf.mxu0 }
 0x1dd   : > { %6631 = vst [vmem:[#allocation52_spill] sm:$0xff] %v5253_v11  ;;  %v1357_v10 = vmax.f32 %v5251_v9, %v5253_v11  ;;  %v5271_v6 = vpop.permute.xlu0 %2060 }
 0x1de   : > { %v5257_v4 = vpop.f32.mrf.mxu0 }
 0x1df   : > { %6632 = vst [vmem:[#allocation53_spill] sm:$0xff] %v5257_v4  ;;  %1358 = vmax.xlane.f32.xlu1 %v1357_v10  ;;  %v5273_v11 = vpop.permute.xlu1 %2072 }
 0x1e0   : > { %v5259_v21 = vpop.f32.mrf.mxu0 }
 0x1e1   : > { %6633 = vst [vmem:[#allocation54_spill] sm:$0xff] %v5259_v21  ;;  %v1360_v8 = vmax.f32 %v5257_v4, %v5259_v21  ;;  %v5279_v21 = vpop.permute.xlu0 %2058 }
 0x1e2   : > { %v5277_v10 = vpop.f32.mrf.mxu0 }
 0x1e3   : > { %1361 = vmax.xlane.f32.xlu0 %v1360_v8  ;;  %v5281_v8 = vpop.permute.xlu1 %2054 }
 0x1e4   : > { %v5283_v4 = vpop.f32.mrf.mxu0 }
 0x1e6   : > { %v5287_v17 = vpop.f32.mrf.mxu0 }
 0x1e7   : > { %v5289_v16 = vpop.permute.xlu1 %2070 }
 0x1e8   : > { %v5293_v30 = vpop.f32.mrf.mxu0 }
 0x1ea   : > { %v5297_v27 = vpop.f32.mrf.mxu0 }
 0x1f0   : > { %2068 = vrot.lane.b32.xlu1 %v4886_v48, %s4532_s29 }
 0x1f9   : > { %2052 = vrot.lane.b32.xlu0 %v4891_v49, %s4532_s29 }
 0x200   : > { %v1281_v9 = vpop.xlane.xlu0 %1280 }
 0x201   : > { %v1375_v48 = vsub.f32 %v5093_v25, %v1281_v9  ;;  %v1376_v7 = vsub.f32 %v5095_v26, %v1281_v9 }
 0x203   : > { %v1439_v12 = vmul.f32 1.442695, %v1375_v48  ;;  %v1441_v2 = vmul.f32 1.442695, %v1376_v7 }
 0x204   : > { %v1284_v49 = vpop.xlane.xlu0 %1283 }
 0x205   : > { %4090 = vpow2.f32 %v1439_v12  ;;  %v1377_v50 = vsub.f32 %v5099_v28, %v1284_v49  ;;  %v1378_v42 = vsub.f32 %v5101_v29, %v1284_v49 }
 0x206   : > { %4092 = vpow2.f32 %v1441_v2 }
 0x207   : > { %v1443_v5 = vmul.f32 1.442695, %v1377_v50  ;;  %v1445_v62 = vmul.f32 1.442695, %v1378_v42  ;;  %v5301_v50 = vpop.f32.mrf.mxu0 }
 0x208   : > { %v1287_v25 = vpop.xlane.xlu1 %1286 }
 0x209   : > { %4094 = vpow2.f32 %v1443_v5  ;;  %v1379_v26 = vsub.f32 %v5105_v31, %v1287_v25  ;;  %v1380_v7 = vsub.f32 %v5107_v32, %v1287_v25  ;;  %v5305_v32 = vpop.f32.mrf.mxu0 }
 0x20a   : > { %4096 = vpow2.f32 %v1445_v62  ;;  %v1363_v62 = vmax.f32 %v5277_v10, %v5283_v4 }
 0x20b   : > { %v1447_v9 = vmul.f32 1.442695, %v1379_v26  ;;  %v1449_v48 = vmul.f32 1.442695, %v1380_v7 }
 0x20c   : > { %v1290_v12 = vpop.xlane.xlu1 %1289 }
 0x20d   : > { %4098 = vpow2.f32 %v1447_v9  ;;  %v1381_v28 = vsub.f32 %v5111_v34, %v1290_v12  ;;  %v1382_v2 = vsub.f32 %v5113_v35, %v1290_v12  ;;  %v1369_v34 = vmax.f32 %v5297_v27, %v5301_v50  ;;  %v5315_v12 = vpop.f32.mrf.mxu0 }
 0x20e   : > { %4100 = vpow2.f32 %v1449_v48  ;;  %v1366_v9 = vmax.f32 %v5287_v17, %v5293_v30 }
 0x20f   : > { %v1451_v29 = vmul.f32 1.442695, %v1381_v28  ;;  %v1453_v42 = vmul.f32 1.442695, %v1382_v2 }
 0x211   : > { %4102 = vpow2.f32 %v1451_v29 }
 0x212   : > { %v4091_v5 = vpop.eup %4090  ;;  %4104 = vpow2.f32 %v1453_v42 }
 0x213   : > { %v4093_v31 = vpop.eup %4092 }
 0x214   : > { %v1296_v49 = vpop.xlane.xlu1 %1295  ;;  %1364 = vmax.xlane.f32.xlu1 %v1363_v62  ;;  %v5309_v35 = vadd.f32 %v4093_v31, %v4091_v5 }
 0x215   : > { %v1385_v25 = vsub.f32 %v5121_v39, %v1296_v49  ;;  %v1386_v26 = vsub.f32 %v5123_v41, %v1296_v49  ;;  %v1372_v39 = vmax.f32 %v5305_v32, %v5315_v12  ;;  %v2150_v49 = vsel %vm989_vm0, %v5265_v24, 0 }
 0x216   : > { %6634 = vst [vmem:[#allocation55_spill] sm:$0xff] %v5309_v35  ;;  %v4095_v7 = vpop.eup %4094 }
 0x217   : > { %v4097_v48 = vpop.eup %4096  ;;  %v1459_v28 = vmul.f32 1.442695, %v1385_v25  ;;  %v1461_v2 = vmul.f32 1.442695, %v1386_v26  ;;  %v1663_v29 = vpack.c.bf16 %v4095_v7, %v4091_v5 }
 0x218   : > { %1367 = vmax.xlane.f32.xlu0 %v1366_v9  ;;  %1370 = vmax.xlane.f32.xlu1 %v1369_v34  ;;  %v1664_v42 = vpack.c.bf16 %v4097_v48, %v4093_v31  ;;  %v5317_v62 = vadd.f32 %v4097_v48, %v4095_v7 }
 0x219   : > { %4106 = vpow2.f32 %v1459_v28 }
 0x21a   : > { %v4099_v35 = vpop.eup %4098  ;;  %4108 = vpow2.f32 %v1461_v2  ;;  %1823 = vmatprep.mubr.bf16.mxu1 %v1664_v42 }
 0x21b   : > { %v4101_v41 = vpop.eup %4100  ;;  %1824 = vmatmul.mubr.bf16.vlgmr.msra.gmra.mxu1 %v1663_v29  ;;  %v2147_v29 = vsel %vm989_vm0, %v5271_v6, 0  ;;  %v2144_v6 = vsel %vm989_vm0, %v5279_v21, 0 }
 0x21c   : > { %3794 = vmatpush3.bf16.xpose.msra.mxu1 %v2150_v49  ;;  %v1302_v25 = vpop.xlane.xlu1 %1301  ;;  %1373 = vmax.xlane.f32.xlu0 %v1372_v39  ;;  %v5323_v5 = vadd.f32 %v4101_v41, %v4099_v35 }
 0x21d   : > { %3978 = vmatprep.subr.msk.bf16.mxu1 %vm989_vm0, %v5263_v13  ;;  %v1389_v31 = vsub.f32 %v5131_v46, %v1302_v25  ;;  %v1390_v34 = vsub.f32 %v5133_v47, %v1302_v25 }
 0x21e   : > { %v4103_v26 = vpop.eup %4102 }
 0x21f   : > { %v4105_v7 = vpop.eup %4104  ;;  %v1467_v9 = vmul.f32 1.442695, %v1389_v31  ;;  %v1469_v48 = vmul.f32 1.442695, %v1390_v34  ;;  %v1665_v28 = vpack.c.bf16 %v4103_v26, %v4099_v35 }
 0x220   : > { %v1666_v2 = vpack.c.bf16 %v4105_v7, %v4101_v41  ;;  %v5329_v24 = vadd.f32 %v4105_v7, %v4103_v26  ;;  %v2057_v26 = vpop.permute.xlu0 %2056 }
 0x221   : > { %4110 = vpow2.f32 %v1467_v9 }
 0x222   : > { %4112 = vpow2.f32 %v1469_v48  ;;  %1831 = vmatprep.mubr.bf16.mxu1 %v1666_v2 }
 0x223   : > { %1832 = vmatmul.mubr.bf16.gmra.mxu1 %v1665_v28 }
 0x224   : > { %3796 = vmatpush3.bf16.xpose.msra.mxu1 %v2147_v29  ;;  %v1308_v13 = vpop.xlane.xlu1 %1307 }
 0x225   : > { %3979 = vmatprep.subr.msk.bf16.mxu1 %vm989_vm0, %v5269_v0  ;;  %v1393_v46 = vsub.f32 %v5143_v22, %v1308_v13  ;;  %v1394_v47 = vsub.f32 %v5145_v23, %v1308_v13 }
 0x226   : > { %v5337_v35 = vpop.eup %4106 }
 0x227   : > { %v5339_v42 = vpop.eup %4108  ;;  %v1475_v39 = vmul.f32 1.442695, %v1393_v46  ;;  %v1477_v41 = vmul.f32 1.442695, %v1394_v47 }
 0x228   : > { %v5343_v49 = vadd.f32 %v5339_v42, %v5337_v35 }
 0x229   : > { %4114 = vpow2.f32 %v1475_v39  ;;  %2066 = vrot.lane.b32.xlu1 %v4896_v51, %s4532_s29 }
 0x22a   : > { %4116 = vpow2.f32 %v1477_v41 }
 0x22c   : > { %3798 = vmatpush3.bf16.xpose.msra.mxu1 %v2144_v6  ;;  %v1314_v22 = vpop.xlane.xlu1 %1313 }
 0x22d   : > { %3980 = vmatprep.subr.msk.bf16.mxu1 %vm989_vm0, %v5273_v11  ;;  %v1397_v23 = vsub.f32 %v5153_v43, %v1314_v22  ;;  %v1398_v0 = vsub.f32 %v5155_v33, %v1314_v22  ;;  %2064 = vrot.lane.b32.xlu1 %v4906_v54, %s4532_s29  ;;  %v2141_v54 = vsel %vm989_vm0, %v2057_v26, 0 }
 0x22e   : > { %v5355_v25 = vpop.eup %4110 }
 0x22f   : > { %v5357_v31 = vpop.eup %4112  ;;  %v1483_v51 = vmul.f32 1.442695, %v1397_v23  ;;  %v1485_v34 = vmul.f32 1.442695, %v1398_v0 }
 0x230   : > { %v5361_v21 = vadd.f32 %v5357_v31, %v5355_v25 }
 0x231   : > { %4118 = vpow2.f32 %v1483_v51  ;;  %2018 = vrot.lane.b32.xlu1 %v4922_v57, %s4532_s29  ;;  %v6636_v51 = vld [vmem:[#allocation28_spill] sm:$0xff] }
 0x232   : > { %4120 = vpow2.f32 %v1485_v34  ;;  %2050 = vrot.lane.b32.xlu0 %v4901_v52, %s4532_s29  ;;  %v6637_v34 = vld [vmem:[#allocation6_spill] sm:$0xff] }
 0x234   : > { %3800 = vmatpush3.bf16.xpose.msra.mxu1 %v2141_v54  ;;  %v1320_v43 = vpop.xlane.xlu1 %1319 }
 0x235   : > { %3981 = vmatprep.subr.msk.bf16.mxu1 %vm989_vm0, %v5289_v16  ;;  %v1401_v33 = vsub.f32 %v5163_v20, %v1320_v43  ;;  %v1402_v11 = vsub.f32 %v5165_v18, %v1320_v43  ;;  %2022 = vrot.lane.b32.xlu1 %v4939_v59, %s4532_s29 }
 0x236   : > { %v5374_v7 = vpop.eup %4114  ;;  %2048 = vrot.lane.b32.xlu0 %v4912_v55, %s4532_s29  ;;  %v2138_v55 = vsel %vm989_vm0, %v5281_v8, 0 }
 0x237   : > { %v5378_v52 = vpop.eup %4116  ;;  %v1491_v57 = vmul.f32 1.442695, %v1401_v33  ;;  %v1493_v9 = vmul.f32 1.442695, %v1402_v11  ;;  %v6638_v11 = vld [vmem:[#allocation10_spill] sm:$0xff] }
 0x238   : > { %v5382_v48 = vadd.f32 %v5378_v52, %v5374_v7 }
 0x239   : > { %4122 = vpow2.f32 %v1491_v57  ;;  %v1293_v16 = vpop.xlane.xlu0 %1292  ;;  %2026 = vrot.lane.b32.xlu1 %v4953_v61, %s4532_s29  ;;  %v6639_v57 = vld [vmem:[#allocation29_spill] sm:$0xff] }
 0x23a   : > { %4124 = vpow2.f32 %v1493_v9  ;;  %v1383_v59 = vsub.f32 %v5117_v37, %v1293_v16  ;;  %v1384_v18 = vsub.f32 %v5119_v38, %v1293_v16  ;;  %2016 = vrot.lane.b32.xlu0 %v4869_v40, %s4532_s29  ;;  %v6640_v16 = vld [vmem:[#allocation30_spill] sm:$0xff] }
 0x23c   : > { %v1455_v20 = vmul.f32 1.442695, %v1383_v59  ;;  %v1457_v28 = vmul.f32 1.442695, %v1384_v18  ;;  %3802 = vmatpush3.bf16.xpose.msra.mxu1 %v2138_v55  ;;  %v1326_v2 = vpop.xlane.xlu1 %1325  ;;  %v6641_v18 = vld [vmem:[#allocation7_spill] sm:$0xff] }
 0x23d   : > { %v1405_v29 = vsub.f32 %v5173_v14, %v1326_v2  ;;  %v1406_v13 = vsub.f32 %v5177_v36, %v1326_v2  ;;  %v1299_v61 = vpop.xlane.xlu0 %1298  ;;  %2030 = vrot.lane.b32.xlu1 %v4967_v63, %s4532_s29 }
 0x23e   : > { %v5396_v37 = vpop.eup %4118  ;;  %4126 = vpow2.f32 %v1455_v20  ;;  %v1387_v40 = vsub.f32 %v5127_v44, %v1299_v61  ;;  %v1388_v38 = vsub.f32 %v5129_v45, %v1299_v61  ;;  %2020 = vrot.lane.b32.xlu0 %v4931_v58, %s4532_s29  ;;  %v6642_v61 = vld [vmem:[#allocation37_spill] sm:$0xff] }
 0x23f   : > { %v5402_v8 = vpop.eup %4120  ;;  %4128 = vpow2.f32 %v1457_v28  ;;  %v1499_v14 = vmul.f32 1.442695, %v1405_v29  ;;  %v1501_v46 = vmul.f32 1.442695, %v1406_v13 }
 0x240   : > { %v1463_v36 = vmul.f32 1.442695, %v1387_v40  ;;  %v1465_v47 = vmul.f32 1.442695, %v1388_v38  ;;  %v5406_v63 = vadd.f32 %v5402_v8, %v5396_v37  ;;  %v6643_v38 = vld [vmem:[#allocation38_spill] sm:$0xff] }
 0x241   : > { %4130 = vpow2.f32 %v1499_v14  ;;  %v1305_v39 = vpop.xlane.xlu0 %1304  ;;  %2034 = vrot.lane.b32.xlu1 %v4981_v1, %s4532_s29 }
 0x242   : > { %4132 = vpow2.f32 %v1501_v46  ;;  %v1391_v44 = vsub.f32 %v5139_v53, %v1305_v39  ;;  %v1392_v58 = vsub.f32 %v5141_v56, %v1305_v39  ;;  %2024 = vrot.lane.b32.xlu0 %v4946_v60, %s4532_s29  ;;  %v6635_v53 = vld [vmem:[#allocation27_spill] sm:$0xff] }
 0x243   : > { %4134 = vpow2.f32 %v1463_v36 }
 0x244   : > { %4136 = vpow2.f32 %v1465_v47  ;;  %v1471_v45 = vmul.f32 1.442695, %v1391_v44  ;;  %v1473_v41 = vmul.f32 1.442695, %v1392_v58  ;;  %v1332_v6 = vpop.xlane.xlu1 %1331  ;;  %v6644_v47 = vld [vmem:[#allocation12_spill] sm:$0xff]  ;;  %v6645_v58 = vld [vmem:[#allocation31_spill] sm:$0xff] }
 0x245   : > { %v1409_v22 = vsub.f32 %v5187_v15, %v1332_v6  ;;  %v1410_v23 = vsub.f32 %v5191_v19, %v1332_v6  ;;  %v1311_v0 = vpop.xlane.xlu0 %1310  ;;  %2038 = vrot.lane.b32.xlu1 %v4995_v3, %s4532_s29 }
 0x246   : > { %v5418_v1 = vpop.eup %4122  ;;  %4138 = vpow2.f32 %v1471_v45  ;;  %v1395_v56 = vsub.f32 %v6635_v53, %v1311_v0  ;;  %v1396_v60 = vsub.f32 %v6636_v51, %v1311_v0  ;;  %2028 = vrot.lane.b32.xlu0 %v6637_v34, %s4532_s29 }
 0x247   : > { %v5424_v26 = vpop.eup %4124  ;;  %4140 = vpow2.f32 %v1473_v41  ;;  %v1507_v15 = vmul.f32 1.442695, %v1409_v22  ;;  %v1509_v54 = vmul.f32 1.442695, %v1410_v23  ;;  %v6646_v41 = vld [vmem:[#allocation32_spill] sm:$0xff] }
 0x248   : > { %v1479_v19 = vmul.f32 1.442695, %v1395_v56  ;;  %v1481_v43 = vmul.f32 1.442695, %v1396_v60  ;;  %v5428_v3 = vadd.f32 %v5424_v26, %v5418_v1 }
 0x249   : > { %4142 = vpow2.f32 %v1507_v15  ;;  %v1317_v33 = vpop.xlane.xlu0 %1316  ;;  %2042 = vrot.lane.b32.xlu1 %v6638_v11, %s4532_s29  ;;  %v6648_v15 = vld [vmem:[#allocation14_spill] sm:$0xff] }
 0x24a   : > { %4144 = vpow2.f32 %v1509_v54  ;;  %v1399_v9 = vsub.f32 %v6639_v57, %v1317_v33  ;;  %v1400_v59 = vsub.f32 %v6640_v16, %v1317_v33  ;;  %2032 = vrot.lane.b32.xlu0 %v6641_v18, %s4532_s29  ;;  %v6649_v54 = vld [vmem:[#allocation33_spill] sm:$0xff] }
 0x24b   : > { %v4127_v55 = vpop.eup %4126  ;;  %4146 = vpow2.f32 %v1479_v19  ;;  %v6651_v57 = vld [vmem:[#allocation9_spill] sm:$0xff] }
 0x24c   : > { %v4129_v20 = vpop.eup %4128  ;;  %4148 = vpow2.f32 %v1481_v43  ;;  %v1487_v28 = vmul.f32 1.442695, %v1399_v9  ;;  %v1489_v2 = vmul.f32 1.442695, %v1400_v59  ;;  %v1338_v29 = vpop.xlane.xlu1 %1337  ;;  %v1667_v13 = vpack.c.bf16 %v5337_v35, %v4127_v55  ;;  %v6647_v35 = vld [vmem:[#allocation8_spill] sm:$0xff]  ;;  %v6650_v43 = vld [vmem:[#allocation34_spill] sm:$0xff] }
 0x24d   : > { %v1413_v40 = vsub.f32 %v6642_v61, %v1338_v29  ;;  %v1414_v14 = vsub.f32 %v6643_v38, %v1338_v29  ;;  %v1323_v46 = vpop.xlane.xlu0 %1322  ;;  %v1668_v36 = vpack.c.bf16 %v5339_v42, %v4129_v20  ;;  %2046 = vrot.lane.b32.xlu1 %v6644_v47, %s4532_s29  ;;  %v5442_v39 = vadd.f32 %v4129_v20, %v4127_v55  ;;  %v6653_v29 = vld [vmem:[#allocation42_spill] sm:$0xff] }
 0x24e   : > { %v5444_v44 = vpop.eup %4130  ;;  %4150 = vpow2.f32 %v1487_v28  ;;  %v1403_v45 = vsub.f32 %v6645_v58, %v1323_v46  ;;  %v1404_v6 = vsub.f32 %v6646_v41, %v1323_v46  ;;  %2036 = vrot.lane.b32.xlu0 %v6647_v35, %s4532_s29  ;;  %v6652_v28 = vld [vmem:[#allocation41_spill] sm:$0xff] }
 0x24f   : > { %v5450_v22 = vpop.eup %4132  ;;  %4152 = vpow2.f32 %v1489_v2  ;;  %v1515_v23 = vmul.f32 1.442695, %v1413_v40  ;;  %v1517_v42 = vmul.f32 1.442695, %v1414_v14  ;;  %1839 = vmatprep.mubr.bf16.mxu1 %v1668_v36  ;;  %v6655_v14 = vld [vmem:[#allocation35_spill] sm:$0xff]  ;;  %v6656_v36 = vld [vmem:[#allocation36_spill] sm:$0xff] }
 0x250   : > { %v4135_v0 = vpop.eup %4134  ;;  %v1495_v53 = vmul.f32 1.442695, %v1403_v45  ;;  %v1497_v56 = vmul.f32 1.442695, %v1404_v6  ;;  %1840 = vmatmul.mubr.bf16.gmra.mxu1 %v1667_v13  ;;  %v5454_v51 = vadd.f32 %v5450_v22, %v5444_v44  ;;  %v6657_v45 = vld [vmem:[#allocation11_spill] sm:$0xff] }
 0x251   : > { %v4137_v60 = vpop.eup %4136  ;;  %4154 = vpow2.f32 %v1515_v23  ;;  %v1329_v34 = vpop.xlane.xlu0 %1328  ;;  %2799 = vrot.lane.b32.xlu1 %v6648_v15, %s4532_s29  ;;  %v1669_v58 = vpack.c.bf16 %v5355_v25, %v4135_v0  ;;  %v6659_v15 = vld [vmem:[#allocation39_spill] sm:$0xff] }
 0x252   : > { %4156 = vpow2.f32 %v1517_v42  ;;  %v1407_v19 = vsub.f32 %v6649_v54, %v1329_v34  ;;  %v1408_v33 = vsub.f32 %v6650_v43, %v1329_v34  ;;  %v1670_v11 = vpack.c.bf16 %v5357_v31, %v4137_v60  ;;  %2040 = vrot.lane.b32.xlu0 %v6651_v57, %s4532_s29  ;;  %v6654_v31 = vld [vmem:[#allocation16_spill] sm:$0xff]  ;;  %v6658_v34 = vld [vmem:[#allocation18_spill] sm:$0xff]  ;;  %v6661_v43 = vld [vmem:[#allocation13_spill] sm:$0xff] }
 0x253   : > { %v5463_v9 = vpop.eup %4138  ;;  %4158 = vpow2.f32 %v1495_v53  ;;  %v5465_v16 = vadd.f32 %v4137_v60, %v4135_v0 }
 0x254   : > { %v4141_v59 = vpop.eup %4140  ;;  %4160 = vpow2.f32 %v1497_v56  ;;  %v1503_v18 = vmul.f32 1.442695, %v1407_v19  ;;  %v1505_v55 = vmul.f32 1.442695, %v1408_v33  ;;  %1847 = vmatprep.mubr.bf16.mxu1 %v1670_v11  ;;  %v1344_v20 = vpop.xlane.xlu1 %1343 }
 0x255   : > { %v1417_v2 = vsub.f32 %v6652_v28, %v1344_v20  ;;  %v1418_v13 = vsub.f32 %v6653_v29, %v1344_v20  ;;  %v1335_v61 = vpop.xlane.xlu0 %1334  ;;  %2797 = vrot.lane.b32.xlu1 %v6654_v31, %s4532_s29  ;;  %v5472_v40 = vadd.f32 %v4141_v59, %v5463_v9  ;;  %v1672_v23 = vpack.c.bf16 %v5378_v52, %v4141_v59  ;;  %v6660_v52 = vld [vmem:[#allocation40_spill] sm:$0xff]  ;;  %v6662_v20 = vld [vmem:[#allocation45_spill] sm:$0xff] }
 0x256   : > { %v5474_v38 = vpop.eup %4142  ;;  %4162 = vpow2.f32 %v1503_v18  ;;  %v1411_v46 = vsub.f32 %v6655_v14, %v1335_v61  ;;  %v1412_v47 = vsub.f32 %v6656_v36, %v1335_v61  ;;  %2044 = vrot.lane.b32.xlu0 %v6657_v45, %s4532_s29  ;;  %v6664_v61 = vld [vmem:[#allocation20_spill] sm:$0xff]  ;;  %v1671_v45 = vpack.c.bf16 %v5374_v7, %v5463_v9 }
 0x257   : > { %v5481_v41 = vpop.eup %4144  ;;  %4164 = vpow2.f32 %v1505_v55  ;;  %v1523_v6 = vmul.f32 1.442695, %v1417_v2  ;;  %v1525_v35 = vmul.f32 1.442695, %v1418_v13  ;;  %v6663_v2 = vld [vmem:[#allocation46_spill] sm:$0xff] }
 0x258   : > { %v5484_v42 = vpop.eup %4146  ;;  %v1511_v53 = vmul.f32 1.442695, %v1411_v46  ;;  %v1513_v56 = vmul.f32 1.442695, %v1412_v47  ;;  %1848 = vmatmul.mubr.bf16.gmra.mxu1 %v1669_v58  ;;  %v5488_v60 = vadd.f32 %v5481_v41, %v5474_v38  ;;  %v6665_v46 = vld [vmem:[#allocation43_spill] sm:$0xff]  ;;  %v6666_v47 = vld [vmem:[#allocation44_spill] sm:$0xff] }
 0x259   : > { %v4149_v25 = vpop.eup %4148  ;;  %4166 = vpow2.f32 %v1523_v6  ;;  %1855 = vmatprep.mubr.bf16.mxu1 %v1672_v23  ;;  %v1341_v0 = vpop.xlane.xlu0 %1340  ;;  %2795 = vrot.lane.b32.xlu1 %v6658_v34, %s4532_s29  ;;  %v6667_v6 = vld [vmem:[#allocation15_spill] sm:$0xff] }
 0x25a   : > { %4168 = vpow2.f32 %v1525_v35  ;;  %v1415_v54 = vsub.f32 %v6659_v15, %v1341_v0  ;;  %v1416_v19 = vsub.f32 %v6660_v52, %v1341_v0  ;;  %2815 = vrot.lane.b32.xlu0 %v6661_v43, %s4532_s29  ;;  %v5499_v11 = vadd.f32 %v4149_v25, %v5484_v42  ;;  %v6668_v52 = vld [vmem:[#allocation22_spill] sm:$0xff] }
 0x25b   : > { %v5496_v33 = vpop.eup %4150  ;;  %4170 = vpow2.f32 %v1511_v53 }
 0x25c   : > { %v4153_v57 = vpop.eup %4152  ;;  %4172 = vpow2.f32 %v1513_v56  ;;  %v1519_v59 = vmul.f32 1.442695, %v1415_v54  ;;  %v1521_v18 = vmul.f32 1.442695, %v1416_v19  ;;  %v1350_v55 = vpop.xlane.xlu1 %1349  ;;  %v1674_v56 = vpack.c.bf16 %v5402_v8, %v4149_v25  ;;  %v6669_v19 = vld [vmem:[#allocation47_spill] sm:$0xff]  ;;  %v6670_v25 = vld [vmem:[#allocation48_spill] sm:$0xff] }
 0x25d   : > { %v1421_v28 = vsub.f32 %v6662_v20, %v1350_v55  ;;  %v1422_v29 = vsub.f32 %v6663_v2, %v1350_v55  ;;  %v1347_v13 = vpop.xlane.xlu0 %1346  ;;  %2793 = vrot.lane.b32.xlu1 %v6664_v61, %s4532_s29  ;;  %v5506_v31 = vadd.f32 %v4153_v57, %v5496_v33 }
 0x25e   : > { %v5508_v14 = vpop.eup %4154  ;;  %4174 = vpow2.f32 %v1519_v59  ;;  %v1419_v36 = vsub.f32 %v6665_v46, %v1347_v13  ;;  %v1420_v58 = vsub.f32 %v6666_v47, %v1347_v13  ;;  %2813 = vrot.lane.b32.xlu0 %v6667_v6, %s4532_s29  ;;  %v6671_v59 = vld [vmem:[#allocation17_spill] sm:$0xff]  ;;  %v6673_v46 = vld [vmem:[#allocation50_spill] sm:$0xff]  ;;  %v6674_v47 = vld [vmem:[#allocation24_spill] sm:$0xff]  ;;  %v1673_v6 = vpack.c.bf16 %v5396_v37, %v5484_v42 }
 0x25f   : > { %v5516_v35 = vpop.eup %4156  ;;  %4176 = vpow2.f32 %v1521_v18  ;;  %v1531_v23 = vmul.f32 1.442695, %v1421_v28  ;;  %v1533_v53 = vmul.f32 1.442695, %v1422_v29  ;;  %v6672_v13 = vld [vmem:[#allocation49_spill] sm:$0xff]  ;;  %v6677_v37 = vld [vmem:[#allocation51_spill] sm:$0xff] }
 0x260   : > { %v5519_v0 = vpop.eup %4158  ;;  %v1527_v34 = vmul.f32 1.442695, %v1419_v36  ;;  %v1529_v15 = vmul.f32 1.442695, %v1420_v58  ;;  %1856 = vmatmul.mubr.bf16.gmra.mxu1 %v1671_v45  ;;  %v5523_v54 = vadd.f32 %v5516_v35, %v5508_v14 }
 0x261   : > { %v5525_v7 = vpop.eup %4160  ;;  %4178 = vpow2.f32 %v1531_v23  ;;  %1863 = vmatprep.mubr.bf16.mxu1 %v1674_v56  ;;  %v1353_v9 = vpop.xlane.xlu0 %1352  ;;  %2791 = vrot.lane.b32.xlu1 %v6668_v52, %s4532_s29  ;;  %v6675_v23 = vld [vmem:[#allocation19_spill] sm:$0xff] }
 0x262   : > { %4180 = vpow2.f32 %v1533_v53  ;;  %v1423_v8 = vsub.f32 %v6669_v19, %v1353_v9  ;;  %v1424_v43 = vsub.f32 %v6670_v25, %v1353_v9  ;;  %2811 = vrot.lane.b32.xlu0 %v6671_v59, %s4532_s29  ;;  %v5537_v55 = vadd.f32 %v5525_v7, %v5519_v0  ;;  %v6678_v25 = vld [vmem:[#allocation52_spill] sm:$0xff]  ;;  %v6679_v59 = vld [vmem:[#allocation26_spill] sm:$0xff] }
 0x263   : > { %v5533_v18 = vpop.eup %4162  ;;  %4182 = vpow2.f32 %v1527_v34 }
 0x264   : > { %v5539_v20 = vpop.eup %4164  ;;  %4184 = vpow2.f32 %v1529_v15  ;;  %v1535_v28 = vmul.f32 1.442695, %v1423_v8  ;;  %v1537_v2 = vmul.f32 1.442695, %v1424_v43  ;;  %v1356_v29 = vpop.xlane.xlu1 %1355  ;;  %v1676_v15 = vpack.c.bf16 %v5424_v26, %v4153_v57  ;;  %v6680_v26 = vld [vmem:[#allocation21_spill] sm:$0xff] }
 0x265   : > { %v1425_v61 = vsub.f32 %v6672_v13, %v1356_v29  ;;  %v1426_v36 = vsub.f32 %v6673_v46, %v1356_v29  ;;  %2789 = vrot.lane.b32.xlu1 %v6674_v47, %s4532_s29  ;;  %v5547_v58 = vadd.f32 %v5539_v20, %v5533_v18 }
 0x266   : > { %v5549_v45 = vpop.eup %4166  ;;  %4186 = vpow2.f32 %v1535_v28  ;;  %2809 = vrot.lane.b32.xlu0 %v6675_v23, %s4532_s29 }
 0x267   : > { %v5555_v53 = vpop.eup %4168  ;;  %4188 = vpow2.f32 %v1537_v2  ;;  %v1539_v56 = vmul.f32 1.442695, %v1425_v61  ;;  %v1541_v34 = vmul.f32 1.442695, %v1426_v36  ;;  %v6681_v36 = vld [vmem:[#allocation53_spill] sm:$0xff] }
 0x268   : > { %v5558_v9 = vpop.eup %4170  ;;  %1864 = vmatmul.mubr.bf16.gmra.mxu1 %v1673_v6  ;;  %v1359_v52 = vpop.xlane.xlu1 %1358  ;;  %v5562_v19 = vadd.f32 %v5555_v53, %v5549_v45  ;;  %v6682_v6 = vld [vmem:[#allocation54_spill] sm:$0xff] }
 0x269   : > { %v4173_v8 = vpop.eup %4172  ;;  %4190 = vpow2.f32 %v1539_v56  ;;  %1871 = vmatprep.mubr.bf16.mxu1 %v1676_v15  ;;  %v1427_v42 = vsub.f32 %v6677_v37, %v1359_v52  ;;  %v1428_v43 = vsub.f32 %v6678_v25, %v1359_v52  ;;  %2787 = vrot.lane.b32.xlu1 %v6679_v59, %s4532_s29  ;;  %v6683_v15 = vld [vmem:[#allocation23_spill] sm:$0xff] }
 0x26a   : > { %6676 = vst [vmem:[#allocation27_spill] sm:$0xff] %v5562_v19  ;;  %4192 = vpow2.f32 %v1541_v34  ;;  %2807 = vrot.lane.b32.xlu0 %v6680_v26, %s4532_s29  ;;  %v5571_v57 = vadd.f32 %v4173_v8, %v5558_v9  ;;  %v1675_v34 = vpack.c.bf16 %v5418_v1, %v5496_v33  ;;  %v6686_v33 = vld [vmem:[#allocation25_spill] sm:$0xff] }
 0x26b   : > { %v4175_v28 = vpop.eup %4174  ;;  %v1543_v2 = vmul.f32 1.442695, %v1427_v42  ;;  %v1545_v29 = vmul.f32 1.442695, %v1428_v43  ;;  %v1678_v43 = vpack.c.bf16 %v5450_v22, %v5525_v7 }
 0x26c   : > { %v4177_v13 = vpop.eup %4176  ;;  %v2069_v61 = vpop.permute.xlu1 %2068 }
 0x26d   : > { %v1362_v46 = vpop.xlane.xlu0 %1361  ;;  %4194 = vpow2.f32 %v1543_v2  ;;  %3982 = vmatprep.subr.msk.bf16.mxu1 %vm989_vm0, %v2069_v61  ;;  %v5580_v52 = vadd.f32 %v4177_v13, %v4175_v28 }
 0x26e   : > { %v1429_v47 = vsub.f32 %v6681_v36, %v1362_v46  ;;  %v1430_v23 = vsub.f32 %v6682_v6, %v1362_v46  ;;  %v4179_v56 = vpop.eup %4178  ;;  %4196 = vpow2.f32 %v1545_v29  ;;  %2805 = vrot.lane.b32.xlu0 %v6683_v15, %s4532_s29 }
 0x26f   : > { %6684 = vst [vmem:[#allocation28_spill] sm:$0xff] %v5580_v52  ;;  %v4181_v37 = vpop.eup %4180 }
 0x270   : > { %v1547_v42 = vmul.f32 1.442695, %v1429_v47  ;;  %v1549_v25 = vmul.f32 1.442695, %v1430_v23  ;;  %v4183_v59 = vpop.eup %4182  ;;  %1872 = vmatmul.mubr.bf16.gmra.mxu1 %v1675_v34  ;;  %v5584_v2 = vadd.f32 %v4181_v37, %v4179_v56  ;;  %v1677_v47 = vpack.c.bf16 %v5444_v44, %v5519_v0 }
 0x271   : > { %v2053_v26 = vpop.permute.xlu0 %2052  ;;  %v4185_v29 = vpop.eup %4184  ;;  %1879 = vmatprep.mubr.bf16.mxu1 %v1678_v43  ;;  %v1680_v23 = vpack.c.bf16 %v5481_v41, %v5539_v20  ;;  %v1681_v41 = vpack.c.bf16 %v5508_v14, %v5558_v9  ;;  %v1684_v0 = vpack.c.bf16 %v5555_v53, %v4177_v13  ;;  %v1683_v20 = vpack.c.bf16 %v5549_v45, %v4175_v28 }
 0x272   : > { %6685 = vst [vmem:[#allocation6_spill] sm:$0xff] %v5584_v2  ;;  %4198 = vpow2.f32 %v1547_v42  ;;  %v2135_v1 = vsel %vm989_vm0, %v2053_v26, 0  ;;  %2803 = vrot.lane.b32.xlu0 %v6686_v33, %s4532_s29  ;;  %v5589_v61 = vadd.f32 %v4185_v29, %v4183_v59  ;;  %v1679_v26 = vpack.c.bf16 %v5474_v38, %v5533_v18 }
 0x273   : > { %4200 = vpow2.f32 %v1549_v25  ;;  %3804 = vmatpush3.bf16.xpose.msra.mxu1 %v2135_v1  ;;  %v4187_v46 = vpop.eup %4186  ;;  %v1682_v33 = vpack.c.bf16 %v5516_v35, %v4173_v8  ;;  %v1685_v38 = vpack.c.bf16 %v4179_v56, %v4183_v59 }
 0x274   : > { %6687 = vst [vmem:[#allocation10_spill] sm:$0xff] %v5589_v61  ;;  %v4189_v36 = vpop.eup %4188 }
 0x275   : > { %v5591_v22 = vadd.f32 %v4189_v36, %v4187_v46 }
 0x276   : > { %v4191_v7 = vpop.eup %4190 }
 0x277   : > { %6688 = vst [vmem:[#allocation29_spill] sm:$0xff] %v5591_v22  ;;  %v4193_v6 = vpop.eup %4192 }
 0x278   : > { %1880 = vmatmul.mubr.bf16.gmra.mxu1 %v1677_v47  ;;  %v5597_v34 = vadd.f32 %v4193_v6, %v4191_v7  ;;  %v1686_v47 = vpack.c.bf16 %v4181_v37, %v4185_v29  ;;  %v1688_v18 = vpack.c.bf16 %v4193_v6, %v4189_v36 }
 0x279   : > { %1887 = vmatprep.mubr.bf16.mxu1 %v1680_v23 }
 0x27a   : > { %6689 = vst [vmem:[#allocation30_spill] sm:$0xff] %v5597_v34  ;;  %v4195_v15 = vpop.eup %4194 }
 0x27b   : > { %v4197_v42 = vpop.eup %4196 }
 0x27c   : > { %v5599_v25 = vadd.f32 %v4197_v42, %v4195_v15 }
 0x27e   : > { %6690 = vst [vmem:[#allocation7_spill] sm:$0xff] %v5599_v25 }
 0x27f   : > { %v4199_v43 = vpop.eup %4198 }
 0x280   : > { %v4201_v1 = vpop.eup %4200  ;;  %1888 = vmatmul.mubr.bf16.gmra.mxu1 %v1679_v26  ;;  %v1687_v26 = vpack.c.bf16 %v4191_v7, %v4187_v46 }
 0x281   : > { %v5604_v44 = vadd.f32 %v4201_v1, %v4199_v43  ;;  %1895 = vmatprep.mubr.bf16.mxu1 %v1682_v33  ;;  %v1690_v14 = vpack.c.bf16 %v4201_v1, %v4197_v42  ;;  %v1689_v1 = vpack.c.bf16 %v4199_v43, %v4195_v15 }
 0x283   : > { %6691 = vst [vmem:[#allocation37_spill] sm:$0xff] %v5604_v44 }
 0x288   : > { %1896 = vmatmul.mubr.bf16.gmra.mxu1 %v1681_v41 }
 0x289   : > { %1903 = vmatprep.mubr.bf16.mxu1 %v1684_v0 }
 0x290   : > { %1904 = vmatmul.mubr.bf16.gmra.mxu1 %v1683_v20 }
 0x291   : > { %1911 = vmatprep.mubr.bf16.mxu1 %v1686_v47 }
 0x298   : > { %1912 = vmatmul.mubr.bf16.gmra.mxu1 %v1685_v38 }
 0x299   : > { %1919 = vmatprep.mubr.bf16.mxu1 %v1688_v18 }
 0x29d   : > { %v1365_v35 = vpop.xlane.xlu1 %1364 }
 0x29e   : > { %v1431_v8 = vsub.f32 %v5277_v10, %v1365_v35  ;;  %v1432_v23 = vsub.f32 %v5283_v4, %v1365_v35 }
 0x2a0   : > { %v1551_v9 = vmul.f32 1.442695, %v1431_v8  ;;  %v1553_v53 = vmul.f32 1.442695, %v1432_v23  ;;  %1920 = vmatmul.mubr.bf16.gmra.mxu1 %v1687_v26 }
 0x2a1   : > { %1927 = vmatprep.mubr.bf16.mxu1 %v1690_v14  ;;  %v1368_v13 = vpop.xlane.xlu0 %1367  ;;  %v1371_v45 = vpop.xlane.xlu1 %1370 }
 0x2a2   : > { %4202 = vpow2.f32 %v1551_v9  ;;  %v1433_v28 = vsub.f32 %v5287_v17, %v1368_v13  ;;  %v1434_v56 = vsub.f32 %v5293_v30, %v1368_v13  ;;  %v1435_v37 = vsub.f32 %v5297_v27, %v1371_v45 }
 0x2a3   : > { %4204 = vpow2.f32 %v1553_v53  ;;  %v1436_v10 = vsub.f32 %v5301_v50, %v1371_v45 }
 0x2a4   : > { %v1555_v59 = vmul.f32 1.442695, %v1433_v28  ;;  %v1557_v4 = vmul.f32 1.442695, %v1434_v56  ;;  %v1559_v29 = vmul.f32 1.442695, %v1435_v37 }
 0x2a5   : > { %v1561_v46 = vmul.f32 1.442695, %v1436_v10  ;;  %v1374_v36 = vpop.xlane.xlu0 %1373  ;;  %v2067_v7 = vpop.permute.xlu1 %2066 }
 0x2a6   : > { %4206 = vpow2.f32 %v1555_v59  ;;  %v1437_v6 = vsub.f32 %v5305_v32, %v1374_v36  ;;  %v1438_v42 = vsub.f32 %v5315_v12, %v1374_v36  ;;  %3983 = vmatprep.subr.msk.bf16.mxu1 %vm989_vm0, %v2067_v7 }
 0x2a7   : > { %4208 = vpow2.f32 %v1557_v4 }
 0x2a8   : > { %4210 = vpow2.f32 %v1559_v29  ;;  %v1563_v17 = vmul.f32 1.442695, %v1437_v6  ;;  %v1565_v27 = vmul.f32 1.442695, %v1438_v42  ;;  %1928 = vmatmul.mubr.bf16.gmra.mxu1 %v1689_v1 }
 0x2a9   : > { %4212 = vpow2.f32 %v1561_v46  ;;  %v2051_v30 = vpop.permute.xlu0 %2050  ;;  %v2065_v50 = vpop.permute.xlu1 %2064 }
 0x2aa   : > { %4214 = vpow2.f32 %v1563_v17  ;;  %v2132_v33 = vsel %vm989_vm0, %v2051_v30, 0 }
 0x2ab   : > { %4216 = vpow2.f32 %v1565_v27  ;;  %3806 = vmatpush3.bf16.xpose.msra.mxu1 %v2132_v33 }
 0x2ac   : > { %3984 = vmatprep.subr.msk.bf16.mxu1 %vm989_vm0, %v2065_v50 }
 0x2ad   : > { %v2049_v32 = vpop.permute.xlu0 %2048  ;;  %v2019_v28 = vpop.permute.xlu1 %2018 }
 0x2ae   : > { %v2129_v43 = vsel %vm989_vm0, %v2049_v32, 0 }
 0x2af   : > { %v4203_v12 = vpop.eup %4202 }
 0x2b0   : > { %v4205_v15 = vpop.eup %4204 }
 0x2b1   : > { %v5622_v41 = vadd.f32 %v4205_v15, %v4203_v12  ;;  %v2017_v45 = vpop.permute.xlu0 %2016  ;;  %v2023_v37 = vpop.permute.xlu1 %2022 }
 0x2b3   : > { %6692 = vst [vmem:[#allocation38_spill] sm:$0xff] %v5622_v41  ;;  %v4207_v0 = vpop.eup %4206  ;;  %3808 = vmatpush3.bf16.xpose.msra.mxu1 %v2129_v43 }
 0x2b4   : > { %v4209_v20 = vpop.eup %4208  ;;  %v1691_v47 = vpack.c.bf16 %v4207_v0, %v4203_v12 }
 0x2b5   : > { %v4211_v38 = vpop.eup %4210  ;;  %v1692_v18 = vpack.c.bf16 %v4209_v20, %v4205_v15  ;;  %v5624_v35 = vadd.f32 %v4209_v20, %v4207_v0  ;;  %v2021_v56 = vpop.permute.xlu0 %2020 }
 0x2b6   : > { %v4213_v8 = vpop.eup %4212  ;;  %v2027_v1 = vpop.permute.xlu1 %2026 }
 0x2b7   : > { %6693 = vst [vmem:[#allocation12_spill] sm:$0xff] %v5624_v35  ;;  %v4215_v23 = vpop.eup %4214  ;;  %1935 = vmatprep.mubr.bf16.mxu1 %v1692_v18  ;;  %v5626_v26 = vadd.f32 %v4213_v8, %v4211_v38 }
 0x2b8   : > { %v4217_v14 = vpop.eup %4216  ;;  %1936 = vmatmul.mubr.bf16.gmra.mxu1 %v1691_v47  ;;  %v1693_v13 = vpack.c.bf16 %v4215_v23, %v4211_v38 }
 0x2b9   : > { %6694 = vst [vmem:[#allocation31_spill] sm:$0xff] %v5626_v26  ;;  %v1694_v9 = vpack.c.bf16 %v4217_v14, %v4213_v8  ;;  %v5628_v53 = vadd.f32 %v4217_v14, %v4215_v23  ;;  %v2025_v29 = vpop.permute.xlu0 %2024 }
 0x2ba   : > { %v2031_v27 = vpop.permute.xlu1 %2030 }
 0x2bb   : > { %6695 = vst [vmem:[#allocation32_spill] sm:$0xff] %v5628_v53  ;;  %1943 = vmatprep.mubr.bf16.mxu1 %v1694_v9 }
 0x2bd   : > { %v2029_v17 = vpop.permute.xlu0 %2028 }
 0x2be   : > { %v2035_v50 = vpop.permute.xlu1 %2034 }
 0x2c0   : > { %1944 = vmatmul.mubr.bf16.gmra.mxu1 %v1693_v13 }
 0x2c1   : > { %3809 = vmatprep.mubr.msk.bf16.mxu1 %vm989_vm0, %v2017_v45  ;;  %v2033_v30 = vpop.permute.xlu0 %2032 }
 0x2c2   : > { %v2039_v38 = vpop.permute.xlu1 %2038 }
 0x2c5   : > { %v2037_v12 = vpop.permute.xlu0 %2036 }
 0x2c8   : > { %3810 = vmatmul.mubr.msk.bf16.vlgmr.msra.gmra.mxu1 %vm989_vm0, %v2017_v45 }
 0x2c9   : > { %3811 = vmatprep.mubr.msk.bf16.mxu1 %vm989_vm0, %v2019_v28  ;;  %v2041_v45 = vpop.permute.xlu0 %2040 }
 0x2d0   : > { %3812 = vmatmul.mubr.msk.bf16.gmra.mxu1 %vm989_vm0, %v2019_v28 }
 0x2d1   : > { %3813 = vmatprep.mubr.msk.bf16.mxu1 %vm989_vm0, %v2021_v56 }
 0x2d8   : > { %3814 = vmatmul.mubr.msk.bf16.gmra.mxu1 %vm989_vm0, %v2021_v56 }
 0x2d9   : > { %3815 = vmatprep.mubr.msk.bf16.mxu1 %vm989_vm0, %v2023_v37 }
 0x2db   : > { %v3697_v10 = vpop.f32.mrf.mxu1 }
 0x2dd   : > { %v3698_v59 = vpop.f32.mrf.mxu1 }
 0x2de   : > { %v5637_v4 = vadd.f32 %v3698_v59, %v3697_v10 }
 0x2df   : > { %v5639_v46 = vpop.f32.mrf.mxu1 }
 0x2e0   : > { %6696 = vst [vmem:[#allocation8_spill] sm:$0xff] %v5637_v4  ;;  %6697 = vst [vmem:[#allocation14_spill] sm:$0xff] %v5639_v46  ;;  %3816 = vmatmul.mubr.msk.bf16.gmra.mxu1 %vm989_vm0, %v2023_v37 }
 0x2e1   : > { %v5642_v36 = vpop.f32.mrf.mxu1  ;;  %3817 = vmatprep.mubr.msk.bf16.mxu1 %vm989_vm0, %v2025_v29 }
 0x2e2   : > { %6698 = vst [vmem:[#allocation33_spill] sm:$0xff] %v5642_v36 }
 0x2e3   : > { %v3703_v7 = vpop.f32.mrf.mxu1 }
 0x2e5   : > { %v3704_v6 = vpop.f32.mrf.mxu1 }
 0x2e6   : > { %v5645_v42 = vadd.f32 %v3704_v6, %v3703_v7  ;;  %v2043_v7 = vpop.permute.xlu1 %2042 }
 0x2e7   : > { %v5657_v33 = vpop.f32.mrf.mxu1 }
 0x2e8   : > { %6699 = vst [vmem:[#allocation34_spill] sm:$0xff] %v5645_v42  ;;  %3818 = vmatmul.mubr.msk.bf16.gmra.mxu1 %vm989_vm0, %v2025_v29  ;;  %6700 = vst [vmem:[#allocation9_spill] sm:$0xff] %v5657_v33  ;;  %v4475_v42 = vld [vmem:[%s5032_s30 + $0x40] sm:$0xff]  }
 0x2e9   : > { %3819 = vmatprep.mubr.msk.bf16.mxu1 %vm989_vm0, %v2027_v1  ;;  %v5659_v32 = vpop.f32.mrf.mxu1 }
 0x2ea   : > { %6701 = vst [vmem:[#allocation41_spill] sm:$0xff] %v5659_v32 }
 0x2f0   : > { %3820 = vmatmul.mubr.msk.bf16.gmra.mxu1 %vm989_vm0, %v2027_v1 }
 0x2f1   : > { %3821 = vmatprep.mubr.msk.bf16.mxu1 %vm989_vm0, %v2029_v17 }
 0x2f8   : > { %3822 = vmatmul.mubr.msk.bf16.gmra.mxu1 %vm989_vm0, %v2029_v17 }
 0x2f9   : > { %3823 = vmatprep.mubr.msk.bf16.mxu1 %vm989_vm0, %v2031_v27 }
 0x300   : > { %3824 = vmatmul.mubr.msk.bf16.gmra.mxu1 %vm989_vm0, %v2031_v27 }
 0x301   : > { %3825 = vmatprep.mubr.msk.bf16.mxu1 %vm989_vm0, %v2033_v30 }
 0x308   : > { %3826 = vmatmul.mubr.msk.bf16.gmra.mxu1 %vm989_vm0, %v2033_v30 }
 0x309   : > { %3827 = vmatprep.mubr.msk.bf16.mxu1 %vm989_vm0, %v2035_v50 }
 0x310   : > { %v3709_v15 = vpop.f32.mrf.mxu1  ;;  %3828 = vmatmul.mubr.msk.bf16.gmra.mxu1 %vm989_vm0, %v2035_v50  ;;  %v2045_v50 = vpop.permute.xlu0 %2044 }
 0x311   : > { %3829 = vmatprep.mubr.msk.bf16.mxu1 %vm989_vm0, %v2037_v12 }
 0x312   : > { %v3710_v43 = vpop.f32.mrf.mxu1 }
 0x313   : > { %v5663_v0 = vadd.f32 %v3710_v43, %v3709_v15 }
 0x314   : > { %v3712_v20 = vpop.f32.mrf.mxu1 }
 0x315   : > { %6702 = vst [vmem:[#allocation42_spill] sm:$0xff] %v5663_v0 }
 0x316   : > { %v3713_v47 = vpop.f32.mrf.mxu1 }
 0x317   : > { %v5665_v18 = vadd.f32 %v3713_v47, %v3712_v20 }
 0x318   : > { %v3715_v8 = vpop.f32.mrf.mxu1  ;;  %3830 = vmatmul.mubr.msk.bf16.gmra.mxu1 %vm989_vm0, %v2037_v12 }
 0x319   : > { %6703 = vst [vmem:[#allocation16_spill] sm:$0xff] %v5665_v18  ;;  %3831 = vmatprep.mubr.msk.bf16.mxu1 %vm989_vm0, %v2039_v38  ;;  %v4474_v18 = vld [vmem:[%s5032_s30] sm:$0xff]  }
 0x31a   : > { %v3716_v23 = vpop.f32.mrf.mxu1 }
 0x31b   : > { %v5669_v14 = vadd.f32 %v3716_v23, %v3715_v8 }
 0x31c   : > { %v3718_v9 = vpop.f32.mrf.mxu1 }
 0x31d   : > { %6704 = vst [vmem:[#allocation35_spill] sm:$0xff] %v5669_v14 }
 0x31e   : > { %v3719_v13 = vpop.f32.mrf.mxu1 }
 0x31f   : > { %v5671_v28 = vadd.f32 %v3719_v13, %v3718_v9 }
 0x320   : > { %v3721_v56 = vpop.f32.mrf.mxu1  ;;  %3832 = vmatmul.mubr.msk.bf16.gmra.mxu1 %vm989_vm0, %v2039_v38  ;;  %v2047_v38 = vpop.permute.xlu1 %2046 }
 0x321   : > { %6705 = vst [vmem:[#allocation36_spill] sm:$0xff] %v5671_v28  ;;  %3833 = vmatprep.mubr.msk.bf16.mxu1 %vm989_vm0, %v2041_v45 }
 0x322   : > { %v3722_v37 = vpop.f32.mrf.mxu1 }
 0x323   : > { %v5675_v10 = vadd.f32 %v3722_v37, %v3721_v56 }
 0x324   : > { %v5677_v59 = vpop.f32.mrf.mxu1 }
 0x325   : > { %6706 = vst [vmem:[#allocation11_spill] sm:$0xff] %v5675_v10  ;;  %6707 = vst [vmem:[#allocation18_spill] sm:$0xff] %v5677_v59 }
 0x326   : > { %v5679_v29 = vpop.f32.mrf.mxu1 }
 0x327   : > { %6708 = vst [vmem:[#allocation39_spill] sm:$0xff] %v5679_v29 }
 0x328   : > { %v3727_v6 = vpop.f32.mrf.mxu1  ;;  %3834 = vmatmul.mubr.msk.bf16.gmra.mxu1 %vm989_vm0, %v2041_v45 }
 0x329   : > { %3835 = vmatprep.mubr.msk.bf16.mxu1 %vm989_vm0, %v2043_v7 }
 0x32a   : > { %v3728_v1 = vpop.f32.mrf.mxu1 }
 0x32b   : > { %v5683_v17 = vadd.f32 %v3728_v1, %v3727_v6 }
 0x32c   : > { %v5685_v27 = vpop.f32.mrf.mxu1 }
 0x32d   : > { %6709 = vst [vmem:[#allocation40_spill] sm:$0xff] %v5683_v17  ;;  %6710 = vst [vmem:[#allocation13_spill] sm:$0xff] %v5685_v27 }
 0x32e   : > { %v5687_v30 = vpop.f32.mrf.mxu1 }
 0x32f   : > { %6711 = vst [vmem:[#allocation45_spill] sm:$0xff] %v5687_v30 }
 0x330   : > { %v3733_v12 = vpop.f32.mrf.mxu1  ;;  %3836 = vmatmul.mubr.msk.bf16.gmra.mxu1 %vm989_vm0, %v2043_v7 }
 0x331   : > { %3837 = vmatprep.mubr.msk.bf16.mxu1 %vm989_vm0, %v2045_v50 }
 0x332   : > { %v3734_v15 = vpop.f32.mrf.mxu1 }
 0x333   : > { %v5691_v43 = vadd.f32 %v3734_v15, %v3733_v12 }
 0x334   : > { %v3736_v20 = vpop.f32.mrf.mxu1 }
 0x335   : > { %6712 = vst [vmem:[#allocation46_spill] sm:$0xff] %v5691_v43 }
 0x336   : > { %v3737_v47 = vpop.f32.mrf.mxu1 }
 0x337   : > { %v5693_v8 = vadd.f32 %v3737_v47, %v3736_v20 }
 0x338   : > { %v3739_v23 = vpop.f32.mrf.mxu1  ;;  %3838 = vmatmul.mubr.msk.bf16.gmra.mxu1 %vm989_vm0, %v2045_v50 }
 0x339   : > { %6713 = vst [vmem:[#allocation20_spill] sm:$0xff] %v5693_v8  ;;  %3839 = vmatprep.mubr.msk.bf16.mxu1 %vm989_vm0, %v2047_v38  ;;  %v2816_v8 = vpop.permute.xlu0 %2815 }
 0x33a   : > { %v3740_v9 = vpop.f32.mrf.mxu1  ;;  %3841 = vmatprep.subr.bf16.mxu0 %v2816_v8  ;;  %3953 = vmatprep.subr.bf16.mxu1 %v2816_v8 }
 0x33b   : > { %v5697_v13 = vadd.f32 %v3740_v9, %v3739_v23 }
 0x33c   : > { %v3742_v45 = vpop.f32.mrf.mxu1 }
 0x33d   : > { %6714 = vst [vmem:[#allocation43_spill] sm:$0xff] %v5697_v13 }
 0x33e   : > { %v3743_v56 = vpop.f32.mrf.mxu1 }
 0x33f   : > { %v5699_v37 = vadd.f32 %v3743_v56, %v3742_v45 }
 0x340   : > { %v3745_v7 = vpop.f32.mrf.mxu1  ;;  %3840 = vmatmul.mubr.msk.bf16.gmra.mxu1 %vm989_vm0, %v2047_v38 }
 0x341   : > { %6715 = vst [vmem:[#allocation44_spill] sm:$0xff] %v5699_v37 }
 0x342   : > { %v3746_v6 = vpop.f32.mrf.mxu1 }
 0x343   : > { %v5702_v1 = vadd.f32 %v3746_v6, %v3745_v7  ;;  %v2800_v7 = vpop.permute.xlu1 %2799 }
 0x344   : > { %v3748_v12 = vpop.f32.mrf.mxu1  ;;  %3842 = vmatpush3.bf16.msra.mxu0 %v2800_v7  ;;  %3961 = vmatpush3.bf16.msra.mxu1 %v2800_v7 }
 0x345   : > { %6716 = vst [vmem:[#allocation15_spill] sm:$0xff] %v5702_v1 }
 0x346   : > { %v3749_v15 = vpop.f32.mrf.mxu1 }
 0x347   : > { %v5704_v20 = vadd.f32 %v3749_v15, %v3748_v12 }
 0x348   : > { %v3751_v50 = vpop.f32.mrf.mxu1 }
 0x349   : > { %6717 = vst [vmem:[#allocation22_spill] sm:$0xff] %v5704_v20 }
 0x34a   : > { %v3752_v47 = vpop.f32.mrf.mxu1 }
 0x34b   : > { %v5706_v43 = vadd.f32 %v3752_v47, %v3751_v50  ;;  %v2814_v50 = vpop.permute.xlu0 %2813  ;;  %v2798_v47 = vpop.permute.xlu1 %2797 }
 0x34c   : > { %v3754_v23 = vpop.f32.mrf.mxu1  ;;  %3843 = vmatprep.subr.bf16.mxu0 %v2814_v50  ;;  %3954 = vmatprep.subr.bf16.mxu1 %v2814_v50 }
 0x34d   : > { %6718 = vst [vmem:[#allocation47_spill] sm:$0xff] %v5706_v43  ;;  %3844 = vmatpush3.bf16.msra.mxu0 %v2798_v47  ;;  %3962 = vmatpush3.bf16.msra.mxu1 %v2798_v47 }
 0x34e   : > { %v3755_v9 = vpop.f32.mrf.mxu1 }
 0x34f   : > { %v5708_v13 = vadd.f32 %v3755_v9, %v3754_v23 }
 0x350   : > { %v3757_v45 = vpop.f32.mrf.mxu1 }
 0x351   : > { %6719 = vst [vmem:[#allocation48_spill] sm:$0xff] %v5708_v13 }
 0x352   : > { %v3758_v56 = vpop.f32.mrf.mxu1 }
 0x353   : > { %v5710_v37 = vadd.f32 %v3758_v56, %v3757_v45  ;;  %v2812_v56 = vpop.permute.xlu0 %2811 }
 0x354   : > { %v3760_v38 = vpop.f32.mrf.mxu1  ;;  %3845 = vmatprep.subr.bf16.mxu0 %v2812_v56  ;;  %3955 = vmatprep.subr.bf16.mxu1 %v2812_v56 }
 0x355   : > { %6720 = vst [vmem:[#allocation17_spill] sm:$0xff] %v5710_v37  ;;  %v2796_v37 = vpop.permute.xlu1 %2795 }
 0x356   : > { %v3761_v6 = vpop.f32.mrf.mxu1  ;;  %3846 = vmatpush3.bf16.msra.mxu0 %v2796_v37  ;;  %3963 = vmatpush3.bf16.msra.mxu1 %v2796_v37 }
 0x357   : > { %v5712_v12 = vadd.f32 %v3761_v6, %v3760_v38  ;;  %v2810_v6 = vpop.permute.xlu0 %2809 }
 0x358   : > { %v3763_v15 = vpop.f32.mrf.mxu1  ;;  %3847 = vmatprep.subr.bf16.mxu0 %v2810_v6  ;;  %3956 = vmatprep.subr.bf16.mxu1 %v2810_v6 }
 0x359   : > { %6721 = vst [vmem:[#allocation49_spill] sm:$0xff] %v5712_v12  ;;  %v2794_v12 = vpop.permute.xlu1 %2793 }
 0x35a   : > { %v3764_v23 = vpop.f32.mrf.mxu1  ;;  %3848 = vmatpush3.bf16.msra.mxu0 %v2794_v12  ;;  %3964 = vmatpush3.bf16.msra.mxu1 %v2794_v12 }
 0x35b   : > { %v5714_v9 = vadd.f32 %v3764_v23, %v3763_v15  ;;  %v2808_v23 = vpop.permute.xlu0 %2807 }
 0x35c   : > { %v3766_v45 = vpop.f32.mrf.mxu1  ;;  %3849 = vmatprep.subr.bf16.mxu0 %v2808_v23  ;;  %3957 = vmatprep.subr.bf16.mxu1 %v2808_v23 }
 0x35d   : > { %6722 = vst [vmem:[#allocation50_spill] sm:$0xff] %v5714_v9  ;;  %v2792_v9 = vpop.permute.xlu1 %2791 }
 0x35e   : > { %v3767_v8 = vpop.f32.mrf.mxu1  ;;  %3850 = vmatpush3.bf16.msra.mxu0 %v2792_v9  ;;  %3965 = vmatpush3.bf16.msra.mxu1 %v2792_v9 }
 0x35f   : > { %v5716_v38 = vadd.f32 %v3767_v8, %v3766_v45  ;;  %v2806_v8 = vpop.permute.xlu0 %2805 }
 0x360   : > { %v3769_v7 = vpop.f32.mrf.mxu1  ;;  %3851 = vmatprep.subr.bf16.mxu0 %v2806_v8  ;;  %3958 = vmatprep.subr.bf16.mxu1 %v2806_v8 }
 0x361   : > { %6723 = vst [vmem:[#allocation24_spill] sm:$0xff] %v5716_v38  ;;  %v2790_v38 = vpop.permute.xlu1 %2789 }
 0x362   : > { %v3770_v50 = vpop.f32.mrf.mxu1  ;;  %3852 = vmatpush3.bf16.msra.mxu0 %v2790_v38  ;;  %3966 = vmatpush3.bf16.msra.mxu1 %v2790_v38 }
 0x363   : > { %v5718_v15 = vadd.f32 %v3770_v50, %v3769_v7  ;;  %v2804_v50 = vpop.permute.xlu0 %2803 }
 0x364   : > { %v3772_v47 = vpop.f32.mrf.mxu1  ;;  %3853 = vmatprep.subr.bf16.mxu0 %v2804_v50  ;;  %3959 = vmatprep.subr.bf16.mxu1 %v2804_v50 }
 0x365   : > { %6724 = vst [vmem:[#allocation19_spill] sm:$0xff] %v5718_v15  ;;  %v2788_v15 = vpop.permute.xlu1 %2787 }
 0x366   : > { %v3773_v56 = vpop.f32.mrf.mxu1  ;;  %3854 = vmatpush3.bf16.msra.mxu0 %v2788_v15  ;;  %3967 = vmatpush3.bf16.msra.mxu1 %v2788_v15 }
 0x367   : > { %v5720_v37 = vadd.f32 %v3773_v56, %v3772_v47 }
 0x368   : > { %v3775_v45 = vpop.f32.mrf.mxu1 }
 0x369   : > { %6725 = vst [vmem:[#allocation51_spill] sm:$0xff] %v5720_v37 }
 0x36a   : > { %v3776_v6 = vpop.f32.mrf.mxu1 }
 0x36b   : > { %v5722_v12 = vadd.f32 %v3776_v6, %v3775_v45 }
 0x36c   : > { %v3778_v7 = vpop.f32.mrf.mxu1 }
 0x36d   : > { %6726 = vst [vmem:[#allocation52_spill] sm:$0xff] %v5722_v12 }
 0x36e   : > { %v3779_v23 = vpop.f32.mrf.mxu1 }
 0x36f   : > { %v5724_v9 = vadd.f32 %v3779_v23, %v3778_v7 }
 0x371   : > { %6727 = vst [vmem:[#allocation26_spill] sm:$0xff] %v5724_v9 }
 0x378   : > { %v3781_v47 = vpop.f32.mrf.mxu1 }
 0x37a   : > { %v3782_v56 = vpop.f32.mrf.mxu1 }
 0x37b   : > { %v5726_v37 = vadd.f32 %v3782_v56, %v3781_v47 }
 0x37c   : > { %v3784_v8 = vpop.f32.mrf.mxu1 }
 0x37d   : > { %6728 = vst [vmem:[#allocation21_spill] sm:$0xff] %v5726_v37 }
 0x37e   : > { %v3785_v43 = vpop.f32.mrf.mxu1 }
 0x37f   : > { %v5728_v13 = vadd.f32 %v3785_v43, %v3784_v8 }
 0x380   : > { %v3787_v38 = vpop.f32.mrf.mxu1 }
 0x381   : > { %6729 = vst [vmem:[#allocation53_spill] sm:$0xff] %v5728_v13 }
 0x382   : > { %v3788_v45 = vpop.f32.mrf.mxu1 }
 0x383   : > { %v5730_v6 = vadd.f32 %v3788_v45, %v3787_v38 }
 0x384   : > { %v3790_v12 = vpop.f32.mrf.mxu1 }
 0x385   : > { %6730 = vst [vmem:[#allocation54_spill] sm:$0xff] %v5730_v6 }
 0x386   : > { %v3791_v1 = vpop.f32.mrf.mxu1 }
 0x387   : > { %v5732_v50 = vadd.f32 %v3791_v1, %v3790_v12 }
 0x388   : > { %v5734_v20 = vpop.f32.mrf.mxu1 }
 0x389   : > { %6731 = vst [vmem:[#allocation23_spill] sm:$0xff] %v5732_v50 }
 0x38a   : > { %v5736_v15 = vpop.f32.mrf.mxu1 }
 0x38b   : > { %v2369_v7 = vmax.f32 %v5734_v20, %v5736_v15 }
 0x38c   : > { %v5740_v23 = vpop.f32.mrf.mxu1 }
 0x38d   : > { %2370 = vmax.xlane.f32.xlu0 %v2369_v7 }
 0x38e   : > { %v5742_v43 = vpop.f32.mrf.mxu1 }
 0x38f   : > { %v2372_v47 = vmax.f32 %v5740_v23, %v5742_v43 }
 0x390   : > { %v5746_v56 = vpop.f32.mrf.mxu1 }
 0x391   : > { %2373 = vmax.xlane.f32.xlu1 %v2372_v47 }
 0x392   : > { %v5748_v1 = vpop.f32.mrf.mxu1 }
 0x393   : > { %v2375_v12 = vmax.f32 %v5746_v56, %v5748_v1 }
 0x394   : > { %v5752_v8 = vpop.f32.mrf.mxu1 }
 0x395   : > { %2376 = vmax.xlane.f32.xlu0 %v2375_v12 }
 0x396   : > { %v5754_v38 = vpop.f32.mrf.mxu1 }
 0x397   : > { %v2378_v45 = vmax.f32 %v5752_v8, %v5754_v38 }
 0x398   : > { %v5758_v7 = vpop.f32.mrf.mxu1 }
 0x399   : > { %2379 = vmax.xlane.f32.xlu1 %v2378_v45 }
 0x39a   : > { %v5760_v6 = vpop.f32.mrf.mxu1 }
 0x39b   : > { %v2381_v47 = vmax.f32 %v5758_v7, %v5760_v6 }
 0x39c   : > { %v5764_v50 = vpop.f32.mrf.mxu1 }
 0x39d   : > { %2382 = vmax.xlane.f32.xlu0 %v2381_v47 }
 0x39e   : > { %v5766_v37 = vpop.f32.mrf.mxu1 }
 0x39f   : > { %v2384_v12 = vmax.f32 %v5764_v50, %v5766_v37 }
 0x3a0   : > { %v5770_v13 = vpop.f32.mrf.mxu1 }
 0x3a1   : > { %6732 = vst [vmem:[#allocation25_spill] sm:$0xff] %v5770_v13  ;;  %2385 = vmax.xlane.f32.xlu1 %v2384_v12 }
 0x3a2   : > { %v5772_v9 = vpop.f32.mrf.mxu1 }
 0x3a3   : > { %v2387_v45 = vmax.f32 %v5770_v13, %v5772_v9 }
 0x3a4   : > { %v5776_v17 = vpop.f32.mrf.mxu1 }
 0x3a5   : > { %6733 = vst [vmem:[#allocation56_spill] sm:$0xff] %v5776_v17  ;;  %2388 = vmax.xlane.f32.xlu0 %v2387_v45 }
 0x3a6   : > { %v5778_v30 = vpop.f32.mrf.mxu1 }
 0x3a7   : > { %6734 = vst [vmem:[#allocation57_spill] sm:$0xff] %v5778_v30  ;;  %v2390_v47 = vmax.f32 %v5776_v17, %v5778_v30 }
 0x3a8   : > { %v5782_v27 = vpop.f32.mrf.mxu1 }
 0x3a9   : > { %6735 = vst [vmem:[#allocation58_spill] sm:$0xff] %v5782_v27  ;;  %2391 = vmax.xlane.f32.xlu1 %v2390_v47 }
 0x3aa   : > { %v5784_v10 = vpop.f32.mrf.mxu1 }
 0x3ab   : > { %6736 = vst [vmem:[#allocation59_spill] sm:$0xff] %v5784_v10  ;;  %v2393_v61 = vmax.f32 %v5782_v27, %v5784_v10 }
 0x3ac   : > { %v5786_v12 = vpop.f32.mrf.mxu1 }
 0x3ae   : > { %v5788_v29 = vpop.f32.mrf.mxu1 }
 0x3af   : > { %6737 = vst [vmem:[#allocation60_spill] sm:$0xff] %v5788_v29  ;;  %v2396_v17 = vmax.f32 %v5786_v12, %v5788_v29 }
 0x3b0   : > { %v5790_v59 = vpop.f32.mrf.mxu1 }
 0x3b2   : > { %v5792_v14 = vpop.f32.mrf.mxu1 }
 0x3b3   : > { %6738 = vst [vmem:[#allocation61_spill] sm:$0xff] %v5792_v14  ;;  %v2399_v52 = vmax.f32 %v5790_v59, %v5792_v14 }
 0x3b4   : > { %v5794_v45 = vpop.f32.mrf.mxu1 }
 0x3b5   : > { %6739 = vst [vmem:[#allocation62_spill] sm:$0xff] %v5794_v45 }
 0x3b6   : > { %v5796_v28 = vpop.f32.mrf.mxu1 }
 0x3b7   : > { %6740 = vst [vmem:[#allocation63_spill] sm:$0xff] %v5796_v28  ;;  %v2402_v10 = vmax.f32 %v5794_v45, %v5796_v28 }
 0x3b8   : > { %v5798_v0 = vpop.f32.mrf.mxu1 }
 0x3b9   : > { %6741 = vst [vmem:[#allocation64_spill] sm:$0xff] %v5798_v0 }
 0x3ba   : > { %2785 = vrot.lane.b32.xlu1 %v4474_v18, %s4532_s29  ;;  %v5802_v47 = vpop.f32.mrf.mxu1 }
 0x3bb   : > { %6742 = vst [vmem:[#allocation65_spill] sm:$0xff] %v5802_v47  ;;  %2801 = vrot.lane.b32.xlu0 %v4475_v42, %s4532_s29 }
 0x3bc   : > { %v5806_v4 = vpop.f32.mrf.mxu1 }
 0x3be   : > { %v5808_v32 = vpop.f32.mrf.mxu1 }
 0x3c0   : > { %v5810_v33 = vpop.f32.mrf.mxu1 }
 0x3c2   : > { %v5812_v36 = vpop.f32.mrf.mxu1 }
 0x3c3   : > { %6743 = vst [vmem:[#allocation66_spill] sm:$0xff] %v5812_v36 }
 0x3c4   : > { %v5814_v46 = vpop.f32.mrf.mxu1 }
 0x3c6   : > { %v5816_v26 = vpop.f32.mrf.mxu1 }
 0x3c8   : > { %v5818_v53 = vpop.f32.mrf.mxu1 }
 0x3ca   : > { %v5820_v18 = vpop.f32.mrf.mxu1 }
 0x3cb   : > { %6744 = vst [vmem:[#allocation67_spill] sm:$0xff] %v5820_v18 }
 0x3cc   : > { %v5822_v41 = vpop.f32.mrf.mxu1 }
 0x3ce   : > { %v5824_v35 = vpop.f32.mrf.mxu1 }
 0x3cf   : > { %6745 = vst [vmem:[#allocation68_spill] sm:$0xff] %v5824_v35  ;;  %v2420_v28 = vmax.f32 %v5822_v41, %v5824_v35 }
 0x3d0   : > { %v5826_v42 = vpop.f32.mrf.mxu1 }
 0x3d1   : > { %6746 = vst [vmem:[#allocation69_spill] sm:$0xff] %v5826_v42 }
 0x3d2   : > { %v5828_v25 = vpop.f32.mrf.mxu1 }
 0x3d3   : > { %6747 = vst [vmem:[#allocation70_spill] sm:$0xff] %v5828_v25 }
 0x3d4   : > { %v5830_v44 = vpop.f32.mrf.mxu1 }
 0x3d6   : > { %v5832_v22 = vpop.f32.mrf.mxu1 }
 0x3d7   : > { %6748 = vst [vmem:[#allocation71_spill] sm:$0xff] %v5832_v22 }
 0x3d8   : > { %v5834_v34 = vpop.f32.mrf.mxu1 }
 0x3d9   : > { %6749 = vst [vmem:[#allocation72_spill] sm:$0xff] %v5834_v34 }
 0x3da   : > { %2394 = vmax.xlane.f32.xlu0 %v2393_v61  ;;  %v5838_v13 = vpop.f32.mrf.mxu1  ;;  %v2408_v61 = vmax.f32 %v5806_v4, %v5808_v32 }
 0x3db   : > { %6750 = vst [vmem:[#allocation73_spill] sm:$0xff] %v5838_v13 }
 0x3dc   : > { %v5840_v2 = vpop.f32.mrf.mxu1 }
 0x3de   : > { %2397 = vmax.xlane.f32.xlu1 %v2396_v17  ;;  %2400 = vmax.xlane.f32.xlu0 %v2399_v52  ;;  %v5846_v19 = vpop.f32.mrf.mxu1  ;;  %v2405_v17 = vmax.f32 %v5798_v0, %v5802_v47  ;;  %v2414_v52 = vmax.f32 %v5814_v46, %v5816_v26 }
 0x3df   : > { %v2432_v35 = vmax.f32 %v5840_v2, %v5846_v19 }
 0x3e0   : > { %v5848_v30 = vpop.f32.mrf.mxu1 }
 0x3e1   : > { %6751 = vst [vmem:[#allocation74_spill] sm:$0xff] %v5848_v30 }
 0x3e2   : > { %2403 = vmax.xlane.f32.xlu0 %v2402_v10  ;;  %2409 = vmax.xlane.f32.xlu1 %v2408_v61  ;;  %v5854_v27 = vpop.f32.mrf.mxu1  ;;  %v2411_v10 = vmax.f32 %v5810_v33, %v5812_v36  ;;  %v2426_v61 = vmax.f32 %v5830_v44, %v5832_v22 }
 0x3e3   : > { %6752 = vst [vmem:[#allocation75_spill] sm:$0xff] %v5854_v27 }
 0x3e4   : > { %v5856_v29 = vpop.f32.mrf.mxu1 }
 0x3e6   : > { %2406 = vmax.xlane.f32.xlu0 %v2405_v17  ;;  %2415 = vmax.xlane.f32.xlu1 %v2414_v52  ;;  %v5862_v14 = vpop.f32.mrf.mxu1  ;;  %v2417_v17 = vmax.f32 %v5818_v53, %v5820_v18  ;;  %v2423_v52 = vmax.f32 %v5826_v42, %v5828_v25 }
 0x3e8   : > { %v5866_v45 = vpop.f32.mrf.mxu1 }
 0x3e9   : > { %6753 = vst [vmem:[#allocation76_spill] sm:$0xff] %v5866_v45 }
 0x3ea   : > { %2412 = vmax.xlane.f32.xlu0 %v2411_v10  ;;  %2421 = vmax.xlane.f32.xlu1 %v2420_v28  ;;  %v5872_v47 = vpop.f32.mrf.mxu1  ;;  %v2429_v28 = vmax.f32 %v5834_v34, %v5838_v13  ;;  %v2438_v10 = vmax.f32 %v5856_v29, %v5862_v14 }
 0x3eb   : > { %6754 = vst [vmem:[#allocation77_spill] sm:$0xff] %v5872_v47 }
 0x3ec   : > { %v5874_v0 = vpop.f32.mrf.mxu1 }
 0x3ee   : > { %2418 = vmax.xlane.f32.xlu0 %v2417_v17  ;;  %2427 = vmax.xlane.f32.xlu1 %v2426_v61  ;;  %v5882_v36 = vpop.f32.mrf.mxu1  ;;  %v2435_v17 = vmax.f32 %v5848_v30, %v5854_v27 }
 0x3ef   : > { %v2444_v61 = vmax.f32 %v5874_v0, %v5882_v36 }
 0x3f0   : > { %v5884_v22 = vpop.f32.mrf.mxu1 }
 0x3f2   : > { %2424 = vmax.xlane.f32.xlu0 %v2423_v52  ;;  %2433 = vmax.xlane.f32.xlu1 %v2432_v35  ;;  %v5890_v18 = vpop.f32.mrf.mxu1  ;;  %v2441_v52 = vmax.f32 %v5866_v45, %v5872_v47 }
 0x3f4   : > { %v5892_v25 = vpop.f32.mrf.mxu1 }
 0x3f6   : > { %2430 = vmax.xlane.f32.xlu0 %v2429_v28  ;;  %2439 = vmax.xlane.f32.xlu1 %v2438_v10  ;;  %v5898_v42 = vpop.f32.mrf.mxu1 }
 0x3f7   : > { %v2450_v47 = vmax.f32 %v5892_v25, %v5898_v42 }
 0x3f8   : > { %v5900_v13 = vpop.f32.mrf.mxu1 }
 0x3f9   : > { %6755 = vst [vmem:[#allocation78_spill] sm:$0xff] %v5900_v13 }
 0x3fa   : > { %2436 = vmax.xlane.f32.xlu0 %v2435_v17  ;;  %2445 = vmax.xlane.f32.xlu1 %v2444_v61  ;;  %v5904_v35 = vpop.f32.mrf.mxu1  ;;  %v2447_v17 = vmax.f32 %v5884_v22, %v5890_v18 }
 0x3fb   : > { %6756 = vst [vmem:[#allocation79_spill] sm:$0xff] %v5904_v35  ;;  %v2453_v27 = vmax.f32 %v5900_v13, %v5904_v35 }
 0x3fc   : > { %v5906_v34 = vpop.f32.mrf.mxu1 }
 0x3fe   : > { %2442 = vmax.xlane.f32.xlu0 %v2441_v52  ;;  %v5910_v30 = vpop.f32.mrf.mxu1 }
 0x3ff   : > { %v2456_v28 = vmax.f32 %v5906_v34, %v5910_v30 }
 0x400   : > { %v5914_v10 = vpop.f32.mrf.mxu1 }
 0x401   : > { %2457 = vmax.xlane.f32.xlu1 %v2456_v28  ;;  %v6757_v28 = vld [vmem:[#allocation55_spill] sm:$0xff] }
 0x402   : > { %2454 = vmax.xlane.f32.xlu0 %v2453_v27  ;;  %v5920_v61 = vpop.f32.mrf.mxu1 }
 0x403   : > { %v2459_v52 = vmax.f32 %v5914_v10, %v5920_v61 }
 0x404   : > { %v5922_v45 = vpop.f32.mrf.mxu1 }
 0x405   : > { %2451 = vmax.xlane.f32.xlu1 %v2450_v47 }
 0x406   : > { %2448 = vmax.xlane.f32.xlu0 %v2447_v17  ;;  %v5926_v35 = vpop.f32.mrf.mxu1 }
 0x407   : > { %v2462_v13 = vmax.f32 %v5922_v45, %v5926_v35 }
 0x409   : > { %2463 = vmax.xlane.f32.xlu1 %v2462_v13 }
 0x40a   : > { %2460 = vmax.xlane.f32.xlu0 %v2459_v52 }
 0x40d   : > { %1571 = vadd.xlane.f32.xlu1 %v5317_v62 }
 0x40e   : > { %1568 = vadd.xlane.f32.xlu0 %v6757_v28 }
 0x411   : > { %1577 = vadd.xlane.f32.xlu1 %v5329_v24 }
 0x412   : > { %1574 = vadd.xlane.f32.xlu0 %v5323_v5 }
 0x415   : > { %1583 = vadd.xlane.f32.xlu1 %v5343_v49 }
 0x416   : > { %1580 = vadd.xlane.f32.xlu0 %v5442_v39  ;;  %v2371_v27 = vpop.xlane.xlu0 %2370 }
 0x417   : > { %v2466_v47 = vsub.f32 %v5736_v15, %v2371_v27  ;;  %v2465_v49 = vsub.f32 %v5734_v20, %v2371_v27 }
 0x419   : > { %1589 = vadd.xlane.f32.xlu1 %v5361_v21  ;;  %v2531_v13 = vmul.f32 1.442695, %v2466_v47 }
 0x41a   : > { %v2374_v17 = vpop.xlane.xlu1 %2373  ;;  %1586 = vadd.xlane.f32.xlu0 %v5465_v16 }
 0x41b   : > { %v2468_v62 = vsub.f32 %v5742_v43, %v2374_v17  ;;  %4218 = vpow2.f32 %v2531_v13  ;;  %v2467_v5 = vsub.f32 %v5740_v23, %v2374_v17  ;;  %v6758_v17 = vld [vmem:[#allocation57_spill] sm:$0xff] }
 0x41d   : > { %v2535_v52 = vmul.f32 1.442695, %v2468_v62  ;;  %1595 = vadd.xlane.f32.xlu1 %v5382_v48  ;;  %v2533_v15 = vmul.f32 1.442695, %v2467_v5  ;;  %v6759_v5 = vld [vmem:[#allocation27_spill] sm:$0xff] }
 0x41e   : > { %1592 = vadd.xlane.f32.xlu0 %v5472_v40  ;;  %v2377_v24 = vpop.xlane.xlu0 %2376  ;;  %v2529_v40 = vmul.f32 1.442695, %v2465_v49 }
 0x41f   : > { %4220 = vpow2.f32 %v2535_v52  ;;  %v2470_v39 = vsub.f32 %v5748_v1, %v2377_v24 }
 0x420   : > { %4222 = vpow2.f32 %v2533_v15 }
 0x421   : > { %1601 = vadd.xlane.f32.xlu1 %v5406_v63  ;;  %v2539_v23 = vmul.f32 1.442695, %v2470_v39 }
 0x422   : > { %v2380_v21 = vpop.xlane.xlu1 %2379  ;;  %1598 = vadd.xlane.f32.xlu0 %v5499_v11  ;;  %v2469_v11 = vsub.f32 %v5746_v56, %v2377_v24 }
 0x423   : > { %v2472_v16 = vsub.f32 %v5754_v38, %v2380_v21  ;;  %v2471_v63 = vsub.f32 %v5752_v8, %v2380_v21 }
 0x425   : > { %v2543_v48 = vmul.f32 1.442695, %v2472_v16  ;;  %1607 = vadd.xlane.f32.xlu1 %v5428_v3  ;;  %v2541_v38 = vmul.f32 1.442695, %v2471_v63 }
 0x426   : > { %1604 = vadd.xlane.f32.xlu0 %v5506_v31  ;;  %v2383_v43 = vpop.xlane.xlu0 %2382 }
 0x427   : > { %4224 = vpow2.f32 %v2543_v48  ;;  %v2474_v3 = vsub.f32 %v5760_v6, %v2383_v43  ;;  %v6762_v48 = vld [vmem:[#allocation6_spill] sm:$0xff] }
 0x428   : > { %4226 = vpow2.f32 %v2529_v40  ;;  %v5956_v31 = vpop.eup %4218 }
 0x429   : > { %1613 = vadd.xlane.f32.xlu1 %v5454_v51  ;;  %4228 = vpow2.f32 %v2539_v23  ;;  %v2537_v51 = vmul.f32 1.442695, %v2469_v11  ;;  %v2547_v27 = vmul.f32 1.442695, %v2474_v3  ;;  %v6763_v23 = vld [vmem:[#allocation25_spill] sm:$0xff]  ;;  %v6765_v3 = vld [vmem:[#allocation30_spill] sm:$0xff] }
 0x42a   : > { %v2386_v20 = vpop.xlane.xlu1 %2385  ;;  %1610 = vadd.xlane.f32.xlu0 %v5537_v55  ;;  %4230 = vpow2.f32 %v2541_v38 }
 0x42b   : > { %v2476_v1 = vsub.f32 %v5766_v37, %v2386_v20  ;;  %v2475_v6 = vsub.f32 %v5764_v50, %v2386_v20  ;;  %v2473_v37 = vsub.f32 %v5758_v7, %v2383_v43  ;;  %v6760_v7 = vld [vmem:[#allocation28_spill] sm:$0xff]  ;;  %v6764_v43 = vld [vmem:[#allocation10_spill] sm:$0xff] }
 0x42c   : > { %v5958_v28 = vpop.eup %4220 }
 0x42d   : > { %v2551_v8 = vmul.f32 1.442695, %v2476_v1  ;;  %1619 = vadd.xlane.f32.xlu1 %v5488_v60  ;;  %v2754_v55 = vpack.c.bf16 %v5958_v28, %v5956_v31  ;;  %v2549_v62 = vmul.f32 1.442695, %v2475_v6  ;;  %v4223_v50 = vpop.eup %4222  ;;  %v2545_v24 = vmul.f32 1.442695, %v2473_v37 }
 0x42e   : > { %1616 = vadd.xlane.f32.xlu0 %v5547_v58  ;;  %v2389_v56 = vpop.xlane.xlu0 %2388  ;;  %v6767_v6 = vld [vmem:[#allocation37_spill] sm:$0xff]  ;;  %v6768_v37 = vld [vmem:[#allocation7_spill] sm:$0xff] }
 0x42f   : > { %2865 = vmatprep.mubr.bf16.mxu0 %v2754_v55  ;;  %4232 = vpow2.f32 %v2551_v8  ;;  %v2478_v58 = vsub.f32 %v5772_v9, %v2389_v56  ;;  %v6761_v9 = vld [vmem:[#allocation56_spill] sm:$0xff]  ;;  %v2477_v63 = vsub.f32 %v6763_v23, %v2389_v56  ;;  %v6766_v8 = vld [vmem:[#allocation29_spill] sm:$0xff] }
 0x430   : > { %4234 = vpow2.f32 %v2537_v51 }
 0x431   : > { %1625 = vadd.xlane.f32.xlu1 %v5523_v54  ;;  %4236 = vpow2.f32 %v2547_v27  ;;  %v2553_v38 = vmul.f32 1.442695, %v2477_v63 }
 0x432   : > { %v2392_v47 = vpop.xlane.xlu1 %2391  ;;  %1622 = vadd.xlane.f32.xlu0 %v5571_v57  ;;  %v2802_v60 = vpop.permute.xlu0 %2801  ;;  %v2555_v57 = vmul.f32 1.442695, %v2478_v58  ;;  %4238 = vpow2.f32 %v2549_v62 }
 0x433   : > { %v2480_v13 = vsub.f32 %v6758_v17, %v2392_v47  ;;  %3855 = vmatprep.subr.bf16.mxu0 %v2802_v60  ;;  %3960 = vmatprep.subr.bf16.mxu1 %v2802_v60  ;;  %v2479_v16 = vsub.f32 %v6761_v9, %v2392_v47  ;;  %v6769_v60 = vld [vmem:[#allocation12_spill] sm:$0xff]  ;;  %v6770_v17 = vld [vmem:[#allocation38_spill] sm:$0xff] }
 0x434   : > { %v4225_v54 = vpop.eup %4224 }
 0x435   : > { %v2559_v52 = vmul.f32 1.442695, %v2480_v13  ;;  %1631 = vadd.xlane.f32.xlu1 %v6759_v5  ;;  %v4227_v21 = vpop.eup %4226  ;;  %v2557_v11 = vmul.f32 1.442695, %v2479_v16  ;;  %v6771_v5 = vld [vmem:[#allocation32_spill] sm:$0xff] }
 0x436   : > { %v2786_v49 = vpop.permute.xlu1 %2785  ;;  %1628 = vadd.xlane.f32.xlu0 %v6760_v7  ;;  %v4229_v39 = vpop.eup %4228  ;;  %v2753_v15 = vpack.c.bf16 %v4223_v50, %v4227_v21  ;;  %v2660_v7 = vadd.f32 %v4223_v50, %v5958_v28 }
 0x437   : > { %3856 = vmatpush3.bf16.msra.mxu0 %v2786_v49  ;;  %3968 = vmatpush3.bf16.msra.mxu1 %v2786_v49  ;;  %4240 = vpow2.f32 %v2559_v52  ;;  %v2756_v40 = vpack.c.bf16 %v4225_v54, %v4229_v39  ;;  %v4231_v20 = vpop.eup %4230  ;;  %v6772_v49 = vld [vmem:[#allocation31_spill] sm:$0xff] }
 0x438   : > { %4242 = vpow2.f32 %v2545_v24 }
 0x439   : > { %1637 = vadd.xlane.f32.xlu1 %v6762_v48  ;;  %4244 = vpow2.f32 %v2555_v57  ;;  %v2657_v57 = vadd.f32 %v4227_v21, %v5956_v31  ;;  %v6773_v31 = vld [vmem:[#allocation58_spill] sm:$0xff]  ;;  %v6774_v21 = vld [vmem:[#allocation59_spill] sm:$0xff] }
 0x43a   : > { %1634 = vadd.xlane.f32.xlu0 %v6764_v43  ;;  %2866 = vmatmul.mubr.bf16.vlgmr.msra.gmra.mxu0 %v2753_v15  ;;  %4246 = vpow2.f32 %v2557_v11  ;;  %v2666_v15 = vadd.f32 %v4231_v20, %v4225_v54 }
 0x43b   : > { %2873 = vmatprep.mubr.bf16.mxu0 %v2756_v40  ;;  %4248 = vpow2.f32 %v2553_v38 }
 0x43c   : > { %v4233_v1 = vpop.eup %4232 }
 0x43d   : > { %1643 = vadd.xlane.f32.xlu1 %v6765_v3  ;;  %v4235_v51 = vpop.eup %4234 }
 0x43e   : > { %1640 = vadd.xlane.f32.xlu0 %v6766_v8  ;;  %v4237_v55 = vpop.eup %4236  ;;  %v2755_v27 = vpack.c.bf16 %v4231_v20, %v4235_v51  ;;  %v2663_v48 = vadd.f32 %v4235_v51, %v4229_v39 }
 0x43f   : > { %v2758_v56 = vpack.c.bf16 %v4233_v1, %v4237_v55  ;;  %v4239_v47 = vpop.eup %4238 }
 0x440   : > { %v2672_v23 = vadd.f32 %v4239_v47, %v4233_v1  ;;  %v6775_v1 = vld [vmem:[#allocation60_spill] sm:$0xff] }
 0x441   : > { %1649 = vadd.xlane.f32.xlu1 %v6767_v6 }
 0x442   : > { %1646 = vadd.xlane.f32.xlu0 %v6768_v37  ;;  %2874 = vmatmul.mubr.bf16.gmra.mxu0 %v2755_v27  ;;  %v6776_v27 = vld [vmem:[#allocation61_spill] sm:$0xff] }
 0x443   : > { %2881 = vmatprep.mubr.bf16.mxu0 %v2758_v56 }
 0x444   : > { %v4241_v58 = vpop.eup %4240 }
 0x445   : > { %1655 = vadd.xlane.f32.xlu1 %v6769_v60  ;;  %v4243_v13 = vpop.eup %4242 }
 0x446   : > { %1652 = vadd.xlane.f32.xlu0 %v6770_v17  ;;  %v4245_v62 = vpop.eup %4244  ;;  %v2757_v52 = vpack.c.bf16 %v4239_v47, %v4243_v13  ;;  %v2669_v63 = vadd.f32 %v4243_v13, %v4237_v55 }
 0x447   : > { %v2760_v24 = vpack.c.bf16 %v4241_v58, %v4245_v62  ;;  %v4247_v9 = vpop.eup %4246 }
 0x448   : > { %v4249_v16 = vpop.eup %4248  ;;  %v2678_v43 = vadd.f32 %v4247_v9, %v4241_v58 }
 0x449   : > { %1661 = vadd.xlane.f32.xlu1 %v6771_v5  ;;  %v2759_v40 = vpack.c.bf16 %v4247_v9, %v4249_v16  ;;  %v2675_v11 = vadd.f32 %v4249_v16, %v4245_v62  ;;  %v6778_v5 = vld [vmem:[#allocation63_spill] sm:$0xff] }
 0x44a   : > { %1658 = vadd.xlane.f32.xlu0 %v6772_v49  ;;  %2882 = vmatmul.mubr.bf16.gmra.mxu0 %v2757_v52  ;;  %v6777_v52 = vld [vmem:[#allocation62_spill] sm:$0xff] }
 0x44b   : > { %2889 = vmatprep.mubr.bf16.mxu0 %v2760_v24 }
 0x44d   : > { %2661 = vadd.xlane.f32.xlu1 %v2660_v7 }
 0x44e   : > { %2658 = vadd.xlane.f32.xlu0 %v2657_v57 }
 0x451   : > { %2667 = vadd.xlane.f32.xlu1 %v2666_v15 }
 0x452   : > { %2664 = vadd.xlane.f32.xlu0 %v2663_v48  ;;  %2890 = vmatmul.mubr.bf16.gmra.mxu0 %v2759_v40  ;;  %v6779_v48 = vld [vmem:[#allocation64_spill] sm:$0xff]  ;;  %v6780_v40 = vld [vmem:[#allocation65_spill] sm:$0xff] }
 0x455   : > { %2673 = vadd.xlane.f32.xlu1 %v2672_v23 }
 0x456   : > { %2670 = vadd.xlane.f32.xlu0 %v2669_v63 }
 0x459   : > { %2679 = vadd.xlane.f32.xlu1 %v2678_v43 }
 0x45a   : > { %2676 = vadd.xlane.f32.xlu0 %v2675_v11 }
 0x463   : > { %v2395_v28 = vpop.xlane.xlu0 %2394 }
 0x464   : > { %v2481_v50 = vsub.f32 %v6773_v31, %v2395_v28  ;;  %v2482_v3 = vsub.f32 %v6774_v21, %v2395_v28 }
 0x466   : > { %v2561_v38 = vmul.f32 1.442695, %v2481_v50  ;;  %v2563_v54 = vmul.f32 1.442695, %v2482_v3  ;;  %v6781_v3 = vld [vmem:[#allocation68_spill] sm:$0xff] }
 0x467   : > { %v2398_v39 = vpop.xlane.xlu1 %2397  ;;  %v2401_v20 = vpop.xlane.xlu0 %2400 }
 0x468   : > { %4250 = vpow2.f32 %v2561_v38  ;;  %v2483_v8 = vsub.f32 %v5786_v12, %v2398_v39  ;;  %v2484_v51 = vsub.f32 %v6775_v1, %v2398_v39  ;;  %v2485_v55 = vsub.f32 %v5790_v59, %v2401_v20 }
 0x469   : > { %4252 = vpow2.f32 %v2563_v54  ;;  %v2486_v6 = vsub.f32 %v6776_v27, %v2401_v20  ;;  %v6782_v54 = vld [vmem:[#allocation66_spill] sm:$0xff] }
 0x46a   : > { %v2565_v56 = vmul.f32 1.442695, %v2483_v8  ;;  %v2567_v37 = vmul.f32 1.442695, %v2484_v51  ;;  %v2569_v47 = vmul.f32 1.442695, %v2485_v55 }
 0x46b   : > { %v2571_v60 = vmul.f32 1.442695, %v2486_v6  ;;  %v2410_v58 = vpop.xlane.xlu1 %2409  ;;  %v2404_v17 = vpop.xlane.xlu0 %2403 }
 0x46c   : > { %4254 = vpow2.f32 %v2565_v56  ;;  %v2491_v13 = vsub.f32 %v5806_v4, %v2410_v58  ;;  %v2492_v62 = vsub.f32 %v5808_v32, %v2410_v58  ;;  %v2487_v12 = vsub.f32 %v6777_v52, %v2404_v17  ;;  %v6784_v58 = vld [vmem:[#allocation67_spill] sm:$0xff] }
 0x46d   : > { %4256 = vpow2.f32 %v2567_v37  ;;  %v2488_v24 = vsub.f32 %v6778_v5, %v2404_v17  ;;  %v6783_v37 = vld [vmem:[#allocation71_spill] sm:$0xff] }
 0x46e   : > { %4258 = vpow2.f32 %v2569_v47  ;;  %v2581_v59 = vmul.f32 1.442695, %v2491_v13  ;;  %v2583_v49 = vmul.f32 1.442695, %v2492_v62  ;;  %v2573_v7 = vmul.f32 1.442695, %v2487_v12 }
 0x46f   : > { %4260 = vpow2.f32 %v2571_v60  ;;  %v2575_v57 = vmul.f32 1.442695, %v2488_v24  ;;  %v2416_v9 = vpop.xlane.xlu1 %2415  ;;  %v2407_v16 = vpop.xlane.xlu0 %2406 }
 0x470   : > { %4262 = vpow2.f32 %v2581_v59  ;;  %v2495_v15 = vsub.f32 %v5814_v46, %v2416_v9  ;;  %v2496_v4 = vsub.f32 %v5816_v26, %v2416_v9  ;;  %v2489_v32 = vsub.f32 %v6779_v48, %v2407_v16  ;;  %v6786_v48 = vld [vmem:[#allocation70_spill] sm:$0xff] }
 0x471   : > { %4264 = vpow2.f32 %v2583_v49  ;;  %v2490_v23 = vsub.f32 %v6780_v40, %v2407_v16  ;;  %v6785_v16 = vld [vmem:[#allocation69_spill] sm:$0xff] }
 0x472   : > { %4266 = vpow2.f32 %v2573_v7  ;;  %v2589_v63 = vmul.f32 1.442695, %v2495_v15  ;;  %v2591_v43 = vmul.f32 1.442695, %v2496_v4  ;;  %v2577_v11 = vmul.f32 1.442695, %v2489_v32 }
 0x473   : > { %4268 = vpow2.f32 %v2575_v57  ;;  %v2579_v28 = vmul.f32 1.442695, %v2490_v23  ;;  %v2422_v31 = vpop.xlane.xlu1 %2421  ;;  %v2413_v50 = vpop.xlane.xlu0 %2412 }
 0x474   : > { %4270 = vpow2.f32 %v2589_v63  ;;  %v2499_v21 = vsub.f32 %v5822_v41, %v2422_v31  ;;  %v2500_v46 = vsub.f32 %v6781_v3, %v2422_v31  ;;  %v2493_v26 = vsub.f32 %v5810_v33, %v2413_v50 }
 0x475   : > { %v4251_v38 = vpop.eup %4250  ;;  %4272 = vpow2.f32 %v2591_v43  ;;  %v2494_v39 = vsub.f32 %v6782_v54, %v2413_v50 }
 0x476   : > { %v4253_v20 = vpop.eup %4252  ;;  %4274 = vpow2.f32 %v2577_v11  ;;  %v2597_v8 = vmul.f32 1.442695, %v2499_v21  ;;  %v2599_v1 = vmul.f32 1.442695, %v2500_v46  ;;  %v2585_v51 = vmul.f32 1.442695, %v2493_v26 }
 0x477   : > { %4276 = vpow2.f32 %v2579_v28  ;;  %v2587_v55 = vmul.f32 1.442695, %v2494_v39  ;;  %v2428_v27 = vpop.xlane.xlu1 %2427  ;;  %v2419_v6 = vpop.xlane.xlu0 %2418  ;;  %v2681_v56 = vadd.f32 %v4253_v20, %v4251_v38  ;;  %v6787_v26 = vld [vmem:[#allocation72_spill] sm:$0xff]  ;;  %v6788_v39 = vld [vmem:[#allocation73_spill] sm:$0xff] }
 0x478   : > { %4278 = vpow2.f32 %v2597_v8  ;;  %v2503_v41 = vsub.f32 %v5830_v44, %v2428_v27  ;;  %v2504_v47 = vsub.f32 %v6783_v37, %v2428_v27  ;;  %v2497_v33 = vsub.f32 %v5818_v53, %v2419_v6 }
 0x479   : > { %v4255_v60 = vpop.eup %4254  ;;  %4280 = vpow2.f32 %v2599_v1  ;;  %v2498_v17 = vsub.f32 %v6784_v58, %v2419_v6  ;;  %2682 = vadd.xlane.f32.xlu0 %v2681_v56  ;;  %v6789_v58 = vld [vmem:[#allocation74_spill] sm:$0xff] }
 0x47a   : > { %v4257_v13 = vpop.eup %4256  ;;  %4282 = vpow2.f32 %v2585_v51  ;;  %v2605_v62 = vmul.f32 1.442695, %v2503_v41  ;;  %v2607_v52 = vmul.f32 1.442695, %v2504_v47  ;;  %v2593_v12 = vmul.f32 1.442695, %v2497_v33 }
 0x47b   : > { %v6008_v5 = vpop.eup %4258  ;;  %4284 = vpow2.f32 %v2587_v55  ;;  %v2595_v24 = vmul.f32 1.442695, %v2498_v17  ;;  %v2434_v59 = vpop.xlane.xlu1 %2433  ;;  %v2684_v49 = vadd.f32 %v4257_v13, %v4255_v60  ;;  %v2762_v7 = vpack.c.bf16 %v4257_v13, %v4253_v20 }
 0x47c   : > { %v2425_v44 = vpop.xlane.xlu0 %2424  ;;  %v4261_v57 = vpop.eup %4260  ;;  %4286 = vpow2.f32 %v2605_v62  ;;  %v2507_v53 = vsub.f32 %v5840_v2, %v2434_v59  ;;  %v2508_v9 = vsub.f32 %v5846_v19, %v2434_v59  ;;  %v2761_v23 = vpack.c.bf16 %v4255_v60, %v4251_v38  ;;  %v6790_v62 = vld [vmem:[#allocation75_spill] sm:$0xff] }
 0x47d   : > { %v2501_v15 = vsub.f32 %v6785_v16, %v2425_v44  ;;  %v6013_v4 = vpop.eup %4262  ;;  %4288 = vpow2.f32 %v2607_v52  ;;  %v2502_v32 = vsub.f32 %v6786_v48, %v2425_v44  ;;  %2685 = vadd.xlane.f32.xlu1 %v2684_v49  ;;  %2897 = vmatprep.mubr.bf16.mxu0 %v2762_v7  ;;  %v2687_v40 = vadd.f32 %v4261_v57, %v6008_v5  ;;  %v6791_v16 = vld [vmem:[#allocation76_spill] sm:$0xff] }
 0x47e   : > { %v6017_v63 = vpop.eup %4264  ;;  %4290 = vpow2.f32 %v2593_v12  ;;  %v2613_v43 = vmul.f32 1.442695, %v2507_v53  ;;  %v2615_v11 = vmul.f32 1.442695, %v2508_v9  ;;  %2898 = vmatmul.mubr.bf16.gmra.mxu0 %v2761_v23 }
 0x47f   : > { %v2601_v2 = vmul.f32 1.442695, %v2501_v15  ;;  %v4267_v28 = vpop.eup %4266  ;;  %4292 = vpow2.f32 %v2595_v24  ;;  %v2603_v19 = vmul.f32 1.442695, %v2502_v32  ;;  %2688 = vadd.xlane.f32.xlu0 %v2687_v40  ;;  %v2440_v31 = vpop.xlane.xlu1 %2439  ;;  %v2696_v37 = vadd.f32 %v6017_v63, %v6013_v4  ;;  %v6792_v15 = vld [vmem:[#allocation77_spill] sm:$0xff] }
 0x480   : > { %v2431_v50 = vpop.xlane.xlu0 %2430  ;;  %v4269_v21 = vpop.eup %4268  ;;  %4294 = vpow2.f32 %v2613_v43  ;;  %v2511_v3 = vsub.f32 %v5856_v29, %v2440_v31  ;;  %v2512_v46 = vsub.f32 %v5862_v14, %v2440_v31  ;;  %v2763_v24 = vpack.c.bf16 %v4267_v28, %v6008_v5 }
 0x481   : > { %v2505_v38 = vsub.f32 %v6787_v26, %v2431_v50  ;;  %v6022_v54 = vpop.eup %4270  ;;  %4296 = vpow2.f32 %v2615_v11  ;;  %v2506_v20 = vsub.f32 %v6788_v39, %v2431_v50  ;;  %v2764_v8 = vpack.c.bf16 %v4269_v21, %v4261_v57  ;;  %v6794_v26 = vld [vmem:[#allocation79_spill] sm:$0xff] }
 0x482   : > { %v2690_v1 = vadd.f32 %v4269_v21, %v4267_v28  ;;  %v6025_v51 = vpop.eup %4272  ;;  %4298 = vpow2.f32 %v2601_v2  ;;  %v2621_v55 = vmul.f32 1.442695, %v2511_v3  ;;  %v2623_v27 = vmul.f32 1.442695, %v2512_v46  ;;  %v6793_v3 = vld [vmem:[#allocation78_spill] sm:$0xff] }
 0x483   : > { %v2609_v6 = vmul.f32 1.442695, %v2505_v38  ;;  %v6027_v56 = vpop.eup %4274  ;;  %4300 = vpow2.f32 %v2603_v19  ;;  %v2611_v29 = vmul.f32 1.442695, %v2506_v20  ;;  %2905 = vmatprep.mubr.bf16.mxu0 %v2764_v8  ;;  %v2446_v14 = vpop.xlane.xlu1 %2445  ;;  %v2702_v40 = vadd.f32 %v6025_v51, %v6022_v54 }
 0x484   : > { %2691 = vadd.xlane.f32.xlu1 %v2690_v1  ;;  %v2437_v41 = vpop.xlane.xlu0 %2436  ;;  %v4277_v47 = vpop.eup %4276  ;;  %4302 = vpow2.f32 %v2621_v55  ;;  %v2515_v33 = vsub.f32 %v5874_v0, %v2446_v14  ;;  %v2516_v60 = vsub.f32 %v5882_v36, %v2446_v14 }
 0x485   : > { %v2509_v17 = vsub.f32 %v6789_v58, %v2437_v41  ;;  %v6034_v13 = vpop.eup %4278  ;;  %4304 = vpow2.f32 %v2623_v27  ;;  %v2510_v52 = vsub.f32 %v6790_v62, %v2437_v41  ;;  %v2693_v12 = vadd.f32 %v4277_v47, %v6027_v56 }
 0x486   : > { %v6039_v59 = vpop.eup %4280  ;;  %4306 = vpow2.f32 %v2609_v6  ;;  %v2629_v44 = vmul.f32 1.442695, %v2515_v33  ;;  %v2631_v49 = vmul.f32 1.442695, %v2516_v60  ;;  %v2766_v57 = vpack.c.bf16 %v6017_v63, %v4277_v47  ;;  %2906 = vmatmul.mubr.bf16.gmra.mxu0 %v2763_v24 }
 0x487   : > { %v2617_v7 = vmul.f32 1.442695, %v2509_v17  ;;  %v6041_v0 = vpop.eup %4282  ;;  %4308 = vpow2.f32 %v2611_v29  ;;  %v2619_v36 = vmul.f32 1.442695, %v2510_v52  ;;  %2694 = vadd.xlane.f32.xlu0 %v2693_v12  ;;  %v2708_v39 = vadd.f32 %v6039_v59, %v6034_v13 }
 0x488   : > { %2697 = vadd.xlane.f32.xlu1 %v2696_v37  ;;  %v2443_v53 = vpop.xlane.xlu0 %2442  ;;  %v4285_v9 = vpop.eup %4284  ;;  %4310 = vpow2.f32 %v2629_v44  ;;  %2913 = vmatprep.mubr.bf16.mxu0 %v2766_v57  ;;  %v2765_v6 = vpack.c.bf16 %v6013_v4, %v6027_v56 }
 0x489   : > { %v2513_v5 = vsub.f32 %v6791_v16, %v2443_v53  ;;  %v2514_v48 = vsub.f32 %v6792_v15, %v2443_v53  ;;  %v6046_v32 = vpop.eup %4286  ;;  %4312 = vpow2.f32 %v2631_v49  ;;  %v2699_v23 = vadd.f32 %v4285_v9, %v6041_v0 }
 0x48a   : > { %v6051_v43 = vpop.eup %4288  ;;  %4314 = vpow2.f32 %v2617_v7  ;;  %v2458_v2 = vpop.xlane.xlu1 %2457  ;;  %v2768_v47 = vpack.c.bf16 %v6025_v51, %v4285_v9 }
 0x48b   : > { %v2625_v63 = vmul.f32 1.442695, %v2513_v5  ;;  %v2627_v11 = vmul.f32 1.442695, %v2514_v48  ;;  %v6053_v28 = vpop.eup %4290  ;;  %4316 = vpow2.f32 %v2619_v36  ;;  %2700 = vadd.xlane.f32.xlu0 %v2699_v23  ;;  %v2523_v19 = vsub.f32 %v5906_v34, %v2458_v2 }
 0x48c   : > { %2703 = vadd.xlane.f32.xlu1 %v2702_v40  ;;  %v2524_v31 = vsub.f32 %v5910_v30, %v2458_v2  ;;  %v2455_v50 = vpop.xlane.xlu0 %2454  ;;  %v6057_v21 = vpop.eup %4292  ;;  %v2714_v56 = vadd.f32 %v6051_v43, %v6046_v32 }
 0x48d   : > { %4318 = vpow2.f32 %v2625_v63  ;;  %v2521_v46 = vsub.f32 %v6793_v3, %v2455_v50  ;;  %v2522_v38 = vsub.f32 %v6794_v26, %v2455_v50  ;;  %v6063_v20 = vpop.eup %4294  ;;  %v2645_v8 = vmul.f32 1.442695, %v2523_v19 }
 0x48e   : > { %4320 = vpow2.f32 %v2627_v11  ;;  %v2647_v1 = vmul.f32 1.442695, %v2524_v31  ;;  %v2705_v34 = vadd.f32 %v6057_v21, %v6053_v28  ;;  %v6067_v30 = vpop.eup %4296  ;;  %v2452_v29 = vpop.xlane.xlu1 %2451  ;;  %2914 = vmatmul.mubr.bf16.gmra.mxu0 %v2765_v6  ;;  %v2770_v23 = vpack.c.bf16 %v6039_v59, %v6057_v21 }
 0x48f   : > { %v2641_v55 = vmul.f32 1.442695, %v2521_v46  ;;  %v2643_v27 = vmul.f32 1.442695, %v2522_v38  ;;  %v6071_v14 = vpop.eup %4298  ;;  %4322 = vpow2.f32 %v2645_v8  ;;  %v2519_v41 = vsub.f32 %v5892_v25, %v2452_v29  ;;  %2921 = vmatprep.mubr.bf16.mxu0 %v2768_v47 }
 0x490   : > { %2709 = vadd.xlane.f32.xlu1 %v2708_v39  ;;  %2706 = vadd.xlane.f32.xlu0 %v2705_v34  ;;  %v2520_v37 = vsub.f32 %v5898_v42, %v2452_v29  ;;  %v2449_v33 = vpop.xlane.xlu0 %2448  ;;  %v6076_v60 = vpop.eup %4300  ;;  %4324 = vpow2.f32 %v2647_v1  ;;  %v2720_v53 = vadd.f32 %v6067_v30, %v6063_v20  ;;  %v2769_v38 = vpack.c.bf16 %v6034_v13, %v6053_v28 }
 0x491   : > { %v2517_v58 = vsub.f32 %v5884_v22, %v2449_v33  ;;  %v2518_v4 = vsub.f32 %v5890_v18, %v2449_v33  ;;  %v6082_v17 = vpop.eup %4302  ;;  %4326 = vpow2.f32 %v2641_v55  ;;  %v2637_v25 = vmul.f32 1.442695, %v2519_v41 }
 0x492   : > { %v2639_v62 = vmul.f32 1.442695, %v2520_v37  ;;  %v2711_v42 = vadd.f32 %v6076_v60, %v6071_v14  ;;  %v6086_v51 = vpop.eup %4304  ;;  %4328 = vpow2.f32 %v2643_v27  ;;  %v2464_v22 = vpop.xlane.xlu1 %2463  ;;  %v2772_v1 = vpack.c.bf16 %v6051_v43, %v6076_v60 }
 0x493   : > { %v2633_v52 = vmul.f32 1.442695, %v2517_v58  ;;  %v2635_v12 = vmul.f32 1.442695, %v2518_v4  ;;  %v6088_v24 = vpop.eup %4306  ;;  %4330 = vpow2.f32 %v2637_v25  ;;  %v2527_v18 = vsub.f32 %v5922_v45, %v2464_v22 }
 0x494   : > { %2715 = vadd.xlane.f32.xlu1 %v2714_v56  ;;  %2712 = vadd.xlane.f32.xlu0 %v2711_v42  ;;  %v2528_v44 = vsub.f32 %v5926_v35, %v2464_v22  ;;  %v2461_v49 = vpop.xlane.xlu0 %2460  ;;  %v6092_v7 = vpop.eup %4308  ;;  %4332 = vpow2.f32 %v2639_v62  ;;  %v2771_v4 = vpack.c.bf16 %v6046_v32, %v6071_v14  ;;  %v6795_v42 = vld [vmem:[#allocation14_spill] sm:$0xff]  ;;  %v6797_v32 = vld [vmem:[#allocation9_spill] sm:$0xff] }
 0x495   : > { %v2525_v36 = vsub.f32 %v5914_v10, %v2461_v49  ;;  %v2526_v57 = vsub.f32 %v5920_v61, %v2461_v49  ;;  %v6098_v9 = vpop.eup %4310  ;;  %4334 = vpow2.f32 %v2633_v52  ;;  %v2653_v16 = vmul.f32 1.442695, %v2527_v18  ;;  %v6796_v52 = vld [vmem:[#allocation33_spill] sm:$0xff] }
 0x496   : > { %v2655_v5 = vmul.f32 1.442695, %v2528_v44  ;;  %v2717_v45 = vadd.f32 %v6092_v7, %v6088_v24  ;;  %v6102_v35 = vpop.eup %4312  ;;  %4336 = vpow2.f32 %v2635_v12  ;;  %v2767_v10 = vpack.c.bf16 %v6022_v54, %v6041_v0  ;;  %v1572_v61 = vpop.xlane.xlu1 %1571  ;;  %v6798_v14 = vld [vmem:[#allocation41_spill] sm:$0xff] }
 0x497   : > { %v2649_v15 = vmul.f32 1.442695, %v2525_v36  ;;  %v2651_v48 = vmul.f32 1.442695, %v2526_v57  ;;  %v6106_v40 = vpop.eup %4314  ;;  %4338 = vpow2.f32 %v2653_v16  ;;  %v2726_v54 = vadd.f32 %v6086_v51, %v6082_v17 }
 0x498   : > { %2721 = vadd.xlane.f32.xlu1 %v2720_v53  ;;  %2718 = vadd.xlane.f32.xlu0 %v2717_v45  ;;  %v1569_v63 = vpop.xlane.xlu0 %1568  ;;  %v6110_v11 = vpop.eup %4316  ;;  %4340 = vpow2.f32 %v2655_v5  ;;  %v2732_v46 = vadd.f32 %v6102_v35, %v6098_v9  ;;  %v3702_v12 = vadd.f32 %v6796_v52, %v6795_v42  ;;  %v2774_v22 = vpack.c.bf16 %v6067_v30, %v6092_v7  ;;  %v6799_v7 = vld [vmem:[#allocation8_spill] sm:$0xff]  ;;  %v6809_v42 = vld [vmem:[#allocation45_spill] sm:$0xff] }
 0x499   : > { %2922 = vmatmul.mubr.bf16.gmra.mxu0 %v2767_v10  ;;  %4342 = vpow2.f32 %v2649_v15  ;;  %v2723_v0 = vadd.f32 %v6110_v11, %v6106_v40  ;;  %v3708_v16 = vadd.f32 %v6798_v14, %v6797_v32  ;;  %v6811_v14 = vld [vmem:[#allocation20_spill] sm:$0xff] }
 0x49a   : > { %v6112_v2 = vpop.eup %4318  ;;  %2929 = vmatprep.mubr.bf16.mxu0 %v2770_v23  ;;  %4344 = vpow2.f32 %v2651_v48  ;;  %v1578_v31 = vpop.xlane.xlu1 %1577 }
 0x49b   : > { %v6118_v19 = vpop.eup %4320  ;;  %4346 = vrcp.f32 %v1572_v61 }
 0x49c   : > { %2727 = vadd.xlane.f32.xlu1 %v2726_v54  ;;  %2724 = vadd.xlane.f32.xlu0 %v2723_v0  ;;  %v1575_v59 = vpop.xlane.xlu0 %1574  ;;  %v2729_v50 = vadd.f32 %v6118_v19, %v6112_v2  ;;  %v4323_v21 = vpop.eup %4322  ;;  %4348 = vrcp.f32 %v1569_v63  ;;  %v6800_v0 = vld [vmem:[#allocation34_spill] sm:$0xff] }
 0x49d   : > { %v4325_v3 = vpop.eup %4324  ;;  %4350 = vrcp.f32 %v1578_v31 }
 0x49e   : > { %v4327_v26 = vpop.eup %4326  ;;  %4352 = vrcp.f32 %v1575_v59  ;;  %v1584_v39 = vpop.xlane.xlu1 %1583  ;;  %v2744_v25 = vadd.f32 %v4325_v3, %v4323_v21 }
 0x49f   : > { %v4329_v8 = vpop.eup %4328  ;;  %4354 = vrcp.f32 %v1584_v39  ;;  %v2781_v55 = vpack.c.bf16 %v4323_v21, %v4327_v26  ;;  %v2776_v39 = vpack.c.bf16 %v6086_v51, %v6110_v11 }
 0x4a0   : > { %2733 = vadd.xlane.f32.xlu1 %v2732_v46  ;;  %2730 = vadd.xlane.f32.xlu0 %v2729_v50  ;;  %v1581_v34 = vpop.xlane.xlu0 %1580  ;;  %v6128_v27 = vpop.eup %4330  ;;  %v2782_v6 = vpack.c.bf16 %v4325_v3, %v4329_v8  ;;  %v2741_v36 = vadd.f32 %v4329_v8, %v4327_v26  ;;  %v6801_v50 = vld [vmem:[#allocation16_spill] sm:$0xff]  ;;  %v2773_v3 = vpack.c.bf16 %v6063_v20, %v6088_v24  ;;  %v6802_v26 = vld [vmem:[#allocation42_spill] sm:$0xff] }
 0x4a1   : > { %2930 = vmatmul.mubr.bf16.gmra.mxu0 %v2769_v38  ;;  %4356 = vrcp.f32 %v1581_v34  ;;  %v6130_v29 = vpop.eup %4332  ;;  %v6805_v24 = vld [vmem:[#allocation18_spill] sm:$0xff] }
 0x4a2   : > { %2937 = vmatprep.mubr.bf16.mxu0 %v2772_v1  ;;  %v6132_v41 = vpop.eup %4334  ;;  %2977 = vmatprep.mubr.bf16.mxu1 %v2782_v6  ;;  %v1590_v13 = vpop.xlane.xlu1 %1589  ;;  %v2738_v28 = vadd.f32 %v6130_v29, %v6128_v27 }
 0x4a3   : > { %v6136_v37 = vpop.eup %4336  ;;  %2978 = vmatmul.mubr.bf16.vlgmr.msra.gmra.mxu1 %v2781_v55  ;;  %4358 = vrcp.f32 %v1590_v13  ;;  %v6803_v55 = vld [vmem:[#allocation36_spill] sm:$0xff] }
 0x4a4   : > { %v1587_v43 = vpop.xlane.xlu0 %1586  ;;  %v4339_v47 = vpop.eup %4338  ;;  %2739 = vadd.xlane.f32.xlu1 %v2738_v28  ;;  %v2735_v33 = vadd.f32 %v6136_v37, %v6132_v41  ;;  %v6804_v28 = vld [vmem:[#allocation35_spill] sm:$0xff] }
 0x4a5   : > { %4360 = vrcp.f32 %v1587_v43  ;;  %v4341_v60 = vpop.eup %4340  ;;  %v6806_v43 = vld [vmem:[#allocation39_spill] sm:$0xff] }
 0x4a6   : > { %v4343_v58 = vpop.eup %4342  ;;  %2736 = vadd.xlane.f32.xlu0 %v2735_v33  ;;  %v1596_v56 = vpop.xlane.xlu1 %1595  ;;  %v2750_v30 = vadd.f32 %v4341_v60, %v4339_v47 }
 0x4a7   : > { %v4345_v62 = vpop.eup %4344  ;;  %4362 = vrcp.f32 %v1596_v56  ;;  %v2783_v44 = vpack.c.bf16 %v4339_v47, %v4343_v58  ;;  %v3726_v47 = vadd.f32 %v6806_v43, %v6805_v24  ;;  %v6807_v56 = vld [vmem:[#allocation11_spill] sm:$0xff] }
 0x4a8   : > { %v1593_v18 = vpop.xlane.xlu0 %1592  ;;  %v4347_v49 = vpop.eup %4346  ;;  %2745 = vadd.xlane.f32.xlu1 %v2744_v25  ;;  %v2784_v57 = vpack.c.bf16 %v4341_v60, %v4345_v62  ;;  %v2747_v54 = vadd.f32 %v4345_v62, %v4343_v58  ;;  %v2775_v58 = vpack.c.bf16 %v6082_v17, %v6106_v40  ;;  %v6808_v62 = vld [vmem:[#allocation13_spill] sm:$0xff]  ;;  %v6810_v40 = vld [vmem:[#allocation40_spill] sm:$0xff]  ;;  %v6818_v43 = vld [vmem:[#allocation47_spill] sm:$0xff] }
 0x4a9   : > { %2938 = vmatmul.mubr.bf16.gmra.mxu0 %v2771_v4  ;;  %4364 = vrcp.f32 %v1593_v18  ;;  %v4349_v53 = vpop.eup %4348  ;;  %v6148_v5 = vmul.f32 %v4347_v49, %v3702_v12  ;;  %v3732_v52 = vadd.f32 %v6809_v42, %v6808_v62  ;;  %v2778_v12 = vpack.c.bf16 %v6102_v35, %v6118_v19 }
 0x4aa   : > { %2945 = vmatprep.mubr.bf16.mxu0 %v2774_v22  ;;  %v4351_v45 = vpop.eup %4350  ;;  %2742 = vadd.xlane.f32.xlu0 %v2741_v36  ;;  %v1602_v15 = vpop.xlane.xlu1 %1601  ;;  %v6151_v48 = vmul.f32 %v4349_v53, %v6799_v7  ;;  %v2777_v35 = vpack.c.bf16 %v6098_v9, %v6112_v2 }
 0x4ab   : > { %2985 = vmatprep.mubr.bf16.mxu1 %v2784_v57  ;;  %v4353_v10 = vpop.eup %4352  ;;  %4366 = vrcp.f32 %v1602_v15  ;;  %v6153_v23 = vmul.f32 %v4351_v45, %v3708_v16  ;;  %v6812_v45 = vld [vmem:[#allocation46_spill] sm:$0xff] }
 0x4ac   : > { %2986 = vmatmul.mubr.bf16.gmra.mxu1 %v2783_v44  ;;  %v1599_v61 = vpop.xlane.xlu0 %1598  ;;  %v4355_v63 = vpop.eup %4354  ;;  %2751 = vadd.xlane.f32.xlu1 %v2750_v30  ;;  %v6156_v31 = vmul.f32 %v4353_v10, %v6800_v0  ;;  %v2780_v30 = vpack.c.bf16 %v6130_v29, %v6136_v37  ;;  %v2779_v37 = vpack.c.bf16 %v6128_v27, %v6132_v41 }
 0x4ad   : > { %4368 = vrcp.f32 %v1599_v61  ;;  %v6159_v21 = vmul.f32 %v4355_v63, %v6801_v50  ;;  %v6813_v63 = vld [vmem:[#allocation44_spill] sm:$0xff] }
 0x4ae   : > { %v4357_v59 = vpop.eup %4356  ;;  %2748 = vadd.xlane.f32.xlu0 %v2747_v54  ;;  %v1608_v46 = vpop.xlane.xlu1 %1607 }
 0x4af   : > { %v6164_v38 = vmul.f32 %v4357_v59, %v6802_v26  ;;  %4370 = vrcp.f32 %v1608_v46  ;;  %v6814_v59 = vld [vmem:[#allocation43_spill] sm:$0xff]  ;;  %v6815_v46 = vld [vmem:[#allocation22_spill] sm:$0xff] }
 0x4b0   : > { %v1605_v8 = vpop.xlane.xlu0 %1604  ;;  %v4359_v1 = vpop.eup %4358 }
 0x4b1   : > { %2946 = vmatmul.mubr.bf16.gmra.mxu0 %v2773_v3  ;;  %4372 = vrcp.f32 %v1605_v8  ;;  %v6169_v6 = vmul.f32 %v4359_v1, %v6803_v55 }
 0x4b2   : > { %v4361_v34 = vpop.eup %4360  ;;  %2953 = vmatprep.mubr.bf16.mxu0 %v2776_v39  ;;  %v1614_v13 = vpop.xlane.xlu1 %1613  ;;  %v6816_v39 = vld [vmem:[#allocation15_spill] sm:$0xff] }
 0x4b3   : > { %v6172_v20 = vmul.f32 %v4361_v34, %v6804_v28  ;;  %4374 = vrcp.f32 %v1614_v13  ;;  %v6817_v13 = vld [vmem:[#allocation48_spill] sm:$0xff] }
 0x4b4   : > { %v1611_v33 = vpop.xlane.xlu0 %1610  ;;  %v4363_v60 = vpop.eup %4362 }
 0x4b5   : > { %4376 = vrcp.f32 %v1611_v33  ;;  %v6176_v11 = vmul.f32 %v4363_v60, %v3726_v47  ;;  %v6819_v60 = vld [vmem:[#allocation49_spill] sm:$0xff] }
 0x4b6   : > { %v4365_v51 = vpop.eup %4364  ;;  %v1620_v4 = vpop.xlane.xlu1 %1619 }
 0x4b7   : > { %v6181_v25 = vmul.f32 %v4365_v51, %v6807_v56  ;;  %4378 = vrcp.f32 %v1620_v4  ;;  %v6820_v4 = vld [vmem:[#allocation17_spill] sm:$0xff] }
 0x4b8   : > { %v1617_v22 = vpop.xlane.xlu0 %1616  ;;  %v4367_v18 = vpop.eup %4366 }
 0x4b9   : > { %2954 = vmatmul.mubr.bf16.gmra.mxu0 %v2775_v58  ;;  %4380 = vrcp.f32 %v1617_v22  ;;  %v6187_v49 = vmul.f32 %v4367_v18, %v3732_v52 }
 0x4ba   : > { %v4369_v44 = vpop.eup %4368  ;;  %2961 = vmatprep.mubr.bf16.mxu0 %v2778_v12  ;;  %v1626_v17 = vpop.xlane.xlu1 %1625  ;;  %v6821_v12 = vld [vmem:[#allocation24_spill] sm:$0xff] }
 0x4bb   : > { %v6190_v36 = vmul.f32 %v4369_v44, %v6810_v40  ;;  %4382 = vrcp.f32 %v1626_v17  ;;  %v6822_v44 = vld [vmem:[#allocation50_spill] sm:$0xff] }
 0x4bc   : > { %v1623_v57 = vpop.xlane.xlu0 %1622  ;;  %v4371_v53 = vpop.eup %4370 }
 0x4bd   : > { %4384 = vrcp.f32 %v1623_v57  ;;  %v6193_v16 = vmul.f32 %v4371_v53, %v6811_v14 }
 0x4be   : > { %v4373_v32 = vpop.eup %4372  ;;  %v1632_v19 = vpop.xlane.xlu1 %1631 }
 0x4bf   : > { %v6198_v15 = vmul.f32 %v4373_v32, %v6812_v45  ;;  %4386 = vrcp.f32 %v1632_v19  ;;  %v6823_v32 = vld [vmem:[#allocation51_spill] sm:$0xff] }
 0x4c0   : > { %v1629_v7 = vpop.xlane.xlu0 %1628  ;;  %v4375_v10 = vpop.eup %4374 }
 0x4c1   : > { %2962 = vmatmul.mubr.bf16.gmra.mxu0 %v2777_v35  ;;  %4388 = vrcp.f32 %v1629_v7  ;;  %v6203_v54 = vmul.f32 %v4375_v10, %v6813_v63  ;;  %v6824_v35 = vld [vmem:[#allocation19_spill] sm:$0xff]  ;;  %v6825_v7 = vld [vmem:[#allocation26_spill] sm:$0xff] }
 0x4c2   : > { %v4377_v61 = vpop.eup %4376  ;;  %2969 = vmatprep.mubr.bf16.mxu0 %v2780_v30  ;;  %v1638_v0 = vpop.xlane.xlu1 %1637 }
 0x4c3   : > { %v6206_v9 = vmul.f32 %v4377_v61, %v6814_v59  ;;  %4390 = vrcp.f32 %v1638_v0  ;;  %v6826_v61 = vld [vmem:[#allocation52_spill] sm:$0xff] }
 0x4c4   : > { %v1635_v2 = vpop.xlane.xlu0 %1634  ;;  %v4379_v50 = vpop.eup %4378 }
 0x4c5   : > { %4392 = vrcp.f32 %v1635_v2  ;;  %v6209_v29 = vmul.f32 %v4379_v50, %v6815_v46  ;;  %v6827_v2 = vld [vmem:[#allocation53_spill] sm:$0xff] }
 0x4c6   : > { %v4381_v3 = vpop.eup %4380  ;;  %v1644_v26 = vpop.xlane.xlu1 %1643 }
 0x4c7   : > { %v6214_v8 = vmul.f32 %v4381_v3, %v6816_v39  ;;  %4394 = vrcp.f32 %v1644_v26  ;;  %v6828_v3 = vld [vmem:[#allocation21_spill] sm:$0xff]  ;;  %v6829_v39 = vld [vmem:[#allocation23_spill] sm:$0xff] }
 0x4c8   : > { %v1641_v1 = vpop.xlane.xlu0 %1640  ;;  %v4383_v34 = vpop.eup %4382 }
 0x4c9   : > { %2970 = vmatmul.mubr.bf16.gmra.mxu0 %v2779_v37  ;;  %4396 = vrcp.f32 %v1641_v1  ;;  %v6217_v28 = vmul.f32 %v4383_v34, %v6817_v13  ;;  %v6830_v34 = vld [vmem:[#allocation54_spill] sm:$0xff] }
 0x4ca   : > { %v4385_v55 = vpop.eup %4384  ;;  %v1650_v24 = vpop.xlane.xlu1 %1649 }
 0x4cb   : > { %v6220_v47 = vmul.f32 %v4385_v55, %v6818_v43  ;;  %4398 = vrcp.f32 %v1650_v24 }
 0x4cc   : > { %v1647_v33 = vpop.xlane.xlu0 %1646  ;;  %v4387_v27 = vpop.eup %4386 }
 0x4cd   : > { %4400 = vrcp.f32 %v1647_v33  ;;  %v6223_v51 = vmul.f32 %v4387_v27, %v6819_v60 }
 0x4ce   : > { %v4389_v41 = vpop.eup %4388  ;;  %v1656_v58 = vpop.xlane.xlu1 %1655 }
 0x4cf   : > { %v6226_v56 = vmul.f32 %v4389_v41, %v6820_v4  ;;  %4402 = vrcp.f32 %v1656_v58 }
 0x4d0   : > { %v1653_v62 = vpop.xlane.xlu0 %1652  ;;  %v4391_v42 = vpop.eup %4390 }
 0x4d1   : > { %4404 = vrcp.f32 %v1653_v62  ;;  %v6229_v22 = vmul.f32 %v4391_v42, %v6821_v12 }
 0x4d2   : > { %v4393_v52 = vpop.eup %4392  ;;  %v1662_v18 = vpop.xlane.xlu1 %1661 }
 0x4d3   : > { %v6232_v17 = vmul.f32 %v4393_v52, %v6822_v44  ;;  %4406 = vrcp.f32 %v1662_v18 }
 0x4d4   : > { %v1659_v40 = vpop.xlane.xlu0 %1658  ;;  %v4395_v57 = vpop.eup %4394 }
 0x4d5   : > { %4408 = vrcp.f32 %v1659_v40  ;;  %v6235_v14 = vmul.f32 %v4395_v57, %v6823_v32 }
 0x4d6   : > { %v4397_v53 = vpop.eup %4396  ;;  %v2662_v24 = vpop.xlane.xlu1 %2661 }
 0x4d7   : > { %v6238_v19 = vmul.f32 %v4397_v53, %v6824_v35 }
 0x4d8   : > { %v4399_v45 = vpop.eup %4398  ;;  %v2659_v13 = vpop.xlane.xlu0 %2658 }
 0x4d9   : > { %v6241_v10 = vmul.f32 %v4399_v45, %v6825_v7  ;;  %4410 = vrcp.f32 %v2659_v13 }
 0x4da   : > { %v4401_v30 = vpop.eup %4400  ;;  %4412 = vrcp.f32 %v2662_v24  ;;  %v2668_v33 = vpop.xlane.xlu1 %2667 }
 0x4db   : > { %v6244_v63 = vmul.f32 %v4401_v30, %v6826_v61 }
 0x4dc   : > { %v4403_v0 = vpop.eup %4402  ;;  %v2665_v43 = vpop.xlane.xlu0 %2664 }
 0x4dd   : > { %v6247_v50 = vmul.f32 %v4403_v0, %v6827_v2  ;;  %4414 = vrcp.f32 %v2665_v43 }
 0x4de   : > { %v4405_v59 = vpop.eup %4404  ;;  %4416 = vrcp.f32 %v2668_v33  ;;  %v2674_v40 = vpop.xlane.xlu1 %2673 }
 0x4df   : > { %v6250_v46 = vmul.f32 %v4405_v59, %v6828_v3 }
 0x4e0   : > { %v4407_v37 = vpop.eup %4406  ;;  %v2671_v4 = vpop.xlane.xlu0 %2670 }
 0x4e1   : > { %v6253_v1 = vmul.f32 %v4407_v37, %v6829_v39  ;;  %4418 = vrcp.f32 %v2671_v4 }
 0x4e2   : > { %v4409_v26 = vpop.eup %4408  ;;  %4420 = vrcp.f32 %v2674_v40  ;;  %v2680_v3 = vpop.xlane.xlu1 %2679 }
 0x4e3   : > { %v6256_v55 = vmul.f32 %v4409_v26, %v6830_v34 }
 0x4e4   : > { %v2677_v30 = vpop.xlane.xlu0 %2676 }
 0x4e5   : > { %4422 = vrcp.f32 %v2677_v30 }
 0x4e6   : > { %v4411_v58 = vpop.eup %4410  ;;  %4424 = vrcp.f32 %v2680_v3 }
 0x4e7   : > { %v4413_v18 = vpop.eup %4412 }
 0x4ea   : > { %v4415_v35 = vpop.eup %4414 }
 0x4eb   : > { %v4417_v59 = vpop.eup %4416 }
 0x4ee   : > { %v4419_v34 = vpop.eup %4418 }
 0x4fa   : > { %v3857_v27 = vpop.f32.mrf.mxu0 }
 0x4fc   : > { %v3858_v41 = vpop.f32.mrf.mxu0 }
 0x4fd   : > { %v3859_v60 = vadd.f32 %v3858_v41, %v3857_v27  ;;  %v4421_v27 = vpop.eup %4420 }
 0x4fe   : > { %v3860_v62 = vpop.f32.mrf.mxu0 }
 0x4ff   : > { %v3026_v42 = vmul.f32 %v4411_v58, %v3859_v60 }
 0x500   : > { %v3861_v52 = vpop.f32.mrf.mxu0 }
 0x501   : > { %v3862_v12 = vadd.f32 %v3861_v52, %v3860_v62  ;;  %3090 = vrot.lane.b32.xlu0 %v3026_v42, %s4532_s29  ;;  %v4423_v62 = vpop.eup %4422 }
 0x502   : > { %v3863_v44 = vpop.f32.mrf.mxu0 }
 0x503   : > { %v3027_v57 = vmul.f32 %v4413_v18, %v3862_v12 }
 0x504   : > { %v3864_v53 = vpop.f32.mrf.mxu0 }
 0x505   : > { %v3865_v32 = vadd.f32 %v3864_v53, %v3863_v44  ;;  %3092 = vrot.lane.b32.xlu1 %v3027_v57, %s4532_s29  ;;  %v4425_v44 = vpop.eup %4424  ;;  %v2683_v57 = vpop.xlane.xlu0 %2682 }
 0x506   : > { %v3866_v45 = vpop.f32.mrf.mxu0  ;;  %v2686_v53 = vpop.xlane.xlu1 %2685  ;;  %4426 = vrcp.f32 %v2683_v57 }
 0x507   : > { %v3028_v7 = vmul.f32 %v4415_v35, %v3865_v32  ;;  %4428 = vrcp.f32 %v2686_v53 }
 0x508   : > { %v3867_v61 = vpop.f32.mrf.mxu0 }
 0x509   : > { %v3868_v0 = vadd.f32 %v3867_v61, %v3866_v45  ;;  %3094 = vrot.lane.b32.xlu1 %v3028_v7, %s4532_s29  ;;  %v2689_v32 = vpop.xlane.xlu0 %2688 }
 0x50a   : > { %v3869_v2 = vpop.f32.mrf.mxu0  ;;  %4430 = vrcp.f32 %v2689_v32 }
 0x50b   : > { %v3029_v37 = vmul.f32 %v4417_v59, %v3868_v0 }
 0x50c   : > { %v3870_v26 = vpop.f32.mrf.mxu0 }
 0x50d   : > { %v3871_v39 = vadd.f32 %v3870_v26, %v3869_v2  ;;  %3096 = vrot.lane.b32.xlu1 %v3029_v37, %s4532_s29  ;;  %v2692_v35 = vpop.xlane.xlu1 %2691 }
 0x50e   : > { %v3872_v13 = vpop.f32.mrf.mxu0  ;;  %4432 = vrcp.f32 %v2692_v35 }
 0x50f   : > { %v3030_v24 = vmul.f32 %v4419_v34, %v3871_v39 }
 0x510   : > { %v3873_v43 = vpop.f32.mrf.mxu0  ;;  %v2695_v45 = vpop.xlane.xlu0 %2694 }
 0x511   : > { %3098 = vrot.lane.b32.xlu0 %v3030_v24, %s4532_s29  ;;  %v3874_v33 = vadd.f32 %v3873_v43, %v3872_v13  ;;  %v2698_v30 = vpop.xlane.xlu1 %2697  ;;  %4434 = vrcp.f32 %v2695_v45 }
 0x512   : > { %v3875_v41 = vpop.f32.mrf.mxu0  ;;  %4436 = vrcp.f32 %v2698_v30 }
 0x513   : > { %v3031_v60 = vmul.f32 %v4421_v27, %v3874_v33  ;;  %v4427_v2 = vpop.eup %4426 }
 0x514   : > { %v3876_v58 = vpop.f32.mrf.mxu0  ;;  %v2701_v61 = vpop.xlane.xlu0 %2700 }
 0x515   : > { %v3877_v4 = vadd.f32 %v3876_v58, %v3875_v41  ;;  %3100 = vrot.lane.b32.xlu1 %v3031_v60, %s4532_s29  ;;  %v2704_v26 = vpop.xlane.xlu1 %2703  ;;  %v4429_v13 = vpop.eup %4428  ;;  %4438 = vrcp.f32 %v2701_v61 }
 0x516   : > { %v3878_v42 = vpop.f32.mrf.mxu0  ;;  %4440 = vrcp.f32 %v2704_v26 }
 0x517   : > { %v3032_v52 = vmul.f32 %v4423_v62, %v3877_v4  ;;  %v4431_v58 = vpop.eup %4430 }
 0x518   : > { %v3879_v12 = vpop.f32.mrf.mxu0 }
 0x519   : > { %v3880_v18 = vadd.f32 %v3879_v12, %v3878_v42  ;;  %3102 = vrot.lane.b32.xlu0 %v3032_v52, %s4532_s29  ;;  %v2707_v24 = vpop.xlane.xlu0 %2706  ;;  %v2710_v41 = vpop.xlane.xlu1 %2709 }
 0x51a   : > { %4442 = vrcp.f32 %v2707_v24 }
 0x51b   : > { %v3033_v40 = vmul.f32 %v4425_v44, %v3880_v18  ;;  %v4433_v18 = vpop.eup %4432  ;;  %4444 = vrcp.f32 %v2710_v41 }
 0x51d   : > { %3104 = vrot.lane.b32.xlu1 %v3033_v40, %s4532_s29  ;;  %v2713_v62 = vpop.xlane.xlu0 %2712  ;;  %v2716_v40 = vpop.xlane.xlu1 %2715 }
 0x51e   : > { %v4435_v45 = vpop.eup %4434  ;;  %4446 = vrcp.f32 %v2713_v62 }
 0x51f   : > { %4448 = vrcp.f32 %v2716_v40 }
 0x521   : > { %v2719_v32 = vpop.xlane.xlu0 %2718 }
 0x522   : > { %4450 = vrcp.f32 %v2719_v32 }
 0x53e   : > { %v3881_v7 = vpop.f32.mrf.mxu0 }
 0x540   : > { %v3882_v0 = vpop.f32.mrf.mxu0 }
 0x541   : > { %v3883_v59 = vadd.f32 %v3882_v0, %v3881_v7 }
 0x542   : > { %v3884_v3 = vpop.f32.mrf.mxu0 }
 0x543   : > { %v3034_v37 = vmul.f32 %v4427_v2, %v3883_v59  ;;  %v2722_v59 = vpop.xlane.xlu1 %2721  ;;  %v4437_v2 = vpop.eup %4436 }
 0x544   : > { %v3885_v39 = vpop.f32.mrf.mxu0  ;;  %4452 = vrcp.f32 %v2722_v59 }
 0x545   : > { %v3886_v34 = vadd.f32 %v3885_v39, %v3884_v3  ;;  %3106 = vrot.lane.b32.xlu0 %v3034_v37, %s4532_s29  ;;  %v2725_v37 = vpop.xlane.xlu0 %2724 }
 0x546   : > { %v3887_v33 = vpop.f32.mrf.mxu0  ;;  %4454 = vrcp.f32 %v2725_v37 }
 0x547   : > { %v3035_v43 = vmul.f32 %v4429_v13, %v3886_v34  ;;  %v4439_v13 = vpop.eup %4438 }
 0x548   : > { %v3888_v27 = vpop.f32.mrf.mxu0 }
 0x549   : > { %3108 = vrot.lane.b32.xlu1 %v3035_v43, %s4532_s29  ;;  %v3889_v60 = vadd.f32 %v3888_v27, %v3887_v33  ;;  %v2728_v33 = vpop.xlane.xlu1 %2727  ;;  %v2731_v24 = vpop.xlane.xlu0 %2730 }
 0x54a   : > { %v3890_v4 = vpop.f32.mrf.mxu0  ;;  %4456 = vrcp.f32 %v2728_v33 }
 0x54b   : > { %v3036_v42 = vmul.f32 %v4431_v58, %v3889_v60  ;;  %4458 = vrcp.f32 %v2731_v24 }
 0x54c   : > { %v3891_v52 = vpop.f32.mrf.mxu0 }
 0x54d   : > { %v3892_v12 = vadd.f32 %v3891_v52, %v3890_v4  ;;  %3110 = vrot.lane.b32.xlu0 %v3036_v42, %s4532_s29  ;;  %v4441_v4 = vpop.eup %4440  ;;  %v6273_v41 = vpop.xlane.xlu0 %2736 }
 0x54e   : > { %v3893_v44 = vpop.f32.mrf.mxu0 }
 0x54f   : > { %v3037_v57 = vmul.f32 %v4433_v18, %v3892_v12  ;;  %v2734_v18 = vpop.xlane.xlu1 %2733 }
 0x550   : > { %v3894_v53 = vpop.f32.mrf.mxu0  ;;  %4460 = vrcp.f32 %v2734_v18 }
 0x551   : > { %v3895_v35 = vadd.f32 %v3894_v53, %v3893_v44  ;;  %3112 = vrot.lane.b32.xlu1 %v3037_v57, %s4532_s29  ;;  %v4443_v57 = vpop.eup %4442  ;;  %v6279_v40 = vpop.xlane.xlu0 %2742  ;;  %4462 = vrcp.f32 %v6273_v41 }
 0x552   : > { %v3896_v30 = vpop.f32.mrf.mxu0  ;;  %4464 = vrcp.f32 %v6279_v40 }
 0x553   : > { %v3038_v7 = vmul.f32 %v4435_v45, %v3895_v35  ;;  %v6276_v62 = vpop.xlane.xlu1 %2739 }
 0x554   : > { %v3897_v0 = vpop.f32.mrf.mxu0  ;;  %4466 = vrcp.f32 %v6276_v62 }
 0x555   : > { %v3898_v61 = vadd.f32 %v3897_v0, %v3896_v30  ;;  %3114 = vrot.lane.b32.xlu0 %v3038_v7, %s4532_s29  ;;  %v4445_v7 = vpop.eup %4444 }
 0x557   : > { %v3039_v39 = vmul.f32 %v4437_v2, %v3898_v61 }
 0x559   : > { %v3899_v3 = vpop.f32.mrf.mxu0  ;;  %3116 = vrot.lane.b32.xlu1 %v3039_v39, %s4532_s29  ;;  %v4447_v39 = vpop.eup %4446 }
 0x55b   : > { %v3900_v34 = vpop.f32.mrf.mxu0 }
 0x55c   : > { %v3901_v26 = vadd.f32 %v3900_v34, %v3899_v3 }
 0x55d   : > { %v3902_v43 = vpop.f32.mrf.mxu0 }
 0x55e   : > { %v3040_v27 = vmul.f32 %v4439_v13, %v3901_v26  ;;  %v6282_v26 = vpop.xlane.xlu1 %2745 }
 0x55f   : > { %v3903_v60 = vpop.f32.mrf.mxu0  ;;  %4468 = vrcp.f32 %v6282_v26 }
 0x560   : > { %v3904_v58 = vadd.f32 %v3903_v60, %v3902_v43  ;;  %3118 = vrot.lane.b32.xlu0 %v3040_v27, %s4532_s29  ;;  %v6284_v43 = vpop.xlane.xlu0 %2748  ;;  %v4449_v60 = vpop.eup %4448 }
 0x561   : > { %v3905_v42 = vpop.f32.mrf.mxu0  ;;  %4470 = vrcp.f32 %v6284_v43 }
 0x562   : > { %v3041_v52 = vmul.f32 %v4441_v4, %v3904_v58 }
 0x563   : > { %v3906_v12 = vpop.f32.mrf.mxu0 }
 0x564   : > { %v3907_v44 = vadd.f32 %v3906_v12, %v3905_v42  ;;  %3120 = vrot.lane.b32.xlu1 %v3041_v52, %s4532_s29  ;;  %v6289_v42 = vpop.xlane.xlu1 %2751 }
 0x565   : > { %v3908_v53 = vpop.f32.mrf.mxu0  ;;  %4472 = vrcp.f32 %v6289_v42 }
 0x566   : > { %v3042_v35 = vmul.f32 %v4443_v57, %v3907_v44  ;;  %v4451_v44 = vpop.eup %4450 }
 0x567   : > { %v3909_v45 = vpop.f32.mrf.mxu0 }
 0x568   : > { %v3910_v30 = vadd.f32 %v3909_v45, %v3908_v53  ;;  %3122 = vrot.lane.b32.xlu0 %v3042_v35, %s4532_s29  ;;  %v6297_v35 = vpop.f32.mrf.mxu1 }
 0x569   : > { %v3911_v0 = vpop.f32.mrf.mxu0 }
 0x56a   : > { %v3043_v61 = vmul.f32 %v4445_v7, %v3910_v30  ;;  %v4453_v7 = vpop.eup %4452 }
 0x56b   : > { %v3912_v2 = vpop.f32.mrf.mxu0  ;;  %v4455_v24 = vpop.eup %4454 }
 0x56c   : > { %v3913_v3 = vadd.f32 %v3912_v2, %v3911_v0  ;;  %3124 = vrot.lane.b32.xlu1 %v3043_v61, %s4532_s29  ;;  %v3942_v2 = vpop.f32.mrf.mxu1 }
 0x56d   : > { %v3914_v34 = vpop.f32.mrf.mxu0 }
 0x56e   : > { %v3044_v32 = vmul.f32 %v4447_v39, %v3913_v3 }
 0x56f   : > { %v3915_v13 = vpop.f32.mrf.mxu0 }
 0x570   : > { %v3916_v27 = vadd.f32 %v3915_v13, %v3914_v34  ;;  %3126 = vrot.lane.b32.xlu0 %v3044_v32, %s4532_s29 }
 0x571   : > { %v3917_v58 = vpop.f32.mrf.mxu0 }
 0x572   : > { %v3045_v59 = vmul.f32 %v4449_v60, %v3916_v27  ;;  %v3944_v60 = vpop.f32.mrf.mxu1 }
 0x573   : > { %v3918_v4 = vpop.f32.mrf.mxu0  ;;  %v3091_v12 = vpop.permute.xlu0 %3090 }
 0x574   : > { %v3919_v52 = vadd.f32 %v3918_v4, %v3917_v58  ;;  %3128 = vrot.lane.b32.xlu1 %v3045_v59, %s4532_s29  ;;  %v3186_v57 = vsel %vm989_vm0, %v6151_v48, %v3091_v12  ;;  %v4457_v59 = vpop.eup %4456 }
 0x575   : > { %v3920_v37 = vpop.f32.mrf.mxu0  ;;  %3218 = vst [vmem:[%s6294_s5] sm:$0xff] %v3186_v57  ;;  %v4459_v57 = vpop.eup %4458 }
 0x576   : > { %v3046_v53 = vmul.f32 %v4451_v44, %v3919_v52  ;;  %v4461_v62 = vpop.eup %4460 }
 0x577   : > { %v3921_v33 = vpop.f32.mrf.mxu0  ;;  %v3093_v30 = vpop.permute.xlu1 %3092 }
 0x578   : > { %v3922_v45 = vadd.f32 %v3921_v33, %v3920_v37  ;;  %3130 = vrot.lane.b32.xlu0 %v3046_v53, %s4532_s29  ;;  %v3187_v48 = vsel %vm989_vm0, %v6148_v5, %v3093_v30  ;;  %v4463_v43 = vpop.eup %4462 }
 0x579   : > { %v3923_v0 = vpop.f32.mrf.mxu0  ;;  %3219 = vst [vmem:[%s6294_s5 + $0x8] sm:$0xff] %v3187_v48 }
 0x57a   : > { %v3047_v61 = vmul.f32 %v4453_v7, %v3922_v45 }
 0x57b   : > { %v3924_v3 = vpop.f32.mrf.mxu0  ;;  %v3095_v34 = vpop.permute.xlu1 %3094 }
 0x57c   : > { %v3925_v39 = vadd.f32 %v3924_v3, %v3923_v0  ;;  %3132 = vrot.lane.b32.xlu1 %v3047_v61, %s4532_s29  ;;  %v3188_v13 = vsel %vm989_vm0, %v6156_v31, %v3095_v34  ;;  %v3945_v31 = vpop.f32.mrf.mxu1 }
 0x57d   : > { %v3926_v32 = vpop.f32.mrf.mxu0  ;;  %3220 = vst [vmem:[%s6294_s5 + $0x10] sm:$0xff] %v3188_v13 }
 0x57e   : > { %v3048_v27 = vmul.f32 %v4455_v24, %v3925_v39  ;;  %v3943_v39 = vadd.f32 %v3942_v2, %v6297_v35 }
 0x57f   : > { %v3927_v58 = vpop.f32.mrf.mxu0  ;;  %v3097_v18 = vpop.permute.xlu1 %3096 }
 0x580   : > { %v3928_v5 = vadd.f32 %v3927_v58, %v3926_v32  ;;  %3134 = vrot.lane.b32.xlu0 %v3048_v27, %s4532_s29  ;;  %v3189_v52 = vsel %vm989_vm0, %v6153_v23, %v3097_v18  ;;  %v3947_v23 = vpop.f32.mrf.mxu1  ;;  %v4465_v58 = vpop.eup %4464 }
 0x581   : > { %v3929_v4 = vpop.f32.mrf.mxu0  ;;  %3221 = vst [vmem:[%s6294_s5 + $0x18] sm:$0xff] %v3189_v52  ;;  %v4467_v42 = vpop.eup %4466  ;;  %v3054_v18 = vmul.f32 %v4465_v58, %v3943_v39 }
 0x582   : > { %v3049_v12 = vmul.f32 %v4457_v59, %v3928_v5  ;;  %v3948_v61 = vpop.f32.mrf.mxu1 }
 0x583   : > { %v3930_v44 = vpop.f32.mrf.mxu0  ;;  %v3099_v41 = vpop.permute.xlu0 %3098  ;;  %v3949_v52 = vadd.f32 %v3948_v61, %v3947_v23 }
 0x584   : > { %v3931_v37 = vadd.f32 %v3930_v44, %v3929_v4  ;;  %3136 = vrot.lane.b32.xlu1 %v3049_v12, %s4532_s29  ;;  %v3190_v33 = vsel %vm989_vm0, %v6164_v38, %v3099_v41  ;;  %v3950_v27 = vpop.f32.mrf.mxu1  ;;  %v3946_v4 = vadd.f32 %v3945_v31, %v3944_v60 }
 0x585   : > { %v3932_v53 = vpop.f32.mrf.mxu0  ;;  %3222 = vst [vmem:[%s6294_s5 + $0x20] sm:$0xff] %v3190_v33 }
 0x586   : > { %v3050_v45 = vmul.f32 %v4459_v57, %v3931_v37  ;;  %v3951_v12 = vpop.f32.mrf.mxu1 }
 0x587   : > { %v3933_v40 = vpop.f32.mrf.mxu0  ;;  %v3101_v0 = vpop.permute.xlu1 %3100  ;;  %v3952_v57 = vadd.f32 %v3951_v12, %v3950_v27 }
 0x588   : > { %v3934_v30 = vadd.f32 %v3933_v40, %v3932_v53  ;;  %3138 = vrot.lane.b32.xlu0 %v3050_v45, %s4532_s29  ;;  %v3191_v38 = vsel %vm989_vm0, %v6159_v21, %v3101_v0 }
 0x589   : > { %v3935_v7 = vpop.f32.mrf.mxu0  ;;  %3223 = vst [vmem:[%s6294_s5 + $0x28] sm:$0xff] %v3191_v38 }
 0x58a   : > { %v3051_v48 = vmul.f32 %v4461_v62, %v3934_v30 }
 0x58b   : > { %v3936_v3 = vpop.f32.mrf.mxu0  ;;  %v3103_v24 = vpop.permute.xlu0 %3102 }
 0x58c   : > { %v3937_v26 = vadd.f32 %v3936_v3, %v3935_v7  ;;  %3140 = vrot.lane.b32.xlu1 %v3051_v48, %s4532_s29  ;;  %v3192_v13 = vsel %vm989_vm0, %v6172_v20, %v3103_v24  ;;  %v4469_v20 = vpop.eup %4468 }
 0x58d   : > { %v3938_v34 = vpop.f32.mrf.mxu0  ;;  %3224 = vst [vmem:[%s6294_s5 + $0x30] sm:$0xff] %v3192_v13  ;;  %v4471_v44 = vpop.eup %4470  ;;  %v3055_v37 = vmul.f32 %v4469_v20, %v3946_v4 }
 0x58e   : > { %v3052_v32 = vmul.f32 %v4463_v43, %v3937_v26  ;;  %v3056_v41 = vmul.f32 %v4471_v44, %v3949_v52 }
 0x58f   : > { %v3939_v21 = vpop.f32.mrf.mxu0  ;;  %v3105_v59 = vpop.permute.xlu1 %3104 }
 0x590   : > { %v3940_v5 = vadd.f32 %v3939_v21, %v3938_v34  ;;  %3142 = vrot.lane.b32.xlu0 %v3052_v32, %s4532_s29  ;;  %v3193_v2 = vsel %vm989_vm0, %v6169_v6, %v3105_v59  ;;  %v4473_v6 = vpop.eup %4472  ;;  %v3361_v52 = vld [vmem:[%s6294_s5 + $0x28] sm:$0xff] (%p4605_p6) }
 0x591   : > { %3225 = vst [vmem:[%s6294_s5 + $0x38] sm:$0xff] %v3193_v2  ;;  %v3057_v60 = vmul.f32 %v4473_v6, %v3952_v57  ;;  %3362 = vst [vmem:[%s6427_s9 + $0xa0] sm:$0xff] (%p4605_p6), %v3361_v52 }
 0x592   : > { %v3053_v35 = vmul.f32 %v4467_v42, %v3940_v5 }
 0x594   : > { %3144 = vrot.lane.b32.xlu1 %v3053_v35, %s4532_s29  ;;  %3146 = vrot.lane.b32.xlu0 %v3054_v18, %s4532_s29  ;;  %v3363_v35 = vld [vmem:[%s6294_s5 + $0x30] sm:$0xff] (%p4605_p6) }
 0x595   : > { %3364 = vst [vmem:[%s6427_s9 + $0xc0] sm:$0xff] (%p4605_p6), %v3363_v35 }
 0x598   : > { %3148 = vrot.lane.b32.xlu1 %v3055_v37, %s4532_s29  ;;  %3150 = vrot.lane.b32.xlu0 %v3056_v41, %s4532_s29  ;;  %v3365_v2 = vld [vmem:[%s6294_s5 + $0x38] sm:$0xff] (%p4605_p6) }
 0x599   : > { %3366 = vst [vmem:[%s6427_s9 + $0xe0] sm:$0xff] (%p4605_p6), %v3365_v2 }
 0x59c   : > { %3152 = vrot.lane.b32.xlu1 %v3057_v60, %s4532_s29 }
 0x5b7   : > { %v3107_v31 = vpop.permute.xlu0 %3106 }
 0x5b8   : > { %v3194_v53 = vsel %vm989_vm0, %v6181_v25, %v3107_v31 }
 0x5b9   : > { %3226 = vst [vmem:[%s6294_s5 + $0x40] sm:$0xff] %v3194_v53 }
 0x5bb   : > { %v3109_v33 = vpop.permute.xlu1 %3108 }
 0x5bc   : > { %v3195_v45 = vsel %vm989_vm0, %v6176_v11, %v3109_v33 }
 0x5bd   : > { %3227 = vst [vmem:[%s6294_s5 + $0x48] sm:$0xff] %v3195_v45 }
 0x5bf   : > { %v3111_v23 = vpop.permute.xlu0 %3110 }
 0x5c0   : > { %v3196_v40 = vsel %vm989_vm0, %v6190_v36, %v3111_v23  ;;  %v3367_v12 = vld [vmem:[%s6294_s5 + $0x40] sm:$0xff] (%p4605_p6) }
 0x5c1   : > { %3228 = vst [vmem:[%s6294_s5 + $0x50] sm:$0xff] %v3196_v40  ;;  %3368 = vst [vmem:[%s6427_s9 + $0x100] sm:$0xff] (%p4605_p6), %v3367_v12 }
 0x5c3   : > { %v3113_v30 = vpop.permute.xlu1 %3112 }
 0x5c4   : > { %v3197_v62 = vsel %vm989_vm0, %v6187_v49, %v3113_v30  ;;  %v3369_v20 = vld [vmem:[%s6294_s5 + $0x48] sm:$0xff] (%p4605_p6) }
 0x5c5   : > { %3229 = vst [vmem:[%s6294_s5 + $0x58] sm:$0xff] %v3197_v62  ;;  %3370 = vst [vmem:[%s6427_s9 + $0x120] sm:$0xff] (%p4605_p6), %v3369_v20 }
 0x5c7   : > { %v3115_v25 = vpop.permute.xlu0 %3114 }
 0x5c8   : > { %v3198_v7 = vsel %vm989_vm0, %v6198_v15, %v3115_v25  ;;  %v3371_v44 = vld [vmem:[%s6294_s5 + $0x50] sm:$0xff] (%p4605_p6) }
 0x5c9   : > { %3230 = vst [vmem:[%s6294_s5 + $0x60] sm:$0xff] %v3198_v7  ;;  %3372 = vst [vmem:[%s6427_s9 + $0x140] sm:$0xff] (%p4605_p6), %v3371_v44 }
 0x5cb   : > { %v3117_v11 = vpop.permute.xlu1 %3116 }
 0x5cc   : > { %v3199_v0 = vsel %vm989_vm0, %v6193_v16, %v3117_v11  ;;  %v3373_v37 = vld [vmem:[%s6294_s5 + $0x58] sm:$0xff] (%p4605_p6) }
 0x5cd   : > { %3231 = vst [vmem:[%s6294_s5 + $0x68] sm:$0xff] %v3199_v0  ;;  %3374 = vst [vmem:[%s6427_s9 + $0x160] sm:$0xff] (%p4605_p6), %v3373_v37 }
 0x5d0   : > { %v3375_v41 = vld [vmem:[%s6294_s5 + $0x60] sm:$0xff] (%p4605_p6) }
 0x5d1   : > { %3376 = vst [vmem:[%s6427_s9 + $0x180] sm:$0xff] (%p4605_p6), %v3375_v41 }
 0x5d2   : > { %v3119_v36 = vpop.permute.xlu0 %3118 }
 0x5d3   : > { %v3200_v48 = vsel %vm989_vm0, %v6206_v9, %v3119_v36 }
 0x5d4   : > { %3232 = vst [vmem:[%s6294_s5 + $0x70] sm:$0xff] %v3200_v48  ;;  %v3377_v57 = vld [vmem:[%s6294_s5 + $0x68] sm:$0xff] (%p4605_p6) }
 0x5d5   : > { %3378 = vst [vmem:[%s6427_s9 + $0x1a0] sm:$0xff] (%p4605_p6), %v3377_v57 }
 0x5d6   : > { %v3121_v49 = vpop.permute.xlu1 %3120 }
 0x5d7   : > { %v3201_v38 = vsel %vm989_vm0, %v6203_v54, %v3121_v49 }
 0x5d8   : > { %3233 = vst [vmem:[%s6294_s5 + $0x78] sm:$0xff] %v3201_v38 }
 0x5da   : > { %v3123_v15 = vpop.permute.xlu0 %3122 }
 0x5db   : > { %v3202_v61 = vsel %vm989_vm0, %v6214_v8, %v3123_v15  ;;  %v3379_v6 = vld [vmem:[%s6294_s5 + $0x70] sm:$0xff] (%p4605_p6) }
 0x5dc   : > { %3234 = vst [vmem:[%s6294_s5 + $0x80] sm:$0xff] %v3202_v61  ;;  %3380 = vst [vmem:[%s6427_s9 + $0x1c0] sm:$0xff] (%p4605_p6), %v3379_v6 }
 0x5de   : > { %v3125_v16 = vpop.permute.xlu1 %3124 }
 0x5df   : > { %v3203_v3 = vsel %vm989_vm0, %v6209_v29, %v3125_v16  ;;  %v3381_v60 = vld [vmem:[%s6294_s5 + $0x78] sm:$0xff] (%p4605_p6) }
 0x5e0   : > { %3235 = vst [vmem:[%s6294_s5 + $0x88] sm:$0xff] %v3203_v3  ;;  %3382 = vst [vmem:[%s6427_s9 + $0x1e0] sm:$0xff] (%p4605_p6), %v3381_v60 }
 0x5e2   : > { %v3127_v9 = vpop.permute.xlu0 %3126 }
 0x5e3   : > { %v3204_v26 = vsel %vm989_vm0, %v6220_v47, %v3127_v9  ;;  %v3383_v31 = vld [vmem:[%s6294_s5 + $0x80] sm:$0xff] (%p4605_p6) }
 0x5e4   : > { %3236 = vst [vmem:[%s6294_s5 + $0x90] sm:$0xff] %v3204_v26  ;;  %3384 = vst [vmem:[%s6427_s9 + $0x200] sm:$0xff] (%p4605_p6), %v3383_v31 }
 0x5e6   : > { %v3129_v54 = vpop.permute.xlu1 %3128 }
 0x5e7   : > { %v3205_v43 = vsel %vm989_vm0, %v6217_v28, %v3129_v54  ;;  %v3385_v53 = vld [vmem:[%s6294_s5 + $0x88] sm:$0xff] (%p4605_p6) }
 0x5e8   : > { %3237 = vst [vmem:[%s6294_s5 + $0x98] sm:$0xff] %v3205_v43  ;;  %3386 = vst [vmem:[%s6427_s9 + $0x220] sm:$0xff] (%p4605_p6), %v3385_v53 }
 0x5ea   : > { %v3131_v8 = vpop.permute.xlu0 %3130 }
 0x5eb   : > { %v3206_v39 = vsel %vm989_vm0, %v6226_v56, %v3131_v8  ;;  %v3387_v33 = vld [vmem:[%s6294_s5 + $0x90] sm:$0xff] (%p4605_p6) }
 0x5ec   : > { %3238 = vst [vmem:[%s6294_s5 + $0xa0] sm:$0xff] %v3206_v39  ;;  %3388 = vst [vmem:[%s6427_s9 + $0x240] sm:$0xff] (%p4605_p6), %v3387_v33 }
 0x5ee   : > { %v3133_v29 = vpop.permute.xlu1 %3132 }
 0x5ef   : > { %v3207_v34 = vsel %vm989_vm0, %v6223_v51, %v3133_v29  ;;  %v3389_v45 = vld [vmem:[%s6294_s5 + $0x98] sm:$0xff] (%p4605_p6) }
 0x5f0   : > { %3239 = vst [vmem:[%s6294_s5 + $0xa8] sm:$0xff] %v3207_v34  ;;  %3390 = vst [vmem:[%s6427_s9 + $0x260] sm:$0xff] (%p4605_p6), %v3389_v45 }
 0x5f2   : > { %v3135_v47 = vpop.permute.xlu0 %3134 }
 0x5f3   : > { %v3208_v24 = vsel %vm989_vm0, %v6232_v17, %v3135_v47  ;;  %v3391_v23 = vld [vmem:[%s6294_s5 + $0xa0] sm:$0xff] (%p4605_p6) }
 0x5f4   : > { %3240 = vst [vmem:[%s6294_s5 + $0xb0] sm:$0xff] %v3208_v24  ;;  %3392 = vst [vmem:[%s6427_s9 + $0x280] sm:$0xff] (%p4605_p6), %v3391_v23 }
 0x5f6   : > { %v3137_v28 = vpop.permute.xlu1 %3136 }
 0x5f7   : > { %v3209_v32 = vsel %vm989_vm0, %v6229_v22, %v3137_v28  ;;  %v3393_v40 = vld [vmem:[%s6294_s5 + $0xa8] sm:$0xff] (%p4605_p6) }
 0x5f8   : > { %3241 = vst [vmem:[%s6294_s5 + $0xb8] sm:$0xff] %v3209_v32  ;;  %3394 = vst [vmem:[%s6427_s9 + $0x2a0] sm:$0xff] (%p4605_p6), %v3393_v40 }
 0x5fa   : > { %v3139_v56 = vpop.permute.xlu0 %3138 }
 0x5fb   : > { %v3210_v13 = vsel %vm989_vm0, %v6238_v19, %v3139_v56  ;;  %v3395_v30 = vld [vmem:[%s6294_s5 + $0xb0] sm:$0xff] (%p4605_p6) }
 0x5fc   : > { %3242 = vst [vmem:[%s6294_s5 + $0xc0] sm:$0xff] %v3210_v13  ;;  %3396 = vst [vmem:[%s6427_s9 + $0x2c0] sm:$0xff] (%p4605_p6), %v3395_v30 }
 0x5fe   : > { %v3141_v51 = vpop.permute.xlu1 %3140 }
 0x5ff   : > { %v3211_v27 = vsel %vm989_vm0, %v6235_v14, %v3141_v51  ;;  %v3397_v62 = vld [vmem:[%s6294_s5 + $0xb8] sm:$0xff] (%p4605_p6) }
 0x600   : > { %3243 = vst [vmem:[%s6294_s5 + $0xc8] sm:$0xff] %v3211_v27  ;;  %3398 = vst [vmem:[%s6427_s9 + $0x2e0] sm:$0xff] (%p4605_p6), %v3397_v62 }
 0x602   : > { %v3143_v17 = vpop.permute.xlu0 %3142 }
 0x603   : > { %v3212_v21 = vsel %vm989_vm0, %v6244_v63, %v3143_v17  ;;  %v3399_v25 = vld [vmem:[%s6294_s5 + $0xc0] sm:$0xff] (%p4605_p6) }
 0x604   : > { %3244 = vst [vmem:[%s6294_s5 + $0xd0] sm:$0xff] %v3212_v21  ;;  %3400 = vst [vmem:[%s6427_s9 + $0x300] sm:$0xff] (%p4605_p6), %v3399_v25 }
 0x606   : > { %v3145_v22 = vpop.permute.xlu1 %3144  ;;  %v3147_v58 = vpop.permute.xlu0 %3146 }
 0x607   : > { %v3213_v5 = vsel %vm989_vm0, %v6241_v10, %v3145_v22  ;;  %v3214_v19 = vsel %vm989_vm0, %v6250_v46, %v3147_v58  ;;  %v3351_v10 = vld [vmem:[%s6294_s5] sm:$0xff] (%p4605_p6)  ;;  %v3355_v46 = vld [vmem:[%s6294_s5 + $0x10] sm:$0xff] (%p4605_p6)  ;;  %v3401_v7 = vld [vmem:[%s6294_s5 + $0xc8] sm:$0xff] (%p4605_p6) }
 0x608   : > { %3245 = vst [vmem:[%s6294_s5 + $0xd8] sm:$0xff] %v3213_v5  ;;  %3246 = vst [vmem:[%s6294_s5 + $0xe0] sm:$0xff] %v3214_v19 }
 0x609   : > { %3352 = vst [vmem:[%s6427_s9] sm:$0xff] (%p4605_p6), %v3351_v10  ;;  %3356 = vst [vmem:[%s6427_s9 + $0x40] sm:$0xff] (%p4605_p6), %v3355_v46 }
 0x60a   : > { %v3149_v42 = vpop.permute.xlu1 %3148  ;;  %v3151_v14 = vpop.permute.xlu0 %3150  ;;  %3402 = vst [vmem:[%s6427_s9 + $0x320] sm:$0xff] (%p4605_p6), %v3401_v7 }
 0x60b   : > { %v3215_v18 = vsel %vm989_vm0, %v6247_v50, %v3149_v42  ;;  %v3216_v63 = vsel %vm989_vm0, %v6256_v55, %v3151_v14  ;;  %v3353_v50 = vld [vmem:[%s6294_s5 + $0x8] sm:$0xff] (%p4605_p6)  ;;  %v3359_v55 = vld [vmem:[%s6294_s5 + $0x20] sm:$0xff] (%p4605_p6)  ;;  %v3403_v11 = vld [vmem:[%s6294_s5 + $0xd0] sm:$0xff] (%p4605_p6) }
 0x60c   : > { %3247 = vst [vmem:[%s6294_s5 + $0xe8] sm:$0xff] %v3215_v18  ;;  %3248 = vst [vmem:[%s6294_s5 + $0xf0] sm:$0xff] %v3216_v63  ;;  %3256 = sbr.rel (!%p4605_p6) target bundleno = 1561 (0x619), region = 159 }
 0x60d   : > { %3354 = vst [vmem:[%s6427_s9 + $0x20] sm:$0xff] (%p4605_p6), %v3353_v50  ;;  %3360 = vst [vmem:[%s6427_s9 + $0x80] sm:$0xff] (%p4605_p6), %v3359_v55 }
 0x60e   : > { %v3153_v59 = vpop.permute.xlu1 %3152  ;;  %3404 = vst [vmem:[%s6427_s9 + $0x340] sm:$0xff] (%p4605_p6), %v3403_v11 }
 0x60f   : > { %v3217_v4 = vsel %vm989_vm0, %v6253_v1, %v3153_v59  ;;  %v3357_v1 = vld [vmem:[%s6294_s5 + $0x18] sm:$0xff] (%p4605_p6)  ;;  %v3407_v36 = vld [vmem:[%s6294_s5 + $0xe0] sm:$0xff] (%p4605_p6) }
 0x610   : > { %3249 = vst [vmem:[%s6294_s5 + $0xf8] sm:$0xff] %v3217_v4  ;;  %3358 = vst [vmem:[%s6427_s9 + $0x60] sm:$0xff] (%p4605_p6), %v3357_v1  ;;  %v3405_v0 = vld [vmem:[%s6294_s5 + $0xd8] sm:$0xff] (%p4605_p6) }
 0x611   : > { %3406 = vst [vmem:[%s6427_s9 + $0x360] sm:$0xff] %v3405_v0  ;;  %3408 = vst [vmem:[%s6427_s9 + $0x380] sm:$0xff] %v3407_v36 }
 0x613   : > { %v3409_v48 = vld [vmem:[%s6294_s5 + $0xe8] sm:$0xff]  ;;  %v3411_v49 = vld [vmem:[%s6294_s5 + $0xf0] sm:$0xff] }
 0x614   : > { %3410 = vst [vmem:[%s6427_s9 + $0x3a0] sm:$0xff] %v3409_v48  ;;  %3412 = vst [vmem:[%s6427_s9 + $0x3c0] sm:$0xff] %v3411_v49 }
 0x617   : > { %v3413_v38 = vld [vmem:[%s6294_s5 + $0xf8] sm:$0xff] }
 0x618   : > { %3414 = vst [vmem:[%s6427_s9 + $0x3e0] sm:$0xff] %v3413_v38 }
 0x619 PF: > { %s13_s18 = sadd.s32 1, %s4530_s18   ;;  %s6831_s12 = smov %s4510_s13 }
 0x61a   : > { %p10_p12 = scmp.ge.s32.totalorder %s13_s18, 10   ;;  %s6832_s13 = smov %s4613_s28 }
 0x61b   : > { %s6833_s14 = smov %s4522_s16  ;;  %s6834_s15 = smov %s4526_s17 }
 0x61c   : > { %s6835_s16 = smov %s6838_s19  ;;  %s6836_s17 = smov %s6842_s20 }
 0x61d   :  { %12 = sbr.rel (!%p10_p12) target bundleno = 4 (0x4), region = 244 }

</bundles_post_ra>
